<compile_context>
chip_gen: v7x
topology: tpu7x:2x2x1
jax: 0.10.0
libtpu: 0.0.40
codegen_flags: <defaults>
</compile_context>

<pallas_src>
import numpy as np
import jax
import jax.numpy as jnp
from jax.experimental import pallas as pl
from jax.experimental.pallas import tpu as pltpu

# ---------------- module hyperparameters (from __init__ defaults) -----------
FILTER_LENGTH = 1024                      # n_fft
HOP_LENGTH = 256
WIN_LENGTH = 1024
N_MELS = 80
N_MELS_PAD = 128                          # lane-dense output; sliced back to 80
MEL_FMIN = 0.0
MEL_FMAX = 8000.0
SAMPLE_RATE = 22050
N_FREQS = FILTER_LENGTH // 2 + 1          # 513 one-sided bins
F_PAD = 640                               # freq dim padded to a lane multiple
LOG_CLAMP_MIN = 1e-5
CHUNKS_PER_FRAME = FILTER_LENGTH // HOP_LENGTH   # 4 (hop divides n_fft exactly)
MAX_TM = 512                              # frames per tile; <=512 keeps v7x VMEM safe


# ---------------- deterministic "parameter" construction --------------------
def _hz_to_mel_htk(f):
    return 2595.0 * np.log10(1.0 + f / 700.0)


def _mel_to_hz_htk(m):
    return 700.0 * (10.0 ** (m / 2595.0) - 1.0)


def make_mel_filterbank_padded():
    """torchaudio melscale_fbanks (mel_scale='htk', norm='slaney' as in the spec),
    zero-padded to (F_PAD, N_MELS_PAD) for lane-dense MXU use."""
    all_freqs = np.linspace(0.0, SAMPLE_RATE // 2, N_FREQS)
    m_min = _hz_to_mel_htk(MEL_FMIN)
    m_max = _hz_to_mel_htk(MEL_FMAX)
    m_pts = np.linspace(m_min, m_max, N_MELS + 2)
    f_pts = _mel_to_hz_htk(m_pts)
    f_diff = f_pts[1:] - f_pts[:-1]                        # (n_mels+1,)
    slopes = f_pts[None, :] - all_freqs[:, None]           # (n_freqs, n_mels+2)
    down = -slopes[:, :-2] / f_diff[:-1]
    up = slopes[:, 2:] / f_diff[1:]
    fb = np.maximum(0.0, np.minimum(down, up))             # (n_freqs, n_mels)
    enorm = 2.0 / (f_pts[2:N_MELS + 2] - f_pts[:N_MELS])   # slaney area norm
    fb = fb * enorm[None, :]
    fb_p = np.zeros((F_PAD, N_MELS_PAD), np.float32)
    fb_p[:N_FREQS, :N_MELS] = fb
    return fb_p


def make_fused_dft_matrix():
    """Window-fused [cos | sin] DFT matrix (n_fft, 2*F_PAD); padded bins are zero."""
    n = np.arange(FILTER_LENGTH)
    # periodic Hann window (torch.hann_window default, periodic=True)
    window = 0.5 * (1.0 - np.cos(2.0 * np.pi * n / WIN_LENGTH))
    f = np.arange(N_FREQS)
    ang = 2.0 * np.pi * np.outer(n, f) / FILTER_LENGTH
    w = np.zeros((FILTER_LENGTH, 2 * F_PAD), np.float32)
    w[:, :N_FREQS] = window[:, None] * np.cos(ang)
    w[:, F_PAD:F_PAD + N_FREQS] = window[:, None] * np.sin(ang)
    return w


# ---------------- Pallas kernel ---------------------------------------------
def mel_kernel(chunk_ref, tail_ref, w_ref, fb_ref, out_ref):
    # chunk_ref: (1, TM, HOP) f32     -- hop-sized audio chunks of this tile
    # tail_ref : (1, 8, HOP)  f32     -- first 8 chunks of the next tile (overlap)
    # w_ref    : (1024, 2*F_PAD) bf16 -- window-fused [cos | sin] DFT matrix
    # fb_ref   : (F_PAD, N_MELS_PAD) bf16
    # out_ref  : (1, TM, N_MELS_PAD) f32
    tm = chunk_ref.shape[1]
    allc = jnp.concatenate([chunk_ref[0], tail_ref[0]], axis=0)       # (TM+8, HOP)
    # frame t = chunks[t], chunks[t+1], chunks[t+2], chunks[t+3] concatenated
    frames = jnp.concatenate(
        [allc[j:j + tm] for j in range(CHUNKS_PER_FRAME)], axis=1)    # (TM, 1024)
    spec = jnp.dot(frames.astype(jnp.bfloat16), w_ref[...],
                   preferred_element_type=jnp.float32)                # (TM, 1280)
    re = spec[:, :F_PAD]
    im = spec[:, F_PAD:]
    power = re * re + im * im                                         # |STFT|^2 f32
    mel = jnp.dot(power.astype(jnp.bfloat16), fb_ref[...],
                  preferred_element_type=jnp.float32)                 # (TM, 128)
    out_ref[0] = jnp.log(jnp.maximum(mel, LOG_CLAMP_MIN))


# ---------------- wrapper ----------------------------------------------------
def torch_mel_spectrogram(audio, w_fused, fb_padded):
    """audio: (B, num_samples) float32 -> (B, n_mels, T) float32."""
    if audio.ndim == 3:                   # mirror the torch .squeeze(1) path
        audio = jnp.squeeze(audio, axis=1)
    assert audio.ndim == 2, "Input tensor must have shape (batch_size, num_samples)"
    B, num_samples = audio.shape
    assert num_samples > FILTER_LENGTH // 2, \
        "reflect padding requires num_samples > n_fft // 2"

    n_frames = 1 + num_samples // HOP_LENGTH
    tm = min(MAX_TM, ((n_frames + 7) // 8) * 8)       # frames per tile (mult of 8)
    n_tiles = pl.cdiv(n_frames, tm)
    t_pad = n_tiles * tm
    # chunks needed: t_pad frames need chunks [0, t_pad+3); +8 keeps the last
    # tile's "tail" block (8 chunks) in range and sublane aligned.
    n_chunks = t_pad + 8

    # center=True reflect padding, then zero-pad so the audio reshapes exactly
    # into hop-sized chunks (no gather: framing happens inside the kernel).
    pad = FILTER_LENGTH // 2
    x = jnp.pad(audio, ((0, 0), (pad, pad)), mode="reflect")
    x = jnp.pad(x, ((0, 0), (0, n_chunks * HOP_LENGTH - x.shape[1])))
    chunks = x.reshape(B, n_chunks, HOP_LENGTH)        # (B, n_chunks, 256) f32

    out = pl.pallas_call(
        mel_kernel,
        out_shape=jax.ShapeDtypeStruct((B, t_pad, N_MELS_PAD), jnp.float32),
        grid_spec=pltpu.PrefetchScalarGridSpec(
            num_scalar_prefetch=0,
            grid=(B, n_tiles),
            in_specs=[
                # this tile's chunks
                pl.BlockSpec((1, tm, HOP_LENGTH), lambda b, t: (b, t, 0)),
                # first 8 chunks of the next tile (frame overlap of 3 chunks)
                pl.BlockSpec((1, 8, HOP_LENGTH),
                             lambda b, t: (b, (t + 1) * (tm // 8), 0)),
                # grid-invariant weights
                pl.BlockSpec((FILTER_LENGTH, 2 * F_PAD), lambda b, t: (0, 0)),
                pl.BlockSpec((F_PAD, N_MELS_PAD), lambda b, t: (0, 0)),
            ],
            out_specs=pl.BlockSpec((1, tm, N_MELS_PAD), lambda b, t: (b, t, 0)),
        ),
        compiler_params=pltpu.CompilerParams(
            dimension_semantics=("parallel", "parallel"),
            vmem_limit_bytes=32 * 1024 * 1024),
    )(chunks, chunks, w_fused, fb_padded)

    # (B, T_pad, 128) -> drop padded frames/mels -> (B, n_mels, T)
    mel = jnp.transpose(out[:, :n_frames, :N_MELS], (0, 2, 1))
    # TODO(synk): mel_norms division skipped — mel_norm_file is None in __init__.
    return mel


if __name__ == "__main__":
    key = jax.random.PRNGKey(0)
    batch, num_samples = 2, 4096            # small, but > n_fft//2 for reflect pad
    audio = jax.random.normal(key, (batch, num_samples), dtype=jnp.float32)

    w_fused = jnp.asarray(make_fused_dft_matrix(), dtype=jnp.bfloat16)
    fb_padded = jnp.asarray(make_mel_filterbank_padded(), dtype=jnp.bfloat16)

    mel = torch_mel_spectrogram(audio, w_fused, fb_padded)
    jax.block_until_ready(mel)
    assert mel.shape == (batch, N_MELS, 1 + num_samples // HOP_LENGTH), mel.shape
    print("KERNEL_OK")
</pallas_src>

<mosaic_0001>
module attributes {stable_mosaic.version = 11 : i64} {
  func.func @mel_kernel(%arg0: i32, %arg1: i32, %arg2: memref<1x24x256xf32, #tpu.memory_space<vmem>>, %arg3: memref<1x8x256xf32, #tpu.memory_space<vmem>>, %arg4: memref<1024x1280xbf16, #tpu.memory_space<vmem>>, %arg5: memref<640x128xbf16, #tpu.memory_space<vmem>>, %arg6: memref<1x24x128xf32, #tpu.memory_space<vmem>>) attributes {dimension_semantics = [#tpu.dimension_semantics<parallel>, #tpu.dimension_semantics<parallel>], iteration_bounds = array<i64: 2, 1>, scalar_prefetch = 0 : i64, scratch_operands = 0 : i64, tpu.core_type = #tpu.core_type<tc>, window_params = [{transform_indices = @transform_0, window_bounds = array<i64: 1, 24, 256>}, {transform_indices = @transform_1, window_bounds = array<i64: 1, 8, 256>}, {pipeline_mode = #tpu.pipeline_mode<synchronous>, transform_indices = @transform_2, window_bounds = array<i64: 1024, 1280>}, {pipeline_mode = #tpu.pipeline_mode<synchronous>, transform_indices = @transform_3, window_bounds = array<i64: 640, 128>}, {transform_indices = @transform_4, window_bounds = array<i64: 1, 24, 128>}]} {
    %c0 = arith.constant 0 : index
    %c0_0 = arith.constant 0 : index
    %c0_1 = arith.constant 0 : index
    %0 = vector.load %arg2[%c0, %c0_0, %c0_1] : memref<1x24x256xf32, #tpu.memory_space<vmem>>, vector<1x24x256xf32>
    %1 = vector.shape_cast %0 : vector<1x24x256xf32> to vector<24x256xf32>
    %c0_2 = arith.constant 0 : index
    %c0_3 = arith.constant 0 : index
    %c0_4 = arith.constant 0 : index
    %2 = vector.load %arg3[%c0_2, %c0_3, %c0_4] : memref<1x8x256xf32, #tpu.memory_space<vmem>>, vector<1x8x256xf32>
    %3 = vector.shape_cast %2 : vector<1x8x256xf32> to vector<8x256xf32>
    %4 = tpu.concatenate %1, %3 in 0 : vector<24x256xf32>, vector<8x256xf32> -> vector<32x256xf32>
    %5 = vector.extract_strided_slice %4 {offsets = [0, 0], sizes = [24, 256], strides = [1, 1]} : vector<32x256xf32> to vector<24x256xf32>
    %6 = vector.extract_strided_slice %4 {offsets = [1, 0], sizes = [24, 256], strides = [1, 1]} : vector<32x256xf32> to vector<24x256xf32>
    %7 = vector.extract_strided_slice %4 {offsets = [2, 0], sizes = [24, 256], strides = [1, 1]} : vector<32x256xf32> to vector<24x256xf32>
    %8 = vector.extract_strided_slice %4 {offsets = [3, 0], sizes = [24, 256], strides = [1, 1]} : vector<32x256xf32> to vector<24x256xf32>
    %9 = tpu.concatenate %5, %6, %7, %8 in 1 : vector<24x256xf32>, vector<24x256xf32>, vector<24x256xf32>, vector<24x256xf32> -> vector<24x1024xf32>
    %10 = arith.truncf %9 : vector<24x1024xf32> to vector<24x1024xbf16>
    %c0_5 = arith.constant 0 : index
    %c0_6 = arith.constant 0 : index
    %11 = vector.load %arg4[%c0_5, %c0_6] : memref<1024x1280xbf16, #tpu.memory_space<vmem>>, vector<1024x1280xbf16>
    %cst = arith.constant dense<0.000000e+00> : vector<24x1280xf32>
    %12 = tpu.matmul %10, %11, %cst {dimension_numbers = #tpu.dot_dimension_numbers<[1], [0], [0], [1], [0, 0, 1, 1], [], []>} : vector<24x1024xbf16>, vector<1024x1280xbf16>, vector<24x1280xf32> -> vector<24x1280xf32>
    %13 = vector.extract_strided_slice %12 {offsets = [0, 0], sizes = [24, 640], strides = [1, 1]} : vector<24x1280xf32> to vector<24x640xf32>
    %14 = vector.extract_strided_slice %12 {offsets = [0, 640], sizes = [24, 640], strides = [1, 1]} : vector<24x1280xf32> to vector<24x640xf32>
    %15 = arith.mulf %13, %13 : vector<24x640xf32>
    %16 = arith.mulf %14, %14 : vector<24x640xf32>
    %17 = arith.addf %15, %16 : vector<24x640xf32>
    %18 = arith.truncf %17 : vector<24x640xf32> to vector<24x640xbf16>
    %c0_7 = arith.constant 0 : index
    %c0_8 = arith.constant 0 : index
    %19 = vector.load %arg5[%c0_7, %c0_8] : memref<640x128xbf16, #tpu.memory_space<vmem>>, vector<640x128xbf16>
    %cst_9 = arith.constant dense<0.000000e+00> : vector<24x128xf32>
    %20 = tpu.matmul %18, %19, %cst_9 {dimension_numbers = #tpu.dot_dimension_numbers<[1], [0], [0], [1], [0, 0, 1, 1], [], []>} : vector<24x640xbf16>, vector<640x128xbf16>, vector<24x128xf32> -> vector<24x128xf32>
    %cst_10 = arith.constant 9.99999974E-6 : f32
    %21 = vector.broadcast %cst_10 : f32 to vector<24x128xf32>
    %22 = arith.maximumf %20, %21 : vector<24x128xf32>
    %23 = math.log %22 : vector<24x128xf32>
    %c0_11 = arith.constant 0 : index
    %c0_12 = arith.constant 0 : index
    %c0_13 = arith.constant 0 : index
    %24 = vector.load %arg6[%c0_11, %c0_12, %c0_13] : memref<1x24x128xf32, #tpu.memory_space<vmem>>, vector<1x24x128xf32>
    %25 = vector.shape_cast %24 : vector<1x24x128xf32> to vector<24x128xf32>
    %26 = vector.shape_cast %23 : vector<24x128xf32> to vector<1x24x128xf32>
    tpu.vector_store %arg6[%c0_11, %c0_12, %c0_13], %26 {strides = array<i32>} : memref<1x24x128xf32, #tpu.memory_space<vmem>>, vector<1x24x128xf32>,
    return
  }
  func.func @transform_0(%arg0: i32, %arg1: i32) -> (i32, i32, i32) {
    %c0_i32 = arith.constant 0 : i32
    %c0_i32_0 = arith.constant 0 : i32
    return %arg0, %arg1, %c0_i32 : i32, i32, i32
  }
  func.func @transform_1(%arg0: i32, %arg1: i32) -> (i32, i32, i32) {
    %c1_i32 = arith.constant 1 : i32
    %0 = arith.addi %arg1, %c1_i32 : i32
    %c3_i32 = arith.constant 3 : i32
    %1 = arith.muli %0, %c3_i32 : i32
    %c0_i32 = arith.constant 0 : i32
    %c0_i32_0 = arith.constant 0 : i32
    return %arg0, %1, %c0_i32 : i32, i32, i32
  }
  func.func @transform_2(%arg0: i32, %arg1: i32) -> (i32, i32) {
    %c0_i32 = arith.constant 0 : i32
    %c0_i32_0 = arith.constant 0 : i32
    %c0_i32_1 = arith.constant 0 : i32
    return %c0_i32, %c0_i32_0 : i32, i32
  }
  func.func @transform_3(%arg0: i32, %arg1: i32) -> (i32, i32) {
    %c0_i32 = arith.constant 0 : i32
    %c0_i32_0 = arith.constant 0 : i32
    %c0_i32_1 = arith.constant 0 : i32
    return %c0_i32, %c0_i32_0 : i32, i32
  }
  func.func @transform_4(%arg0: i32, %arg1: i32) -> (i32, i32, i32) {
    %c0_i32 = arith.constant 0 : i32
    %c0_i32_0 = arith.constant 0 : i32
    return %arg0, %arg1, %c0_i32 : i32, i32, i32
  }
}

</mosaic_0001>

<bundles_post_ra>
// kernel: tpu_custom_call.1
= control target key start
LH: loop header
LB: loop body
LE: loop exit
PB: predicated region body
PF: predicated region fallthrough
CT: control target
= control target key end

     0   :  { %s8845_s0 = inlined_call_operand.hbm [shape: f32[2,32,256], index: 0, kind: input, shape index: {}]   ;;  %s8846_s1 = inlined_call_operand.hbm [shape: f32[2,32,256], index: 1, kind: input, shape index: {}]   ;;  %s8847_s2 = inlined_call_operand.hbm [shape: bf16[1024,1280], index: 2, kind: input, shape index: {}]   ;;  %s8848_s3 = inlined_call_operand.hbm [shape: bf16[640,128], index: 3, kind: input, shape index: {}]   ;;  %s8849_s4 = inlined_call_operand.hbm [shape: f32[2,24,128], index: 4, kind: output, shape index: {}]  }
   0x1   :  { %8855 = sst [smem:[#allocation18_spill]] %s8845_s0 }
   0x2   :  { %8856 = sst [smem:[#allocation19_spill]] %s8847_s2 }
   0x3   :  { %8857 = sst [smem:[#allocation20_spill]] %s8848_s3 }
   0x4   :  { %9 = vsyncpa [#allocation3], 0 }
   0x5   :  { %11 = vsyncpa [#allocation3 + $0x1], 0 }
   0x6   :  { %12 = vsyncpa [#allocation6], 0 }
   0x7   :  { %14 = vsyncpa [#allocation6 + $0x1], 0 }
   0x8   :  { %15 = vsyncpa [#allocation9], 0 }
   0x9   :  { %16 = vsyncpa [#allocation4], 0 }
   0xa   :  { %18 = vsyncpa [#allocation4 + $0x1], 0  ;;  %s8225_s15 = smov 0   ;;  %s8227_s16 = smov 0  }
   0xb   :  { %s8229_s17 = smov 0   ;;  %s8231_s18 = smov 0  }
   0xc   :  { %s8233_s19 = smov 0   ;;  %s8235_s20 = smov 0  }
   0xd LB: > { %s8256_s21 = sadd.s32 4294967295, %s8185_s20   ;;  %s5965_s22 = sadd.s32 4294967294, %s8185_s20   ;;  %s8185_s20 = sphi %s8235_s20, %s24_s20   ;;  %s8181_s19 = sphi %s8233_s19, %s8885_s19   ;;  %s8177_s18 = sphi %s8231_s18, %s8884_s18   ;;  %s8173_s17 = sphi %s8229_s17, %s8883_s17   ;;  %s8169_s16 = sphi %s8227_s16, %s8882_s16   ;;  %s8165_s15 = sphi %s8225_s15, %s8881_s15  }
   0xe   : > { %p58_p0 = scmp.ne.s32.totalorder %s8169_s16, %s8165_s15  ;;  %p8850_p1 = scmp.eq.s32.totalorder %s8256_s21, 0 }
   0xf   : > { %p164_p3 = scmp.eq.s32.totalorder %s5965_s22, 1  ;;  %p5966_p5 = scmp.ge.s32.totalorder %s8185_s20, 1 }
  0x10   : > { %p8265_p4 = por %p8850_p1, %p58_p0  ;;  %p171_p7 = scmp.lt.s32.totalorder %s8185_s20, 3 }
  0x11   : > { %p8270_p6 = por %p164_p3, %p58_p0  ;;  %s8187_s26 = smov [#allocation7]  }
  0x12   : > { %s8858_s23 = scalar_select %p8265_p4, 1, 0 }
  0x13   : > { %s8859_s24 = scalar_select %p8270_p6, 1, 0 }
  0x14   : > { %p8275_p8 = pnand %p5966_p5, %p171_p7  ;;  %s183_s27 = sshll.u32 %s8187_s26, 4  ;;  %s8279_s27 = int_to_ptr.vmem [resolvable:$true] %s183_s27 }
  0x15   : > { %s8188_s29 = smov [#allocation8]   ;;  %s8862_s2 = sld [smem:[#allocation19_spill]] }
  0x16   : > { %s8860_s25 = scalar_select %p8275_p8, 1, 0 }
  0x17   : > { %p6886_p9 = pneg %p8275_p8  ;;  %s196_s30 = sshll.u32 %s8188_s29, 4  ;;  %s8290_s30 = int_to_ptr.vmem [resolvable:$true] %s196_s30 }
  0x19   : > { %p8286_p11 = pnand %p6886_p9, %p8850_p1 }
  0x1b   : > { %s7974_s7 = scalar_lea.hbm %s8862_s2, 81920  ;;  %p7976_p13 = pneg %p8286_p11 }
  0x1c   : > { %p7975_p12 = scmp.ne.s32.totalorder %s8862_s2, %s7974_s7  ;;  %p7981_p5 = scmp.lt.u32.totalorder %s7974_s7, %s8862_s2 }
  0x1e   : > { %p7977_p0 = pnand %p7976_p13, %p7975_p12 }
  0x20   : > { %p7978_p3 = pneg %p7977_p0 }
  0x22   : > { %p7983_p7 = pnand %p7981_p5, %p7978_p3 }
  0x24   : > { %7986 = shalt.err (!%p7983_p7)
}
  0x25   : > { %s7987_s12 = scalar_lea.vmem %s8279_s27, 81920  ;;  %p7995_p2 = scmp.lt.s32.totalorder %s8279_s27, %s8279_s27 }
  0x26   : > { %p7988_p9 = scmp.ne.s32.totalorder %s8279_s27, %s7987_s12  ;;  %p7996_p12 = scmp.lt.s32.totalorder %s7987_s12, %s7987_s12 }
  0x28   : > { %p7990_p10 = pnand %p7988_p9, %p7976_p13  ;;  %p7997_p0 = por %p7996_p12, %p7995_p2 }
  0x2a   : > { %p7991_p1 = pneg %p7990_p10 }
  0x2c   : > { %p7998_p6 = pnand %p7997_p0, %p7991_p1 }
  0x2e   : > { %8001 = shalt.err (!%p7998_p6)
}
  0x2f   : > { %s8189_s13 = smov 640   ;;  %s8190_s14 = smov 40  }
  0x30   : > { %6889 = dma.hbm_to_vmem [thread:$0]  (!%p8286_p11), %s8862_s2, 81920, %s8279_s27, [#allocation6], %s8189_s13, %s8189_s13, %s8190_s14  }
  0x31   : > { %s8863_s3 = sld [smem:[#allocation20_spill]] }
  0x37   : > { %s8002_s6 = scalar_lea.hbm %s8863_s3, 5120 }
  0x38   : > { %p8003_p2 = scmp.ne.s32.totalorder %s8863_s3, %s8002_s6  ;;  %p8009_p10 = scmp.lt.u32.totalorder %s8002_s6, %s8863_s3 }
  0x3a   : > { %p8005_p1 = pnand %p8003_p2, %p7976_p13 }
  0x3c   : > { %p8006_p6 = pneg %p8005_p1 }
  0x3e   : > { %p8011_p3 = pnand %p8009_p10, %p8006_p6 }
  0x40   : > { %8014 = shalt.err (!%p8011_p3)
}
  0x41   : > { %s8015_s27 = scalar_lea.vmem %s8290_s30, 5120  ;;  %p8023_p12 = scmp.lt.s32.totalorder %s8290_s30, %s8290_s30 }
  0x42   : > { %p8016_p5 = scmp.ne.s32.totalorder %s8290_s30, %s8015_s27  ;;  %p8024_p0 = scmp.lt.s32.totalorder %s8015_s27, %s8015_s27 }
  0x44   : > { %p8018_p7 = pnand %p8016_p5, %p7976_p13  ;;  %p8025_p2 = por %p8024_p0, %p8023_p12 }
  0x46   : > { %p8019_p9 = pneg %p8018_p7 }
  0x48   : > { %p8026_p1 = pnand %p8025_p2, %p8019_p9 }
  0x4a   : > { %8029 = shalt.err (!%p8026_p1)
}
  0x4b   : > { %s8191_s11 = smov 64   ;;  %s8192_s12 = smov 4  }
  0x4c   : > { %6892 = dma.hbm_to_vmem [thread:$0]  (!%p8286_p11), %s8863_s3, 5120, %s8290_s30, [#allocation9], %s8191_s11, %s8191_s11, %s8192_s12  }
  0x4d   : > { %s36_s22 = sadd.s32 1, %s8181_s19  ;;  %s45_s26 = sadd.s32 1, %s8173_s17 }
  0x4e   : > { %p38_p13 = scmp.ge.s32.totalorder %s36_s22, 2  ;;  %p52_p6 = scmp.ne.s32.totalorder %s8173_s17, %s8169_s16 }
  0x4f   : > { %p53_p10 = scmp.eq.s32.totalorder %s8185_s20, 0  ;;  %p6906_p3 = scmp.lt.s32.totalorder %s8185_s20, 2 }
  0x50   : > { %s8887_s22 = smov (%p38_p13, %s36_s22), 0  ;;  %p8865_p7 = scmp.eq.s32.totalorder %s8256_s21, 1 }
  0x51   : > { %8864 = sst [smem:[#allocation16_spill]] %s8887_s22  ;;  %p54_p5 = por %p53_p10, %p52_p6 }
  0x52   : > { %p8354_p9 = por %p8865_p7, %p52_p6  ;;  %s40_s29 = ssub.s32 %s8181_s19, %s8887_s22 }
  0x53   : > { %s8361_s5 = sand.u32 1, %s8173_s17   ;;  %p43_p11 = scmp.eq.s32.totalorder %s40_s29, 0 }
  0x54   : > { %s8866_s28 = scalar_select %p8354_p9, 1, 0 }
  0x55   : > { %s6868_s30 = smul.u32 48, %s8361_s5  ;;  %s6662_s6 = sshll.u32 %s8181_s19, 10 }
  0x56   : > { %s8366_s7 = scalar_select %p43_p11, %s8173_s17, %s45_s26  }
  0x57   : > { %s8868_s0 = sld [smem:[#allocation18_spill]]  ;;  %s214_s27 = scalar_lea.vmem [#allocation2], %s6868_s30 }
  0x58   : > { %8867 = sst [smem:[#allocation17_spill]] %s8366_s7  ;;  %s231_s11 = sshll.u32 %s214_s27, 4  ;;  %s8381_s11 = int_to_ptr.vmem [resolvable:$true] %s231_s11 }
  0x59   : > { %p8377_p12 = pnand %p6906_p3, %p54_p5  ;;  %s211_s13 = scalar_lea.sflag [#allocation3], %s8361_s5 }
  0x5b   : > { %p8032_p2 = pneg %p8377_p12 }
  0x5d   : > { %s8373_s10 = scalar_lea.hbm %s8868_s0, %s6662_s6  ;;  %s8035_s30 = scalar_lea.hbm %s8868_s0, 2048 }
  0x5e   : > { %s8030_s14 = scalar_lea.hbm %s8373_s10, 768  ;;  %p8036_p6 = scmp.lt.u32.totalorder %s8373_s10, %s8868_s0 }
  0x5f   : > { %p8031_p0 = scmp.ne.s32.totalorder %s8373_s10, %s8030_s14  ;;  %p8037_p10 = scmp.lt.u32.totalorder %s8035_s30, %s8030_s14 }
  0x60   : > { %p8039_p5 = scmp.lt.u32.totalorder %s8030_s14, %s8373_s10 }
  0x61   : > { %p8033_p1 = pnand %p8032_p2, %p8031_p0  ;;  %p8038_p3 = por %p8037_p10, %p8036_p6 }
  0x63   : > { %p8034_p13 = pneg %p8033_p1  ;;  %p8040_p7 = por %p8039_p5, %p8038_p3 }
  0x65   : > { %p8041_p11 = pnand %p8040_p7, %p8034_p13 }
  0x67   : > { %8044 = shalt.err (!%p8041_p11)
}
  0x68   : > { %s8045_s27 = scalar_lea.vmem %s8381_s11, 768  ;;  %s8193_s26 = smov [#allocation2]  }
  0x69   : > { %p8046_p0 = scmp.ne.s32.totalorder %s8381_s11, %s8045_s27  ;;  %s8050_s29 = sshll.u32 %s8193_s26, 4  ;;  %s8051_s29 = int_to_ptr.vmem [resolvable:$false] %s8050_s29 }
  0x6a   : > { %s8052_s8 = scalar_lea.vmem %s8051_s29, 1536  ;;  %p8053_p4 = scmp.lt.s32.totalorder %s8381_s11, %s8051_s29 }
  0x6b   : > { %p8048_p1 = pnand %p8046_p0, %p8032_p2  ;;  %p8054_p6 = scmp.lt.s32.totalorder %s8052_s8, %s8045_s27 }
  0x6d   : > { %p8049_p9 = pneg %p8048_p1  ;;  %p8055_p10 = por %p8054_p6, %p8053_p4 }
  0x6f   : > { %p8056_p3 = pnand %p8055_p10, %p8049_p9 }
  0x71   : > { %8059 = shalt.err (!%p8056_p3)
}
  0x72   : > { %s8194_s14 = smov 256   ;;  %s8195_s30 = smov 16  }
  0x73   : > { %6896 = dma.hbm_to_vmem [thread:$0]  (!%p8377_p12), %s8373_s10, 768, %s8381_s11, %s211_s13, %s8194_s14, %s8194_s14, %s8195_s30  }
  0x74   : > { %s241_s9 = sand.u32 1, %s8185_s20   ;;  %s5972_s26 = sshll.u32 %s8361_s5, 4 }
  0x75   : > { %s5877_s8 = scalar_lea.hbm %s8846_s1, %s6662_s6  ;;  %s245_s0 = scalar_lea.vmem [#allocation5], %s5972_s26 }
  0x76   : > { %s257_s2 = sshll.u32 %s245_s0, 4  ;;  %s8418_s3 = scalar_lea.hbm %s5877_s8, 768  ;;  %s258_s2 = int_to_ptr.vmem [resolvable:$true] %s257_s2 }
  0x77   : > { %s242_s22 = scalar_lea.sflag [#allocation6], %s241_s9  ;;  %s8090_s7 = scalar_lea.hbm %s5877_s8, 1024 }
  0x78   : > { %p8061_p4 = scmp.ne.s32.totalorder %s8418_s3, %s8090_s7  ;;  %s8065_s11 = scalar_lea.hbm %s8846_s1, 2048 }
  0x79   : > { %p8066_p5 = scmp.lt.u32.totalorder %s8418_s3, %s8846_s1  ;;  %p8067_p7 = scmp.lt.u32.totalorder %s8065_s11, %s8090_s7 }
  0x7a   : > { %p8063_p9 = pnand %p8061_p4, %p8032_p2  ;;  %p8069_p0 = scmp.lt.u32.totalorder %s8090_s7, %s8418_s3 }
  0x7b   : > { %p8068_p11 = por %p8067_p7, %p8066_p5 }
  0x7c   : > { %p8064_p13 = pneg %p8063_p9 }
  0x7d   : > { %p8070_p1 = por %p8069_p0, %p8068_p11 }
  0x7f   : > { %p8071_p6 = pnand %p8070_p1, %p8064_p13 }
  0x81   : > { %8074 = shalt.err (!%p8071_p6)
}
  0x82   : > { %s8075_s0 = scalar_lea.vmem %s258_s2, 256  ;;  %s8196_s14 = smov [#allocation5]  }
  0x83   : > { %p8076_p10 = scmp.ne.s32.totalorder %s258_s2, %s8075_s0  ;;  %s8080_s30 = sshll.u32 %s8196_s14, 4  ;;  %s8081_s30 = int_to_ptr.vmem [resolvable:$false] %s8080_s30 }
  0x84   : > { %s8082_s9 = scalar_lea.vmem %s8081_s30, 512  ;;  %p8083_p9 = scmp.lt.s32.totalorder %s258_s2, %s8081_s30 }
  0x85   : > { %p8078_p3 = pnand %p8076_p10, %p8032_p2  ;;  %p8084_p8 = scmp.lt.s32.totalorder %s8082_s9, %s8075_s0 }
  0x87   : > { %p8079_p4 = pneg %p8078_p3  ;;  %p8085_p5 = por %p8084_p8, %p8083_p9 }
  0x89   : > { %p8086_p7 = pnand %p8085_p5, %p8079_p4 }
  0x8b   : > { %8089 = shalt.err (!%p8086_p7)
}
  0x8c   : > { %6899 = dma.hbm_to_vmem [thread:$0]  (!%p8377_p12), %s8418_s3, 256, %s258_s2, %s242_s22  }
  0x8d   : > { %p8870_p13 = scmp.ne.s32.totalorder %s8860_s25, 0 }
  0x8e   : > { %s8441_s7 = sand.u32 (!%p8870_p13), 1, %s8169_s16   ;;  %p8871_p8 = scmp.ne.s32.totalorder (!%p8870_p13), %s8858_s23, 0 }
  0x8f   : > { %266 = sbr.rel (%p8870_p13) target bundleno = 1367 (0x557), region = 36  ;;  %s269_s27 = scalar_lea.sflag (!%p8870_p13), [#allocation3], %s8441_s7 }
  0x90   : > { %s6869_s26 = smul.u32 (!%p8870_p13), 48, %s8441_s7 }
  0x92   : > { %s8445_s29 = scalar_lea.vmem (!%p8870_p13), [#allocation2], %s6869_s26 }
  0x96   : > { %8144 = dma.done.wait (%p8871_p8), %s269_s27, 768  }
  0x97   : > { %8146 = vsyncadd (%p8871_p8), %s269_s27, 4294966528  ;;  %s277_s2 = sand.u32 1, %s8256_s21   ;;  %s5976_s3 = sshll.u32 %s8441_s7, 4 }
  0x98   : > { %s278_s25 = scalar_lea.sflag [#allocation6], %s277_s2  ;;  %s8453_s22 = scalar_lea.vmem [#allocation5], %s5976_s3 }
  0x99   : > { %8148 = dma.done.wait (%p8871_p8), %s278_s25, 256  }
  0x9a   : > { %8150 = vsyncadd (%p8871_p8), %s278_s25, 4294967040  ;;  %p8872_p12 = scmp.eq.s32.totalorder %s8256_s21, 0 }
  0x9c   : > { %8152 = dma.done.wait (%p8872_p12), [#allocation6], 81920   ;;  %p8873_p2 = pmov %p8872_p12 }
  0x9e   : > { %8154 = vsyncadd (%p8873_p2), [#allocation6], 4294885376  ;;  %p8874_p11 = pmov %p8873_p2 }
  0x9f   : > { %p8875_p0 = pmov %p8873_p2 }
  0xa0   : > { %8156 = dma.done.wait (%p8874_p11), [#allocation9], 5120  }
  0xa1   : > { %8158 = vsyncadd (%p8875_p0), [#allocation9], 4294962176  ;;  %v6968_v0 = vld [vmem:[#allocation7 + $0x4] ss:$40 sps:$4 sm:$0xff]   ;;  %v6972_v2 = vld [vmem:[#allocation7] ss:$40 sps:$4 sm:$0xff]  }
  0xa2   : > { %v6970_v1 = vld [vmem:[#allocation7 + $0x504] ss:$40 sps:$4 sm:$0xff]   ;;  %4264 = vmatprep.subr.bf16.mxu1 %v6968_v0  ;;  %v6973_v3 = vld [vmem:[#allocation7 + $0x500] ss:$40 sps:$4 sm:$0xff]   ;;  %v6974_v4 = vld [vmem:[#allocation7 + $0x54] ss:$40 sps:$4 sm:$0xff]  }
  0xa3   : > { %4315 = vmatprep.subr.bf16.mxu0 %v6970_v1  ;;  %4265 = vmatpush1.bf16.msra.mxu1 %v6972_v2  ;;  %v6976_v5 = vld [vmem:[#allocation7 + $0x554] ss:$40 sps:$4 sm:$0xff]   ;;  %v6978_v6 = vld [vmem:[#allocation7 + $0x50] ss:$40 sps:$4 sm:$0xff]   ;;  %v6980_v8 = vld [vmem:[#allocation7 + $0xa4] ss:$40 sps:$4 sm:$0xff]  }
  0xa4   : > { %4316 = vmatpush1.bf16.msra.mxu0 %v6973_v3  ;;  %4266 = vmatprep.subr.bf16.mxu1 %v6974_v4  ;;  %v6979_v7 = vld [vmem:[#allocation7 + $0x550] ss:$40 sps:$4 sm:$0xff]   ;;  %v6982_v9 = vld [vmem:[#allocation7 + $0x5a4] ss:$40 sps:$4 sm:$0xff]   ;;  %v6984_v10 = vld [vmem:[#allocation7 + $0xa0] ss:$40 sps:$4 sm:$0xff]  }
  0xa5   : > { %4317 = vmatprep.subr.bf16.mxu0 %v6976_v5  ;;  %v6985_v11 = vld [vmem:[#allocation7 + $0x5a0] ss:$40 sps:$4 sm:$0xff]   ;;  %v6986_v12 = vld [vmem:[#allocation7 + $0xf4] ss:$40 sps:$4 sm:$0xff]   ;;  %v6990_v14 = vld [vmem:[#allocation7 + $0xf0] ss:$40 sps:$4 sm:$0xff]  }
  0xa6   : > { %v6988_v13 = vld [vmem:[#allocation7 + $0x5f4] ss:$40 sps:$4 sm:$0xff]   ;;  %v6991_v15 = vld [vmem:[#allocation7 + $0x5f0] ss:$40 sps:$4 sm:$0xff]   ;;  %v6992_v16 = vld [vmem:[#allocation7 + $0x144] ss:$40 sps:$4 sm:$0xff]  }
  0xa7   : > { %4267 = vmatpush1.bf16.msra.mxu1 %v6978_v6  ;;  %v6994_v17 = vld [vmem:[#allocation7 + $0x644] ss:$40 sps:$4 sm:$0xff]   ;;  %v6996_v18 = vld [vmem:[#allocation7 + $0x140] ss:$40 sps:$4 sm:$0xff]   ;;  %v6998_v20 = vld [vmem:[#allocation7 + $0x194] ss:$40 sps:$4 sm:$0xff]  }
  0xa8   : > { %4318 = vmatpush1.bf16.msra.mxu0 %v6979_v7  ;;  %4268 = vmatprep.subr.bf16.mxu1 %v6980_v8  ;;  %v6997_v19 = vld [vmem:[#allocation7 + $0x640] ss:$40 sps:$4 sm:$0xff]   ;;  %v7000_v21 = vld [vmem:[#allocation7 + $0x694] ss:$40 sps:$4 sm:$0xff]   ;;  %v7002_v22 = vld [vmem:[#allocation7 + $0x190] ss:$40 sps:$4 sm:$0xff]  }
  0xa9   : > { %4319 = vmatprep.subr.bf16.mxu0 %v6982_v9  ;;  %v7003_v23 = vld [vmem:[#allocation7 + $0x690] ss:$40 sps:$4 sm:$0xff]   ;;  %v7004_v24 = vld [vmem:[#allocation7 + $0x1e4] ss:$40 sps:$4 sm:$0xff]   ;;  %v7008_v26 = vld [vmem:[#allocation7 + $0x1e0] ss:$40 sps:$4 sm:$0xff]  }
  0xaa   : > { %v7006_v25 = vld [vmem:[#allocation7 + $0x6e4] ss:$40 sps:$4 sm:$0xff]   ;;  %v7009_v27 = vld [vmem:[#allocation7 + $0x6e0] ss:$40 sps:$4 sm:$0xff]   ;;  %v7010_v28 = vld [vmem:[#allocation7 + $0x234] ss:$40 sps:$4 sm:$0xff]  }
  0xab   : > { %4269 = vmatpush1.bf16.msra.mxu1 %v6984_v10  ;;  %v7012_v29 = vld [vmem:[#allocation7 + $0x734] ss:$40 sps:$4 sm:$0xff]   ;;  %v7014_v30 = vld [vmem:[#allocation7 + $0x230] ss:$40 sps:$4 sm:$0xff]   ;;  %v7016_v32 = vld [vmem:[#allocation7 + $0x284] ss:$40 sps:$4 sm:$0xff]  }
  0xac   : > { %4320 = vmatpush1.bf16.msra.mxu0 %v6985_v11  ;;  %4270 = vmatprep.subr.bf16.mxu1 %v6986_v12  ;;  %v7015_v31 = vld [vmem:[#allocation7 + $0x730] ss:$40 sps:$4 sm:$0xff]   ;;  %v7018_v33 = vld [vmem:[#allocation7 + $0x784] ss:$40 sps:$4 sm:$0xff]   ;;  %v7020_v34 = vld [vmem:[#allocation7 + $0x280] ss:$40 sps:$4 sm:$0xff]  }
  0xad   : > { %4321 = vmatprep.subr.bf16.mxu0 %v6988_v13  ;;  %v7021_v35 = vld [vmem:[#allocation7 + $0x780] ss:$40 sps:$4 sm:$0xff]   ;;  %v7022_v36 = vld [vmem:[#allocation7 + $0x2d4] ss:$40 sps:$4 sm:$0xff]   ;;  %v7026_v38 = vld [vmem:[#allocation7 + $0x2d0] ss:$40 sps:$4 sm:$0xff]  }
  0xae   : > { %v7024_v37 = vld [vmem:[#allocation7 + $0x7d4] ss:$40 sps:$4 sm:$0xff]   ;;  %v7027_v39 = vld [vmem:[#allocation7 + $0x7d0] ss:$40 sps:$4 sm:$0xff]   ;;  %v7028_v40 = vld [vmem:[#allocation7 + $0x324] ss:$40 sps:$4 sm:$0xff]  }
  0xaf   : > { %4271 = vmatpush1.bf16.msra.mxu1 %v6990_v14  ;;  %v7030_v41 = vld [vmem:[#allocation7 + $0x824] ss:$40 sps:$4 sm:$0xff]   ;;  %v7032_v42 = vld [vmem:[#allocation7 + $0x320] ss:$40 sps:$4 sm:$0xff]   ;;  %v7034_v44 = vld [vmem:[#allocation7 + $0x374] ss:$40 sps:$4 sm:$0xff]  }
  0xb0   : > { %4322 = vmatpush1.bf16.msra.mxu0 %v6991_v15  ;;  %4272 = vmatprep.subr.bf16.mxu1 %v6992_v16  ;;  %v7033_v43 = vld [vmem:[#allocation7 + $0x820] ss:$40 sps:$4 sm:$0xff]   ;;  %v7036_v45 = vld [vmem:[#allocation7 + $0x874] ss:$40 sps:$4 sm:$0xff]   ;;  %v7038_v46 = vld [vmem:[#allocation7 + $0x370] ss:$40 sps:$4 sm:$0xff]  }
  0xb1   : > { %4323 = vmatprep.subr.bf16.mxu0 %v6994_v17  ;;  %v8468_v47 = vld [vmem:[%s8445_s29 + $0x8] sm:$0xff]  ;;  %v8471_v48 = vld [vmem:[%s8445_s29 + $0x18] sm:$0xff]  ;;  %vm345_vm0 = vcmask 1046528   ;;  %v8491_v0 = vld [vmem:[%s8445_s29] sm:$0xff]  ;;  %vm366_vm1 = vcmask 1045504   ;;  %vm387_vm2 = vcmask 1044480  }
  0xb2   : > { %v8474_v49 = vld [vmem:[%s8445_s29 + $0x28] sm:$0xff]  ;;  %v349_v50 = vrot.slane %v8468_v47, 1  ;;  %v8479_v52 = vpack.c.bf16 %v8471_v48, %v8468_v47  ;;  %v350_v53 = vrot.slane %v8471_v48, 1  ;;  %v8494_v1 = vld [vmem:[%s8445_s29 + $0x10] sm:$0xff]  ;;  %v8497_v2 = vld [vmem:[%s8445_s29 + $0x20] sm:$0xff]  ;;  %v367_v3 = vrot.slane %v8491_v0, 2 }
  0xb3   : > { %4273 = vmatpush1.bf16.msra.mxu1 %v6996_v18  ;;  %v7039_v51 = vld [vmem:[#allocation7 + $0x870] ss:$40 sps:$4 sm:$0xff]   ;;  %v354_v54 = vrot.slane %v8474_v49, 1  ;;  %v7040_v55 = vld [vmem:[#allocation7 + $0x3c4] ss:$40 sps:$4 sm:$0xff]   ;;  %v368_v4 = vrot.slane %v8494_v1, 2 }
  0xb4   : > { %4324 = vmatpush1.bf16.msra.mxu0 %v6997_v19  ;;  %4274 = vmatprep.subr.bf16.mxu1 %v6998_v20  ;;  %v7042_v56 = vld [vmem:[#allocation7 + $0x8c4] ss:$40 sps:$4 sm:$0xff]   ;;  %v7044_v57 = vld [vmem:[#allocation7 + $0x3c0] ss:$40 sps:$4 sm:$0xff]   ;;  %v351_v59 = vsel %vm345_vm0, %v349_v50, %v350_v53  ;;  %v7046_v61 = vld [vmem:[#allocation7 + $0x414] ss:$40 sps:$4 sm:$0xff]  }
  0xb5   : > { %4325 = vmatprep.subr.bf16.mxu0 %v7000_v21  ;;  %v7045_v58 = vld [vmem:[#allocation7 + $0x8c0] ss:$40 sps:$4 sm:$0xff]   ;;  %4296 = vmatprep.mubr.bf16.mxu1 %v8479_v52  ;;  %v355_v60 = vsel %vm345_vm0, %v350_v53, %v354_v54  ;;  %v7048_v63 = vld [vmem:[#allocation7 + $0x914] ss:$40 sps:$4 sm:$0xff]   ;;  %v373_v5 = vrot.slane %v8497_v2, 2  ;;  %v369_v8 = vsel %vm366_vm1, %v367_v3, %v368_v4  ;;  %v346_v15 = vrot.slane %v8491_v0, 1 }
  0xb6   : > { %v8488_v62 = vpack.c.bf16 %v355_v60, %v351_v59  ;;  %v7050_v6 = vld [vmem:[#allocation7 + $0x410] ss:$40 sps:$4 sm:$0xff]   ;;  %v7052_v10 = vld [vmem:[#allocation7 + $0x464] ss:$40 sps:$4 sm:$0xff]   ;;  %v7056_v13 = vld [vmem:[#allocation7 + $0x460] ss:$40 sps:$4 sm:$0xff]   ;;  %v8549_v53 = vpack.c.bf16 %v8497_v2, %v8497_v2 }
  0xb7   : > { %4275 = vmatpush1.bf16.msra.mxu1 %v7002_v22  ;;  %v7051_v7 = vld [vmem:[#allocation7 + $0x910] ss:$40 sps:$4 sm:$0xff]   ;;  %v374_v9 = vsel %vm366_vm1, %v368_v4, %v373_v5  ;;  %v7054_v11 = vld [vmem:[#allocation7 + $0x964] ss:$40 sps:$4 sm:$0xff]   ;;  %v7057_v14 = vld [vmem:[#allocation7 + $0x960] ss:$40 sps:$4 sm:$0xff]  }
  0xb8   : > { %4326 = vmatpush1.bf16.msra.mxu0 %v7003_v23  ;;  %4276 = vmatprep.subr.bf16.mxu1 %v7004_v24  ;;  %v8507_v12 = vpack.c.bf16 %v374_v9, %v369_v8  ;;  %v347_v16 = vrot.slane %v8494_v1, 1  ;;  %v352_v17 = vrot.slane %v8497_v2, 1  ;;  %v7058_v18 = vld [vmem:[#allocation7 + $0x4b4] ss:$40 sps:$4 sm:$0xff]   ;;  %v7062_v20 = vld [vmem:[#allocation7 + $0x4b0] ss:$40 sps:$4 sm:$0xff]  }
  0xb9   : > { %4327 = vmatprep.subr.bf16.mxu0 %v7006_v25  ;;  %4347 = vmatprep.mubr.bf16.mxu0 %v8488_v62  ;;  %v7060_v19 = vld [vmem:[#allocation7 + $0x9b4] ss:$40 sps:$4 sm:$0xff]   ;;  %v7063_v21 = vld [vmem:[#allocation7 + $0x9b0] ss:$40 sps:$4 sm:$0xff]   ;;  %v7066_v24 = vld [vmem:[#allocation7 + $0xa04] ss:$40 sps:$4 sm:$0xff]  }
  0xba   : > { %v348_v22 = vsel %vm345_vm0, %v346_v15, %v347_v16  ;;  %v353_v23 = vsel %vm345_vm0, %v347_v16, %v352_v17  ;;  %v7069_v25 = vld [vmem:[#allocation7 + $0xc] ss:$40 sps:$4 sm:$0xff]   ;;  %v7082_v59 = vld [vmem:[#allocation7 + $0xaf0] ss:$40 sps:$4 sm:$0xff]   ;;  %v7099_v4 = vld [vmem:[#allocation7 + $0x19c] ss:$40 sps:$4 sm:$0xff]  }
  0xbb   : > { %4277 = vmatpush1.bf16.msra.mxu1 %v7008_v26  ;;  %v391_v26 = vrot.slane %v8468_v47, 3  ;;  %v7078_v50 = vld [vmem:[#allocation7 + $0xaa4] ss:$40 sps:$4 sm:$0xff]   ;;  %v7085_v60 = vld [vmem:[#allocation7 + $0xf8] ss:$40 sps:$4 sm:$0xff]   ;;  %v371_v8 = vrot.slane %v8471_v48, 2 }
  0xbc   : > { %4328 = vmatpush1.bf16.msra.mxu0 %v7009_v27  ;;  %4278 = vmatprep.subr.bf16.mxu1 %v7010_v28  ;;  %v392_v27 = vrot.slane %v8471_v48, 3  ;;  %v8520_v28 = vpack.c.bf16 %v8494_v1, %v8491_v0  ;;  %v7096_v3 = vld [vmem:[#allocation7 + $0xb94] ss:$40 sps:$4 sm:$0xff]   ;;  %v375_v9 = vrot.slane %v8474_v49, 2  ;;  %s6870_s21 = smul.u32 24, %s8441_s7  ;;  %p8876_p6 = scmp.ne.s32.totalorder %s8866_s28, 0 }
  0xbd   : > { %4329 = vmatprep.subr.bf16.mxu0 %v7012_v29  ;;  %v8522_v29 = vpack.c.bf16 %v353_v23, %v348_v22  ;;  %v7105_v15 = vld [vmem:[#allocation7 + $0x1ec] ss:$40 sps:$4 sm:$0xff]   ;;  %s6871_s8 = smul.u32 384, %s8177_s18  ;;  %s5816_s18 = scalar_lea.sflag [#allocation4], %s8441_s7 }
  0xbe   : > { %v376_v23 = vsel %vm366_vm1, %v371_v8, %v375_v9  ;;  %s318_s23 = scalar_lea.vmem [#allocation10], %s6870_s21  ;;  %s8197_s13 = smov [#allocation10]  }
  0xbf   : > { %4279 = vmatpush1.bf16.msra.mxu1 %v7014_v30  ;;  %v396_v30 = vrot.slane %v8474_v49, 3  ;;  %s5831_s12 = sshll.u32 %s318_s23, 4  ;;  %s8796_s11 = scalar_lea.hbm %s8849_s4, %s6871_s8  ;;  %s8791_s12 = int_to_ptr.vmem [resolvable:$true] %s5831_s12 }
  0xc0   : > { %4330 = vmatpush1.bf16.msra.mxu0 %v7015_v31  ;;  %4280 = vmatprep.subr.bf16.mxu1 %v7016_v32  ;;  %v388_v31 = vrot.slane %v8491_v0, 3  ;;  %v7064_v32 = vld [vmem:[#allocation7 + $0xa00] ss:$40 sps:$4 sm:$0xff]   ;;  %s8091_s6 = scalar_lea.vmem %s8791_s12, 384  ;;  %s8095_s0 = sshll.u32 %s8197_s13, 4  ;;  %s8096_s0 = int_to_ptr.vmem [resolvable:$false] %s8095_s0 }
  0xc1   : > { %4331 = vmatprep.subr.bf16.mxu0 %v7018_v33  ;;  %v7067_v33 = vld [vmem:[#allocation7 + $0x8] ss:$40 sps:$4 sm:$0xff]   ;;  %p8092_p1 = scmp.ne.s32.totalorder %s8791_s12, %s8091_s6  ;;  %s8097_s14 = scalar_lea.vmem %s8096_s0, 768 }
  0xc2   : > { %v7088_v0 = vld [vmem:[#allocation7 + $0xb40] ss:$40 sps:$4 sm:$0xff]   ;;  %p8098_p4 = scmp.lt.s32.totalorder %s8791_s12, %s8096_s0  ;;  %p8099_p9 = scmp.lt.s32.totalorder %s8097_s14, %s8091_s6 }
  0xc3   : > { %4281 = vmatpush1.bf16.msra.mxu1 %v7020_v34  ;;  %v393_v34 = vsel %vm387_vm2, %v391_v26, %v392_v27  ;;  %p8093_p10 = pnand %p8092_p1, %p8876_p6 }
  0xc4   : > { %4332 = vmatpush1.bf16.msra.mxu0 %v7021_v35  ;;  %4282 = vmatprep.subr.bf16.mxu1 %v7022_v36  ;;  %v389_v35 = vrot.slane %v8494_v1, 3  ;;  %v7072_v36 = vld [vmem:[#allocation7 + $0xa54] ss:$40 sps:$4 sm:$0xff]   ;;  %v7091_v1 = vld [vmem:[#allocation7 + $0x148] ss:$40 sps:$4 sm:$0xff]   ;;  %p8100_p5 = por %p8099_p9, %p8098_p4 }
  0xc5   : > { %4333 = vmatprep.subr.bf16.mxu0 %v7024_v37  ;;  %v7075_v37 = vld [vmem:[#allocation7 + $0x5c] ss:$40 sps:$4 sm:$0xff]   ;;  %p8094_p3 = pneg %p8093_p10 }
  0xc7   : > { %4283 = vmatpush1.bf16.msra.mxu1 %v7026_v38  ;;  %v397_v38 = vsel %vm387_vm2, %v392_v27, %v396_v30  ;;  %v7111_v27 = vld [vmem:[#allocation7 + $0x23c] ss:$40 sps:$4 sm:$0xff]   ;;  %p8101_p7 = pnand %p8100_p5, %p8094_p3 }
  0xc8   : > { %4334 = vmatpush1.bf16.msra.mxu0 %v7027_v39  ;;  %4284 = vmatprep.subr.bf16.mxu1 %v7028_v40  ;;  %v394_v39 = vrot.slane %v8497_v2, 3  ;;  %v8534_v40 = vpack.c.bf16 %v8474_v49, %v8474_v49  ;;  %v7174_v49 = vld [vmem:[#allocation7 + $0xfa4] ss:$40 sps:$4 sm:$0xff]   ;;  %v7178_v2 = vld [vmem:[#allocation7 + $0xff0] ss:$40 sps:$4 sm:$0xff]  }
  0xc9   : > { %4335 = vmatprep.subr.bf16.mxu0 %v7030_v41  ;;  %v8536_v41 = vpack.c.bf16 %v397_v38, %v393_v34  ;;  %v7109_v34 = vld [vmem:[#allocation7 + $0x238] ss:$40 sps:$4 sm:$0xff]   ;;  %v7120_v38 = vld [vmem:[#allocation7 + $0xcd4] ss:$40 sps:$4 sm:$0xff]  }
  0xcb   : > { %4285 = vmatpush1.bf16.msra.mxu1 %v7032_v42  ;;  %v390_v42 = vsel %vm387_vm2, %v388_v31, %v389_v35 }
  0xcc   : > { %4336 = vmatpush1.bf16.msra.mxu0 %v7033_v43  ;;  %4286 = vmatprep.subr.bf16.mxu1 %v7034_v44  ;;  %v395_v43 = vsel %vm387_vm2, %v389_v35, %v394_v39  ;;  %v7070_v44 = vld [vmem:[#allocation7 + $0xa50] ss:$40 sps:$4 sm:$0xff]   ;;  %v7117_v35 = vld [vmem:[#allocation7 + $0x28c] ss:$40 sps:$4 sm:$0xff]  }
  0xcd   : > { %4337 = vmatprep.subr.bf16.mxu0 %v7036_v45  ;;  %v7073_v45 = vld [vmem:[#allocation7 + $0x58] ss:$40 sps:$4 sm:$0xff]  }
  0xcf   : > { %4287 = vmatpush1.bf16.msra.mxu1 %v7038_v46  ;;  %v8544_v46 = vpack.c.bf16 %v395_v43, %v390_v42  ;;  %v7118_v42 = vld [vmem:[#allocation7 + $0xcd0] ss:$40 sps:$4 sm:$0xff]  }
  0xd0   : > { %4338 = vmatpush1.bf16.msra.mxu0 %v7039_v51  ;;  %4288 = vmatprep.subr.bf16.mxu1 %v7040_v55  ;;  %v7081_v51 = vld [vmem:[#allocation7 + $0xac] ss:$40 sps:$4 sm:$0xff]   ;;  %v7076_v55 = vld [vmem:[#allocation7 + $0xaa0] ss:$40 sps:$4 sm:$0xff]  }
  0xd1   : > { %4339 = vmatprep.subr.bf16.mxu0 %v7042_v56  ;;  %v7079_v56 = vld [vmem:[#allocation7 + $0xa8] ss:$40 sps:$4 sm:$0xff]   ;;  %v7121_v43 = vld [vmem:[#allocation7 + $0x2d8] ss:$40 sps:$4 sm:$0xff]  }
  0xd3   : > { %4289 = vmatpush1.bf16.msra.mxu1 %v7044_v57  ;;  %v7084_v57 = vld [vmem:[#allocation7 + $0xaf4] ss:$40 sps:$4 sm:$0xff]  }
  0xd4   : > { %4340 = vmatpush1.bf16.msra.mxu0 %v7045_v58  ;;  %4290 = vmatprep.subr.bf16.mxu1 %v7046_v61  ;;  %v7087_v58 = vld [vmem:[#allocation7 + $0xfc] ss:$40 sps:$4 sm:$0xff]  }
  0xd5   : > { %4341 = vmatprep.subr.bf16.mxu0 %v7048_v63  ;;  %v7090_v61 = vld [vmem:[#allocation7 + $0xb44] ss:$40 sps:$4 sm:$0xff]  }
  0xd6   : > { %v7093_v63 = vld [vmem:[#allocation7 + $0x14c] ss:$40 sps:$4 sm:$0xff]  }
  0xd7   : > { %4291 = vmatpush1.bf16.msra.mxu1 %v7050_v6  ;;  %v8554_v6 = vld [vmem:[%s8453_s22 + $0x8] sm:$0xff] }
  0xd8   : > { %4342 = vmatpush1.bf16.msra.mxu0 %v7051_v7  ;;  %4292 = vmatprep.subr.bf16.mxu1 %v7052_v10  ;;  %v370_v7 = vrot.slane %v8468_v47, 2  ;;  %v7094_v10 = vld [vmem:[#allocation7 + $0xb90] ss:$40 sps:$4 sm:$0xff]   ;;  %v400_v47 = vrot.slane %v8554_v6, 3 }
  0xd9   : > { %4343 = vmatprep.subr.bf16.mxu0 %v7054_v11  ;;  %v7097_v11 = vld [vmem:[#allocation7 + $0x198] ss:$40 sps:$4 sm:$0xff]  }
  0xda   : > { %v372_v22 = vsel %vm366_vm1, %v370_v7, %v371_v8  ;;  %v7150_v7 = vld [vmem:[#allocation7 + $0xe64] ss:$40 sps:$4 sm:$0xff]  }
  0xdb   : > { %4293 = vmatpush1.bf16.msra.mxu1 %v7056_v13  ;;  %v358_v13 = vrot.slane %v8554_v6, 1  ;;  %v7153_v8 = vld [vmem:[#allocation7 + $0x46c] ss:$40 sps:$4 sm:$0xff]  }
  0xdc   : > { %4344 = vmatpush1.bf16.msra.mxu0 %v7057_v14  ;;  %4294 = vmatprep.subr.bf16.mxu1 %v7058_v18  ;;  %v7102_v14 = vld [vmem:[#allocation7 + $0xbe4] ss:$40 sps:$4 sm:$0xff]  }
  0xdd   : > { %4345 = vmatprep.subr.bf16.mxu0 %v7060_v19  ;;  %v359_v16 = vsel %vm345_vm0, %v354_v54, %v358_v13  ;;  %v8564_v18 = vld [vmem:[%s8453_s22] sm:$0xff]  ;;  %v8577_v54 = vsel %vm387_vm2, %v396_v30, %v400_v47  ;;  %v379_v47 = vrot.slane %v8554_v6, 2 }
  0xde   : > { %v8567_v48 = vpack.c.bf16 %v359_v16, %v359_v16  ;;  %v356_v19 = vrot.slane %v8564_v18, 1  ;;  %v398_v26 = vrot.slane %v8564_v18, 3  ;;  %v7156_v13 = vld [vmem:[#allocation7 + $0xeb4] ss:$40 sps:$4 sm:$0xff]   ;;  %v7157_v16 = vld [vmem:[#allocation7 + $0x4b8] ss:$40 sps:$4 sm:$0xff]  }
  0xdf   : > { %4295 = vmatpush1.bf16.msra.mxu1 %v7062_v20  ;;  %v7100_v20 = vld [vmem:[#allocation7 + $0xbe0] ss:$40 sps:$4 sm:$0xff]   ;;  %v7171_v6 = vld [vmem:[#allocation7 + $0x55c] ss:$40 sps:$4 sm:$0xff]  }
  0xe0   : > { %4346 = vmatpush1.bf16.msra.mxu0 %v7063_v21  ;;  %4468 = vmatprep.subr.bf16.mxu1 %v7069_v25  ;;  %v7103_v21 = vld [vmem:[#allocation7 + $0x1e8] ss:$40 sps:$4 sm:$0xff]   ;;  %v357_v25 = vsel %vm345_vm0, %v352_v17, %v356_v19  ;;  %v8591_v30 = vsel %vm387_vm2, %v394_v39, %v398_v26  ;;  %v7114_v17 = vld [vmem:[#allocation7 + $0xc84] ss:$40 sps:$4 sm:$0xff]  }
  0xe1   : > { %4366 = vmatprep.subr.bf16.mxu0 %v7066_v24  ;;  %v7108_v24 = vld [vmem:[#allocation7 + $0xc34] ss:$40 sps:$4 sm:$0xff]   ;;  %v8583_v31 = vpack.c.bf16 %v357_v25, %v357_v25  ;;  %v7162_v19 = vld [vmem:[#allocation7 + $0xf04] ss:$40 sps:$4 sm:$0xff]   ;;  %v377_v25 = vrot.slane %v8564_v18, 2 }
  0xe2   : > { %4297 = vmatmul.mubr.bf16.vlgmr.msra.gmra.mrb[0].mxu1 %v8520_v28  ;;  %v7123_v39 = vld [vmem:[#allocation7 + $0x2dc] ss:$40 sps:$4 sm:$0xff]   ;;  %v7177_v18 = vld [vmem:[#allocation7 + $0x5ac] ss:$40 sps:$4 sm:$0xff]  }
  0xe3   : > { %4348 = vmatmul.mubr.bf16.vlgmr.msra.gmra.mrb[0].mxu0 %v8522_v29  ;;  %4469 = vmatpush1.bf16.msra.mxu1 %v7067_v33  ;;  %v7106_v33 = vld [vmem:[#allocation7 + $0xc30] ss:$40 sps:$4 sm:$0xff]  }
  0xe4   : > { %4367 = vmatpush1.bf16.msra.mxu0 %v7064_v32  ;;  %4470 = vmatprep.subr.bf16.mxu1 %v7075_v37  ;;  %v8586_v32 = vpack.c.bf16 %v376_v23, %v372_v22  ;;  %v7115_v37 = vld [vmem:[#allocation7 + $0x288] ss:$40 sps:$4 sm:$0xff]   ;;  %v380_v23 = vsel %vm366_vm1, %v375_v9, %v379_v47  ;;  %v378_v9 = vsel %vm366_vm1, %v373_v5, %v377_v25  ;;  %v7186_v5 = vld [vmem:[#allocation7 + $0x1044] ss:$40 sps:$4 sm:$0xff]   ;;  %v7228_v47 = vld [vmem:[#allocation7 + $0x1274] ss:$40 sps:$4 sm:$0xff]  }
  0xe5   : > { %4368 = vmatprep.subr.bf16.mxu0 %v7072_v36  ;;  %4306 = vmatprep.mubr.bf16.mxu1 %v8534_v40  ;;  %v7112_v36 = vld [vmem:[#allocation7 + $0xc80] ss:$40 sps:$4 sm:$0xff]   ;;  %v8600_v26 = vpack.c.bf16 %v380_v23, %v380_v23  ;;  %v7237_v23 = vld [vmem:[#allocation7 + $0x8cc] ss:$40 sps:$4 sm:$0xff]  }
  0xe6   : > { %4357 = vmatprep.mubr.bf16.mxu0 %v8567_v48  ;;  %v7163_v22 = vld [vmem:[#allocation7 + $0x508] ss:$40 sps:$4 sm:$0xff]  }
  0xe7   : > { %4471 = vmatpush1.bf16.msra.mxu1 %v7073_v45  ;;  %v7129_v45 = vld [vmem:[#allocation7 + $0x32c] ss:$40 sps:$4 sm:$0xff]   ;;  %v7235_v25 = vld [vmem:[#allocation7 + $0x8c8] ss:$40 sps:$4 sm:$0xff]  }
  0xe8   : > { %4369 = vmatpush1.bf16.msra.mxu0 %v7070_v44  ;;  %4472 = vmatprep.subr.bf16.mxu1 %v7081_v51  ;;  %v7126_v44 = vld [vmem:[#allocation7 + $0xd24] ss:$40 sps:$4 sm:$0xff]   ;;  %v7127_v51 = vld [vmem:[#allocation7 + $0x328] ss:$40 sps:$4 sm:$0xff]  }
  0xe9   : > { %4370 = vmatprep.subr.bf16.mxu0 %v7078_v50  ;;  %v7124_v50 = vld [vmem:[#allocation7 + $0xd20] ss:$40 sps:$4 sm:$0xff]  }
  0xea   : > { %4307 = vmatmul.mubr.bf16.gmra.mrb[4].mxu1 %v8549_v53 }
  0xeb   : > { %4473 = vmatpush1.bf16.msra.mxu1 %v7079_v56  ;;  %4500 = vmatprep.mubr.bf16.mxu1 %v8479_v52  ;;  %v7135_v56 = vld [vmem:[#allocation7 + $0x37c] ss:$40 sps:$4 sm:$0xff]  }
  0xec   : > { %4371 = vmatpush1.bf16.msra.mxu0 %v7076_v55  ;;  %4474 = vmatprep.subr.bf16.mxu1 %v7087_v58  ;;  %v7132_v55 = vld [vmem:[#allocation7 + $0xd74] ss:$40 sps:$4 sm:$0xff]   ;;  %v7133_v58 = vld [vmem:[#allocation7 + $0x378] ss:$40 sps:$4 sm:$0xff]  }
  0xed   : > { %4372 = vmatprep.subr.bf16.mxu0 %v7084_v57  ;;  %4358 = vmatmul.mubr.bf16.gmra.mrb[4].mxu0 %v8583_v31  ;;  %v7130_v57 = vld [vmem:[#allocation7 + $0xd70] ss:$40 sps:$4 sm:$0xff]  }
  0xee   : > { %4398 = vmatprep.mubr.bf16.mxu0 %v8586_v32 }
  0xef   : > { %4475 = vmatpush1.bf16.msra.mxu1 %v7085_v60  ;;  %v7141_v60 = vld [vmem:[#allocation7 + $0x3cc] ss:$40 sps:$4 sm:$0xff]  }
  0xf0   : > { %4373 = vmatpush1.bf16.msra.mxu0 %v7082_v59  ;;  %4476 = vmatprep.subr.bf16.mxu1 %v7093_v63  ;;  %v7138_v59 = vld [vmem:[#allocation7 + $0xdc4] ss:$40 sps:$4 sm:$0xff]   ;;  %v7139_v63 = vld [vmem:[#allocation7 + $0x3c8] ss:$40 sps:$4 sm:$0xff]  }
  0xf1   : > { %4374 = vmatprep.subr.bf16.mxu0 %v7090_v61  ;;  %v7136_v61 = vld [vmem:[#allocation7 + $0xdc0] ss:$40 sps:$4 sm:$0xff]  }
  0xf3   : > { %4477 = vmatpush1.bf16.msra.mxu1 %v7091_v1  ;;  %v7147_v1 = vld [vmem:[#allocation7 + $0x41c] ss:$40 sps:$4 sm:$0xff]  }
  0xf4   : > { %4375 = vmatpush1.bf16.msra.mxu0 %v7088_v0  ;;  %4478 = vmatprep.subr.bf16.mxu1 %v7099_v4  ;;  %v7144_v0 = vld [vmem:[#allocation7 + $0xe14] ss:$40 sps:$4 sm:$0xff]   ;;  %v7145_v4 = vld [vmem:[#allocation7 + $0x418] ss:$40 sps:$4 sm:$0xff]  }
  0xf5   : > { %4376 = vmatprep.subr.bf16.mxu0 %v7096_v3  ;;  %v7142_v3 = vld [vmem:[#allocation7 + $0xe10] ss:$40 sps:$4 sm:$0xff]  }
  0xf7   : > { %4479 = vmatpush1.bf16.msra.mxu1 %v7097_v11  ;;  %v7151_v11 = vld [vmem:[#allocation7 + $0x468] ss:$40 sps:$4 sm:$0xff]  }
  0xf8   : > { %4377 = vmatpush1.bf16.msra.mxu0 %v7094_v10  ;;  %4480 = vmatprep.subr.bf16.mxu1 %v7105_v15  ;;  %v7148_v10 = vld [vmem:[#allocation7 + $0xe60] ss:$40 sps:$4 sm:$0xff]   ;;  %v7154_v15 = vld [vmem:[#allocation7 + $0xeb0] ss:$40 sps:$4 sm:$0xff]  }
  0xf9   : > { %4378 = vmatprep.subr.bf16.mxu0 %v7102_v14  ;;  %v7159_v14 = vld [vmem:[#allocation7 + $0x4bc] ss:$40 sps:$4 sm:$0xff]  }
  0xfb   : > { %4481 = vmatpush1.bf16.msra.mxu1 %v7103_v21  ;;  %v7160_v21 = vld [vmem:[#allocation7 + $0xf00] ss:$40 sps:$4 sm:$0xff]  }
  0xfc   : > { %4379 = vmatpush1.bf16.msra.mxu0 %v7100_v20  ;;  %4482 = vmatprep.subr.bf16.mxu1 %v7111_v27  ;;  %v7165_v20 = vld [vmem:[#allocation7 + $0x50c] ss:$40 sps:$4 sm:$0xff]   ;;  %v7166_v27 = vld [vmem:[#allocation7 + $0xf50] ss:$40 sps:$4 sm:$0xff]  }
  0xfd   : > { %4380 = vmatprep.subr.bf16.mxu0 %v7108_v24  ;;  %v7168_v24 = vld [vmem:[#allocation7 + $0xf54] ss:$40 sps:$4 sm:$0xff]  }
  0xff   : > { %4483 = vmatpush1.bf16.msra.mxu1 %v7109_v34  ;;  %v7172_v34 = vld [vmem:[#allocation7 + $0xfa0] ss:$40 sps:$4 sm:$0xff]  }
 0x100   : > { %4381 = vmatpush1.bf16.msra.mxu0 %v7106_v33  ;;  %4484 = vmatprep.subr.bf16.mxu1 %v7117_v35  ;;  %v7169_v33 = vld [vmem:[#allocation7 + $0x558] ss:$40 sps:$4 sm:$0xff]   ;;  %v8609_v35 = vpack.c.bf16 %v378_v9, %v378_v9  ;;  %v7246_v9 = vld [vmem:[#allocation7 + $0x1364] ss:$40 sps:$4 sm:$0xff]  }
 0x101   : > { %4382 = vmatprep.subr.bf16.mxu0 %v7114_v17  ;;  %v7175_v17 = vld [vmem:[#allocation7 + $0x5a8] ss:$40 sps:$4 sm:$0xff]  }
 0x103   : > { %4485 = vmatpush1.bf16.msra.mxu1 %v7115_v37  ;;  %v7183_v37 = vld [vmem:[#allocation7 + $0x5fc] ss:$40 sps:$4 sm:$0xff]  }
 0x104   : > { %4383 = vmatpush1.bf16.msra.mxu0 %v7112_v36  ;;  %4486 = vmatprep.subr.bf16.mxu1 %v7123_v39  ;;  %v7180_v36 = vld [vmem:[#allocation7 + $0xff4] ss:$40 sps:$4 sm:$0xff]  }
 0x105   : > { %4384 = vmatprep.subr.bf16.mxu0 %v7120_v38  ;;  %v7181_v38 = vld [vmem:[#allocation7 + $0x5f8] ss:$40 sps:$4 sm:$0xff]   ;;  %v7189_v39 = vld [vmem:[#allocation7 + $0x64c] ss:$40 sps:$4 sm:$0xff]  }
 0x107   : > { %4487 = vmatpush1.bf16.msra.mxu1 %v7121_v43  ;;  %v7187_v43 = vld [vmem:[#allocation7 + $0x648] ss:$40 sps:$4 sm:$0xff]  }
 0x108   : > { %4385 = vmatpush1.bf16.msra.mxu0 %v7118_v42  ;;  %4488 = vmatprep.subr.bf16.mxu1 %v7129_v45  ;;  %v7184_v42 = vld [vmem:[#allocation7 + $0x1040] ss:$40 sps:$4 sm:$0xff]   ;;  %v7195_v45 = vld [vmem:[#allocation7 + $0x69c] ss:$40 sps:$4 sm:$0xff]  }
 0x109   : > { %4386 = vmatprep.subr.bf16.mxu0 %v7126_v44  ;;  %v7192_v44 = vld [vmem:[#allocation7 + $0x1094] ss:$40 sps:$4 sm:$0xff]  }
 0x10b   : > { %4489 = vmatpush1.bf16.msra.mxu1 %v7127_v51  ;;  %v7193_v51 = vld [vmem:[#allocation7 + $0x698] ss:$40 sps:$4 sm:$0xff]  }
 0x10c   : > { %4387 = vmatpush1.bf16.msra.mxu0 %v7124_v50  ;;  %4490 = vmatprep.subr.bf16.mxu1 %v7135_v56  ;;  %v7190_v50 = vld [vmem:[#allocation7 + $0x1090] ss:$40 sps:$4 sm:$0xff]   ;;  %v7201_v56 = vld [vmem:[#allocation7 + $0x6ec] ss:$40 sps:$4 sm:$0xff]  }
 0x10d   : > { %4388 = vmatprep.subr.bf16.mxu0 %v7132_v55  ;;  %v7198_v55 = vld [vmem:[#allocation7 + $0x10e4] ss:$40 sps:$4 sm:$0xff]  }
 0x10f   : > { %4491 = vmatpush1.bf16.msra.mxu1 %v7133_v58  ;;  %v7199_v58 = vld [vmem:[#allocation7 + $0x6e8] ss:$40 sps:$4 sm:$0xff]  }
 0x110   : > { %4389 = vmatpush1.bf16.msra.mxu0 %v7130_v57  ;;  %4492 = vmatprep.subr.bf16.mxu1 %v7141_v60  ;;  %v7196_v57 = vld [vmem:[#allocation7 + $0x10e0] ss:$40 sps:$4 sm:$0xff]   ;;  %v7207_v60 = vld [vmem:[#allocation7 + $0x73c] ss:$40 sps:$4 sm:$0xff]  }
 0x111   : > { %4390 = vmatprep.subr.bf16.mxu0 %v7138_v59  ;;  %v7204_v59 = vld [vmem:[#allocation7 + $0x1134] ss:$40 sps:$4 sm:$0xff]  }
 0x113   : > { %4493 = vmatpush1.bf16.msra.mxu1 %v7139_v63  ;;  %v7205_v63 = vld [vmem:[#allocation7 + $0x738] ss:$40 sps:$4 sm:$0xff]  }
 0x114   : > { %4391 = vmatpush1.bf16.msra.mxu0 %v7136_v61  ;;  %4494 = vmatprep.subr.bf16.mxu1 %v7147_v1  ;;  %v7202_v61 = vld [vmem:[#allocation7 + $0x1130] ss:$40 sps:$4 sm:$0xff]   ;;  %v7213_v1 = vld [vmem:[#allocation7 + $0x78c] ss:$40 sps:$4 sm:$0xff]  }
 0x115   : > { %4392 = vmatprep.subr.bf16.mxu0 %v7144_v0  ;;  %v7210_v0 = vld [vmem:[#allocation7 + $0x1184] ss:$40 sps:$4 sm:$0xff]  }
 0x117   : > { %4495 = vmatpush1.bf16.msra.mxu1 %v7145_v4  ;;  %v7211_v4 = vld [vmem:[#allocation7 + $0x788] ss:$40 sps:$4 sm:$0xff]  }
 0x118   : > { %4393 = vmatpush1.bf16.msra.mxu0 %v7142_v3  ;;  %4496 = vmatprep.subr.bf16.mxu1 %v7153_v8  ;;  %v7208_v3 = vld [vmem:[#allocation7 + $0x1180] ss:$40 sps:$4 sm:$0xff]   ;;  %v7219_v8 = vld [vmem:[#allocation7 + $0x7dc] ss:$40 sps:$4 sm:$0xff]  }
 0x119   : > { %4394 = vmatprep.subr.bf16.mxu0 %v7150_v7  ;;  %v7216_v7 = vld [vmem:[#allocation7 + $0x11d4] ss:$40 sps:$4 sm:$0xff]  }
 0x11b   : > { %4497 = vmatpush1.bf16.msra.mxu1 %v7151_v11  ;;  %v7217_v11 = vld [vmem:[#allocation7 + $0x7d8] ss:$40 sps:$4 sm:$0xff]  }
 0x11c   : > { %4395 = vmatpush1.bf16.msra.mxu0 %v7148_v10  ;;  %4498 = vmatprep.subr.bf16.mxu1 %v7159_v14  ;;  %v7214_v10 = vld [vmem:[#allocation7 + $0x11d0] ss:$40 sps:$4 sm:$0xff]   ;;  %v7225_v14 = vld [vmem:[#allocation7 + $0x82c] ss:$40 sps:$4 sm:$0xff]  }
 0x11d   : > { %4396 = vmatprep.subr.bf16.mxu0 %v7156_v13  ;;  %v7222_v13 = vld [vmem:[#allocation7 + $0x1224] ss:$40 sps:$4 sm:$0xff]  }
 0x11f   : > { %4499 = vmatpush1.bf16.msra.mxu1 %v7157_v16  ;;  %v7223_v16 = vld [vmem:[#allocation7 + $0x828] ss:$40 sps:$4 sm:$0xff]  }
 0x120   : > { %4397 = vmatpush1.bf16.msra.mxu0 %v7154_v15  ;;  %4519 = vmatprep.subr.bf16.mxu1 %v7165_v20  ;;  %v7220_v15 = vld [vmem:[#allocation7 + $0x1220] ss:$40 sps:$4 sm:$0xff]   ;;  %v7226_v20 = vld [vmem:[#allocation7 + $0x1270] ss:$40 sps:$4 sm:$0xff]  }
 0x121   : > { %4417 = vmatprep.subr.bf16.mxu0 %v7162_v19  ;;  %v7231_v19 = vld [vmem:[#allocation7 + $0x87c] ss:$40 sps:$4 sm:$0xff]  }
 0x122   : > { %4501 = vmatmul.mubr.bf16.vlgmr.msra.gmra.mrb[8].mxu1 %v8520_v28 }
 0x123   : > { %4399 = vmatmul.mubr.bf16.vlgmr.msra.gmra.mrb[0].mxu0 %v8507_v12  ;;  %4520 = vmatpush1.bf16.msra.mxu1 %v7163_v22  ;;  %v7234_v22 = vld [vmem:[#allocation7 + $0x12c4] ss:$40 sps:$4 sm:$0xff]  }
 0x124   : > { %4418 = vmatpush1.bf16.msra.mxu0 %v7160_v21  ;;  %4521 = vmatprep.subr.bf16.mxu1 %v7171_v6  ;;  %v7229_v21 = vld [vmem:[#allocation7 + $0x878] ss:$40 sps:$4 sm:$0xff]   ;;  %v7240_v6 = vld [vmem:[#allocation7 + $0x1314] ss:$40 sps:$4 sm:$0xff]  }
 0x125   : > { %4419 = vmatprep.subr.bf16.mxu0 %v7168_v24  ;;  %4408 = vmatprep.mubr.bf16.mxu0 %v8600_v26  ;;  %v7232_v24 = vld [vmem:[#allocation7 + $0x12c0] ss:$40 sps:$4 sm:$0xff]  }
 0x126   : > { %4510 = vmatprep.mubr.bf16.mxu1 %v8534_v40 }
 0x127   : > { %4522 = vmatpush1.bf16.msra.mxu1 %v7169_v33  ;;  %v7238_v33 = vld [vmem:[#allocation7 + $0x1310] ss:$40 sps:$4 sm:$0xff]  }
 0x128   : > { %4420 = vmatpush1.bf16.msra.mxu0 %v7166_v27  ;;  %4523 = vmatprep.subr.bf16.mxu1 %v7177_v18  ;;  %v7243_v27 = vld [vmem:[#allocation7 + $0x91c] ss:$40 sps:$4 sm:$0xff]   ;;  %v7249_v18 = vld [vmem:[#allocation7 + $0x96c] ss:$40 sps:$4 sm:$0xff]  }
 0x129   : > { %4421 = vmatprep.subr.bf16.mxu0 %v7174_v49  ;;  %v7241_v49 = vld [vmem:[#allocation7 + $0x918] ss:$40 sps:$4 sm:$0xff]  }
 0x12a   : > { %4511 = vmatmul.mubr.bf16.gmra.mrb[12].mxu1 %v8549_v53 }
 0x12b   : > { %4409 = vmatmul.mubr.bf16.gmra.mrb[4].mxu0 %v8609_v35  ;;  %4524 = vmatpush1.bf16.msra.mxu1 %v7175_v17  ;;  %v7247_v17 = vld [vmem:[#allocation7 + $0x968] ss:$40 sps:$4 sm:$0xff]  }
 0x12c   : > { %4422 = vmatpush1.bf16.msra.mxu0 %v7172_v34  ;;  %4525 = vmatprep.subr.bf16.mxu1 %v7183_v37  ;;  %v7244_v34 = vld [vmem:[#allocation7 + $0x1360] ss:$40 sps:$4 sm:$0xff]   ;;  %v7255_v37 = vld [vmem:[#allocation7 + $0x9bc] ss:$40 sps:$4 sm:$0xff]  }
 0x12d   : > { %4423 = vmatprep.subr.bf16.mxu0 %v7180_v36  ;;  %4449 = vmatprep.mubr.bf16.mxu0 %v8536_v41  ;;  %v7252_v36 = vld [vmem:[#allocation7 + $0x13b4] ss:$40 sps:$4 sm:$0xff]  }
 0x12e   : > { %4551 = vmatprep.mubr.bf16.mxu1 %v8488_v62 }
 0x12f   : > { %4526 = vmatpush1.bf16.msra.mxu1 %v7181_v38  ;;  %v7253_v38 = vld [vmem:[#allocation7 + $0x9b8] ss:$40 sps:$4 sm:$0xff]  }
 0x130   : > { %4424 = vmatpush1.bf16.msra.mxu0 %v7178_v2  ;;  %4527 = vmatprep.subr.bf16.mxu1 %v7189_v39  ;;  %v7250_v2 = vld [vmem:[#allocation7 + $0x13b0] ss:$40 sps:$4 sm:$0xff]   ;;  %v7261_v39 = vld [vmem:[#allocation7 + $0x14] ss:$40 sps:$4 sm:$0xff]  }
 0x131   : > { %4425 = vmatprep.subr.bf16.mxu0 %v7186_v5  ;;  %v7258_v5 = vld [vmem:[#allocation7 + $0xa0c] ss:$40 sps:$4 sm:$0xff]  }
 0x133   : > { %4528 = vmatpush1.bf16.msra.mxu1 %v7187_v43  ;;  %v7259_v43 = vld [vmem:[#allocation7 + $0x10] ss:$40 sps:$4 sm:$0xff]  }
 0x134   : > { %4426 = vmatpush1.bf16.msra.mxu0 %v7184_v42  ;;  %4529 = vmatprep.subr.bf16.mxu1 %v7195_v45  ;;  %v7256_v42 = vld [vmem:[#allocation7 + $0xa08] ss:$40 sps:$4 sm:$0xff]   ;;  %v7267_v45 = vld [vmem:[#allocation7 + $0x64] ss:$40 sps:$4 sm:$0xff]  }
 0x135   : > { %4427 = vmatprep.subr.bf16.mxu0 %v7192_v44  ;;  %v7264_v44 = vld [vmem:[#allocation7 + $0xa5c] ss:$40 sps:$4 sm:$0xff]  }
 0x137   : > { %4530 = vmatpush1.bf16.msra.mxu1 %v7193_v51  ;;  %v7262_v51 = vld [vmem:[#allocation7 + $0xa58] ss:$40 sps:$4 sm:$0xff]  }
 0x138   : > { %4428 = vmatpush1.bf16.msra.mxu0 %v7190_v50  ;;  %4531 = vmatprep.subr.bf16.mxu1 %v7201_v56  ;;  %v8617_v50 = vpack.c.bf16 %v8577_v54, %v8577_v54  ;;  %v7270_v56 = vld [vmem:[#allocation7 + $0xaac] ss:$40 sps:$4 sm:$0xff]   ;;  %v8625_v54 = vpack.c.bf16 %v8591_v30, %v8591_v30 }
 0x139   : > { %4429 = vmatprep.subr.bf16.mxu0 %v7198_v55  ;;  %v7265_v55 = vld [vmem:[#allocation7 + $0x60] ss:$40 sps:$4 sm:$0xff]   ;;  %v7285_v30 = vld [vmem:[#allocation7 + $0x154] ss:$40 sps:$4 sm:$0xff]  }
 0x13b   : > { %4532 = vmatpush1.bf16.msra.mxu1 %v7199_v58  ;;  %v7268_v58 = vld [vmem:[#allocation7 + $0xaa8] ss:$40 sps:$4 sm:$0xff]  }
 0x13c   : > { %4430 = vmatpush1.bf16.msra.mxu0 %v7196_v57  ;;  %4533 = vmatprep.subr.bf16.mxu1 %v7207_v60  ;;  %v7273_v57 = vld [vmem:[#allocation7 + $0xb4] ss:$40 sps:$4 sm:$0xff]  }
 0x13d   : > { %4431 = vmatprep.subr.bf16.mxu0 %v7204_v59  ;;  %v7271_v59 = vld [vmem:[#allocation7 + $0xb0] ss:$40 sps:$4 sm:$0xff]   ;;  %v7276_v60 = vld [vmem:[#allocation7 + $0xafc] ss:$40 sps:$4 sm:$0xff]  }
 0x13f   : > { %4534 = vmatpush1.bf16.msra.mxu1 %v7205_v63  ;;  %v7274_v63 = vld [vmem:[#allocation7 + $0xaf8] ss:$40 sps:$4 sm:$0xff]  }
 0x140   : > { %4432 = vmatpush1.bf16.msra.mxu0 %v7202_v61  ;;  %4535 = vmatprep.subr.bf16.mxu1 %v7213_v1  ;;  %v7279_v61 = vld [vmem:[#allocation7 + $0x104] ss:$40 sps:$4 sm:$0xff]  }
 0x141   : > { %4433 = vmatprep.subr.bf16.mxu0 %v7210_v0  ;;  %v7277_v0 = vld [vmem:[#allocation7 + $0x100] ss:$40 sps:$4 sm:$0xff]   ;;  %v7282_v1 = vld [vmem:[#allocation7 + $0xb4c] ss:$40 sps:$4 sm:$0xff]  }
 0x143   : > { %4536 = vmatpush1.bf16.msra.mxu1 %v7211_v4  ;;  %v7283_v4 = vld [vmem:[#allocation7 + $0x150] ss:$40 sps:$4 sm:$0xff]  }
 0x144   : > { %4434 = vmatpush1.bf16.msra.mxu0 %v7208_v3  ;;  %4537 = vmatprep.subr.bf16.mxu1 %v7219_v8  ;;  %v7280_v3 = vld [vmem:[#allocation7 + $0xb48] ss:$40 sps:$4 sm:$0xff]   ;;  %v7291_v8 = vld [vmem:[#allocation7 + $0x1a4] ss:$40 sps:$4 sm:$0xff]  }
 0x145   : > { %4435 = vmatprep.subr.bf16.mxu0 %v7216_v7  ;;  %v7288_v7 = vld [vmem:[#allocation7 + $0xb9c] ss:$40 sps:$4 sm:$0xff]  }
 0x147   : > { %4538 = vmatpush1.bf16.msra.mxu1 %v7217_v11  ;;  %v7289_v11 = vld [vmem:[#allocation7 + $0x1a0] ss:$40 sps:$4 sm:$0xff]  }
 0x148   : > { %4436 = vmatpush1.bf16.msra.mxu0 %v7214_v10  ;;  %4539 = vmatprep.subr.bf16.mxu1 %v7225_v14  ;;  %v7286_v10 = vld [vmem:[#allocation7 + $0xb98] ss:$40 sps:$4 sm:$0xff]   ;;  %v7297_v14 = vld [vmem:[#allocation7 + $0x1f4] ss:$40 sps:$4 sm:$0xff]  }
 0x149   : > { %4437 = vmatprep.subr.bf16.mxu0 %v7222_v13  ;;  %v7294_v13 = vld [vmem:[#allocation7 + $0xbec] ss:$40 sps:$4 sm:$0xff]  }
 0x14b   : > { %4540 = vmatpush1.bf16.msra.mxu1 %v7223_v16  ;;  %v7295_v16 = vld [vmem:[#allocation7 + $0x1f0] ss:$40 sps:$4 sm:$0xff]  }
 0x14c   : > { %4438 = vmatpush1.bf16.msra.mxu0 %v7220_v15  ;;  %4541 = vmatprep.subr.bf16.mxu1 %v7231_v19  ;;  %v7292_v15 = vld [vmem:[#allocation7 + $0xbe8] ss:$40 sps:$4 sm:$0xff]   ;;  %v7303_v19 = vld [vmem:[#allocation7 + $0x244] ss:$40 sps:$4 sm:$0xff]  }
 0x14d   : > { %4439 = vmatprep.subr.bf16.mxu0 %v7228_v47  ;;  %v7300_v47 = vld [vmem:[#allocation7 + $0xc3c] ss:$40 sps:$4 sm:$0xff]  }
 0x14f   : > { %4542 = vmatpush1.bf16.msra.mxu1 %v7229_v21  ;;  %v7301_v21 = vld [vmem:[#allocation7 + $0x240] ss:$40 sps:$4 sm:$0xff]  }
 0x150   : > { %4440 = vmatpush1.bf16.msra.mxu0 %v7226_v20  ;;  %4543 = vmatprep.subr.bf16.mxu1 %v7237_v23  ;;  %v7298_v20 = vld [vmem:[#allocation7 + $0xc38] ss:$40 sps:$4 sm:$0xff]   ;;  %v7309_v23 = vld [vmem:[#allocation7 + $0x294] ss:$40 sps:$4 sm:$0xff]  }
 0x151   : > { %4441 = vmatprep.subr.bf16.mxu0 %v7234_v22  ;;  %v7306_v22 = vld [vmem:[#allocation7 + $0xc8c] ss:$40 sps:$4 sm:$0xff]  }
 0x153   : > { %4544 = vmatpush1.bf16.msra.mxu1 %v7235_v25  ;;  %v7307_v25 = vld [vmem:[#allocation7 + $0x290] ss:$40 sps:$4 sm:$0xff]  }
 0x154   : > { %4442 = vmatpush1.bf16.msra.mxu0 %v7232_v24  ;;  %4545 = vmatprep.subr.bf16.mxu1 %v7243_v27  ;;  %v7304_v24 = vld [vmem:[#allocation7 + $0xc88] ss:$40 sps:$4 sm:$0xff]   ;;  %v7315_v27 = vld [vmem:[#allocation7 + $0x2e4] ss:$40 sps:$4 sm:$0xff]  }
 0x155   : > { %4443 = vmatprep.subr.bf16.mxu0 %v7240_v6  ;;  %v7312_v6 = vld [vmem:[#allocation7 + $0xcdc] ss:$40 sps:$4 sm:$0xff]  }
 0x157   : > { %4546 = vmatpush1.bf16.msra.mxu1 %v7241_v49  ;;  %v7313_v49 = vld [vmem:[#allocation7 + $0x2e0] ss:$40 sps:$4 sm:$0xff]  }
 0x158   : > { %4444 = vmatpush1.bf16.msra.mxu0 %v7238_v33  ;;  %4547 = vmatprep.subr.bf16.mxu1 %v7249_v18  ;;  %v7310_v33 = vld [vmem:[#allocation7 + $0xcd8] ss:$40 sps:$4 sm:$0xff]   ;;  %v7321_v18 = vld [vmem:[#allocation7 + $0x334] ss:$40 sps:$4 sm:$0xff]  }
 0x159   : > { %4445 = vmatprep.subr.bf16.mxu0 %v7246_v9  ;;  %v7318_v9 = vld [vmem:[#allocation7 + $0xd2c] ss:$40 sps:$4 sm:$0xff]  }
 0x15b   : > { %4548 = vmatpush1.bf16.msra.mxu1 %v7247_v17  ;;  %v7319_v17 = vld [vmem:[#allocation7 + $0x330] ss:$40 sps:$4 sm:$0xff]  }
 0x15c   : > { %4446 = vmatpush1.bf16.msra.mxu0 %v7244_v34  ;;  %4549 = vmatprep.subr.bf16.mxu1 %v7255_v37  ;;  %v7316_v34 = vld [vmem:[#allocation7 + $0xd28] ss:$40 sps:$4 sm:$0xff]   ;;  %v7327_v37 = vld [vmem:[#allocation7 + $0x384] ss:$40 sps:$4 sm:$0xff]  }
 0x15d   : > { %4447 = vmatprep.subr.bf16.mxu0 %v7252_v36  ;;  %v7324_v36 = vld [vmem:[#allocation7 + $0xd7c] ss:$40 sps:$4 sm:$0xff]  }
 0x15f   : > { %4550 = vmatpush1.bf16.msra.mxu1 %v7253_v38  ;;  %v7325_v38 = vld [vmem:[#allocation7 + $0x380] ss:$40 sps:$4 sm:$0xff]  }
 0x160   : > { %4448 = vmatpush1.bf16.msra.mxu0 %v7250_v2  ;;  %4570 = vmatprep.subr.bf16.mxu1 %v7258_v5  ;;  %v7322_v2 = vld [vmem:[#allocation7 + $0xd78] ss:$40 sps:$4 sm:$0xff]   ;;  %v7330_v5 = vld [vmem:[#allocation7 + $0xdcc] ss:$40 sps:$4 sm:$0xff]  }
 0x161   : > { %4672 = vmatprep.subr.bf16.mxu0 %v7261_v39  ;;  %v7333_v39 = vld [vmem:[#allocation7 + $0x3d4] ss:$40 sps:$4 sm:$0xff]  }
 0x162   : > { %4552 = vmatmul.mubr.bf16.vlgmr.msra.gmra.mrb[8].mxu1 %v8522_v29 }
 0x163   : > { %4450 = vmatmul.mubr.bf16.vlgmr.msra.gmra.mrb[0].mxu0 %v8544_v46  ;;  %4571 = vmatpush1.bf16.msra.mxu1 %v7256_v42  ;;  %v7328_v42 = vld [vmem:[#allocation7 + $0xdc8] ss:$40 sps:$4 sm:$0xff]  }
 0x164   : > { %4673 = vmatpush1.bf16.msra.mxu0 %v7259_v43  ;;  %4572 = vmatprep.subr.bf16.mxu1 %v7264_v44  ;;  %v7331_v43 = vld [vmem:[#allocation7 + $0x3d0] ss:$40 sps:$4 sm:$0xff]   ;;  %v7336_v44 = vld [vmem:[#allocation7 + $0xe1c] ss:$40 sps:$4 sm:$0xff]  }
 0x165   : > { %4674 = vmatprep.subr.bf16.mxu0 %v7267_v45  ;;  %4459 = vmatprep.mubr.bf16.mxu0 %v8617_v50  ;;  %v7339_v45 = vld [vmem:[#allocation7 + $0x424] ss:$40 sps:$4 sm:$0xff]  }
 0x166   : > { %4561 = vmatprep.mubr.bf16.mxu1 %v8567_v48 }
 0x167   : > { %4573 = vmatpush1.bf16.msra.mxu1 %v7262_v51  ;;  %v7334_v51 = vld [vmem:[#allocation7 + $0xe18] ss:$40 sps:$4 sm:$0xff]  }
 0x168   : > { %4675 = vmatpush1.bf16.msra.mxu0 %v7265_v55  ;;  %4574 = vmatprep.subr.bf16.mxu1 %v7270_v56  ;;  %v7337_v55 = vld [vmem:[#allocation7 + $0x420] ss:$40 sps:$4 sm:$0xff]   ;;  %v7342_v56 = vld [vmem:[#allocation7 + $0xe6c] ss:$40 sps:$4 sm:$0xff]  }
 0x169   : > { %4676 = vmatprep.subr.bf16.mxu0 %v7273_v57  ;;  %v7345_v57 = vld [vmem:[#allocation7 + $0x474] ss:$40 sps:$4 sm:$0xff]  }
 0x16a   : > { %4562 = vmatmul.mubr.bf16.gmra.mrb[12].mxu1 %v8583_v31 }
 0x16b   : > { %4460 = vmatmul.mubr.bf16.gmra.mrb[4].mxu0 %v8625_v54  ;;  %4575 = vmatpush1.bf16.msra.mxu1 %v7268_v58  ;;  %v7340_v58 = vld [vmem:[#allocation7 + $0xe68] ss:$40 sps:$4 sm:$0xff]  }
 0x16c   : > { %4677 = vmatpush1.bf16.msra.mxu0 %v7271_v59  ;;  %4576 = vmatprep.subr.bf16.mxu1 %v7276_v60  ;;  %v7343_v59 = vld [vmem:[#allocation7 + $0x470] ss:$40 sps:$4 sm:$0xff]   ;;  %v7348_v60 = vld [vmem:[#allocation7 + $0xebc] ss:$40 sps:$4 sm:$0xff]  }
 0x16d   : > { %4678 = vmatprep.subr.bf16.mxu0 %v7279_v61  ;;  %4602 = vmatprep.mubr.bf16.mxu1 %v8586_v32  ;;  %v7351_v61 = vld [vmem:[#allocation7 + $0x4c4] ss:$40 sps:$4 sm:$0xff]  }
 0x16e   : > { %4704 = vmatprep.mubr.bf16.mxu0 %v8479_v52 }
 0x16f   : > { %4577 = vmatpush1.bf16.msra.mxu1 %v7274_v63  ;;  %v7346_v63 = vld [vmem:[#allocation7 + $0xeb8] ss:$40 sps:$4 sm:$0xff]  }
 0x170   : > { %4679 = vmatpush1.bf16.msra.mxu0 %v7277_v0  ;;  %4578 = vmatprep.subr.bf16.mxu1 %v7282_v1  ;;  %v7349_v0 = vld [vmem:[#allocation7 + $0x4c0] ss:$40 sps:$4 sm:$0xff]   ;;  %v7354_v1 = vld [vmem:[#allocation7 + $0xf0c] ss:$40 sps:$4 sm:$0xff]  }
 0x171   : > { %4680 = vmatprep.subr.bf16.mxu0 %v7285_v30  ;;  %v7357_v30 = vld [vmem:[#allocation7 + $0x514] ss:$40 sps:$4 sm:$0xff]  }
 0x173   : > { %4579 = vmatpush1.bf16.msra.mxu1 %v7280_v3  ;;  %v7352_v3 = vld [vmem:[#allocation7 + $0xf08] ss:$40 sps:$4 sm:$0xff]  }
 0x174   : > { %4681 = vmatpush1.bf16.msra.mxu0 %v7283_v4  ;;  %4580 = vmatprep.subr.bf16.mxu1 %v7288_v7  ;;  %v7355_v4 = vld [vmem:[#allocation7 + $0x510] ss:$40 sps:$4 sm:$0xff]   ;;  %v7360_v7 = vld [vmem:[#allocation7 + $0xf5c] ss:$40 sps:$4 sm:$0xff]  }
 0x175   : > { %4682 = vmatprep.subr.bf16.mxu0 %v7291_v8  ;;  %v7363_v8 = vld [vmem:[#allocation7 + $0x564] ss:$40 sps:$4 sm:$0xff]  }
 0x177   : > { %4581 = vmatpush1.bf16.msra.mxu1 %v7286_v10  ;;  %v7358_v10 = vld [vmem:[#allocation7 + $0xf58] ss:$40 sps:$4 sm:$0xff]  }
 0x178   : > { %4683 = vmatpush1.bf16.msra.mxu0 %v7289_v11  ;;  %4582 = vmatprep.subr.bf16.mxu1 %v7294_v13  ;;  %v7361_v11 = vld [vmem:[#allocation7 + $0x560] ss:$40 sps:$4 sm:$0xff]   ;;  %v7366_v13 = vld [vmem:[#allocation7 + $0xfac] ss:$40 sps:$4 sm:$0xff]  }
 0x179   : > { %4684 = vmatprep.subr.bf16.mxu0 %v7297_v14  ;;  %v7369_v14 = vld [vmem:[#allocation7 + $0x5b4] ss:$40 sps:$4 sm:$0xff]  }
 0x17b   : > { %4583 = vmatpush1.bf16.msra.mxu1 %v7292_v15  ;;  %v7364_v15 = vld [vmem:[#allocation7 + $0xfa8] ss:$40 sps:$4 sm:$0xff]  }
 0x17c   : > { %4685 = vmatpush1.bf16.msra.mxu0 %v7295_v16  ;;  %4584 = vmatprep.subr.bf16.mxu1 %v7300_v47  ;;  %v7367_v16 = vld [vmem:[#allocation7 + $0x5b0] ss:$40 sps:$4 sm:$0xff]   ;;  %v7372_v47 = vld [vmem:[#allocation7 + $0xffc] ss:$40 sps:$4 sm:$0xff]  }
 0x17d   : > { %4686 = vmatprep.subr.bf16.mxu0 %v7303_v19  ;;  %v7375_v19 = vld [vmem:[#allocation7 + $0x604] ss:$40 sps:$4 sm:$0xff]  }
 0x17f   : > { %4585 = vmatpush1.bf16.msra.mxu1 %v7298_v20  ;;  %v7370_v20 = vld [vmem:[#allocation7 + $0xff8] ss:$40 sps:$4 sm:$0xff]  }
 0x180   : > { %4687 = vmatpush1.bf16.msra.mxu0 %v7301_v21  ;;  %4586 = vmatprep.subr.bf16.mxu1 %v7306_v22  ;;  %v7373_v21 = vld [vmem:[#allocation7 + $0x600] ss:$40 sps:$4 sm:$0xff]   ;;  %v7378_v22 = vld [vmem:[#allocation7 + $0x104c] ss:$40 sps:$4 sm:$0xff]  }
 0x181   : > { %4688 = vmatprep.subr.bf16.mxu0 %v7309_v23  ;;  %v7381_v23 = vld [vmem:[#allocation7 + $0x654] ss:$40 sps:$4 sm:$0xff]  }
 0x183   : > { %4587 = vmatpush1.bf16.msra.mxu1 %v7304_v24  ;;  %v7376_v24 = vld [vmem:[#allocation7 + $0x1048] ss:$40 sps:$4 sm:$0xff]  }
 0x184   : > { %4689 = vmatpush1.bf16.msra.mxu0 %v7307_v25  ;;  %4588 = vmatprep.subr.bf16.mxu1 %v7312_v6  ;;  %v7379_v25 = vld [vmem:[#allocation7 + $0x650] ss:$40 sps:$4 sm:$0xff]   ;;  %v7384_v6 = vld [vmem:[#allocation7 + $0x109c] ss:$40 sps:$4 sm:$0xff]  }
 0x185   : > { %4690 = vmatprep.subr.bf16.mxu0 %v7315_v27  ;;  %v7387_v27 = vld [vmem:[#allocation7 + $0x6a4] ss:$40 sps:$4 sm:$0xff]  }
 0x187   : > { %4589 = vmatpush1.bf16.msra.mxu1 %v7310_v33  ;;  %v7382_v33 = vld [vmem:[#allocation7 + $0x1098] ss:$40 sps:$4 sm:$0xff]  }
 0x188   : > { %4691 = vmatpush1.bf16.msra.mxu0 %v7313_v49  ;;  %4590 = vmatprep.subr.bf16.mxu1 %v7318_v9  ;;  %v7385_v49 = vld [vmem:[#allocation7 + $0x6a0] ss:$40 sps:$4 sm:$0xff]   ;;  %v7390_v9 = vld [vmem:[#allocation7 + $0x10ec] ss:$40 sps:$4 sm:$0xff]  }
 0x189   : > { %4692 = vmatprep.subr.bf16.mxu0 %v7321_v18  ;;  %v7393_v18 = vld [vmem:[#allocation7 + $0x6f4] ss:$40 sps:$4 sm:$0xff]  }
 0x18b   : > { %4591 = vmatpush1.bf16.msra.mxu1 %v7316_v34  ;;  %v7388_v34 = vld [vmem:[#allocation7 + $0x10e8] ss:$40 sps:$4 sm:$0xff]  }
 0x18c   : > { %4693 = vmatpush1.bf16.msra.mxu0 %v7319_v17  ;;  %4592 = vmatprep.subr.bf16.mxu1 %v7324_v36  ;;  %v7391_v17 = vld [vmem:[#allocation7 + $0x6f0] ss:$40 sps:$4 sm:$0xff]  }
 0x18d   : > { %4694 = vmatprep.subr.bf16.mxu0 %v7327_v37 }
 0x18f   : > { %4593 = vmatpush1.bf16.msra.mxu1 %v7322_v2 }
 0x190   : > { %4695 = vmatpush1.bf16.msra.mxu0 %v7325_v38  ;;  %4594 = vmatprep.subr.bf16.mxu1 %v7330_v5  ;;  %v7396_v38 = vld [vmem:[#allocation7 + $0x113c] ss:$40 sps:$4 sm:$0xff]  }
 0x191   : > { %4696 = vmatprep.subr.bf16.mxu0 %v7333_v39  ;;  %v7399_v5 = vld [vmem:[#allocation7 + $0x744] ss:$40 sps:$4 sm:$0xff]  }
 0x193   : > { %4595 = vmatpush1.bf16.msra.mxu1 %v7328_v42  ;;  %v7394_v42 = vld [vmem:[#allocation7 + $0x1138] ss:$40 sps:$4 sm:$0xff]  }
 0x194   : > { %4697 = vmatpush1.bf16.msra.mxu0 %v7331_v43  ;;  %4596 = vmatprep.subr.bf16.mxu1 %v7336_v44  ;;  %v7397_v43 = vld [vmem:[#allocation7 + $0x740] ss:$40 sps:$4 sm:$0xff]   ;;  %v7402_v44 = vld [vmem:[#allocation7 + $0x118c] ss:$40 sps:$4 sm:$0xff]  }
 0x195   : > { %4698 = vmatprep.subr.bf16.mxu0 %v7339_v45  ;;  %v7405_v45 = vld [vmem:[#allocation7 + $0x794] ss:$40 sps:$4 sm:$0xff]  }
 0x197   : > { %4597 = vmatpush1.bf16.msra.mxu1 %v7334_v51  ;;  %v7400_v51 = vld [vmem:[#allocation7 + $0x1188] ss:$40 sps:$4 sm:$0xff]  }
 0x198   : > { %4699 = vmatpush1.bf16.msra.mxu0 %v7337_v55  ;;  %4598 = vmatprep.subr.bf16.mxu1 %v7342_v56  ;;  %v7403_v55 = vld [vmem:[#allocation7 + $0x790] ss:$40 sps:$4 sm:$0xff]  }
 0x199   : > { %4700 = vmatprep.subr.bf16.mxu0 %v7345_v57 }
 0x19b   : > { %4599 = vmatpush1.bf16.msra.mxu1 %v7340_v58 }
 0x19c   : > { %4701 = vmatpush1.bf16.msra.mxu0 %v7343_v59  ;;  %4600 = vmatprep.subr.bf16.mxu1 %v7348_v60  ;;  %v7408_v59 = vld [vmem:[#allocation7 + $0x11dc] ss:$40 sps:$4 sm:$0xff]  }
 0x19d   : > { %4702 = vmatprep.subr.bf16.mxu0 %v7351_v61  ;;  %v7411_v60 = vld [vmem:[#allocation7 + $0x7e4] ss:$40 sps:$4 sm:$0xff]  }
 0x19f   : > { %4601 = vmatpush1.bf16.msra.mxu1 %v7346_v63  ;;  %v7406_v63 = vld [vmem:[#allocation7 + $0x11d8] ss:$40 sps:$4 sm:$0xff]  }
 0x1a0   : > { %4703 = vmatpush1.bf16.msra.mxu0 %v7349_v0  ;;  %4621 = vmatprep.subr.bf16.mxu1 %v7354_v1  ;;  %v7409_v0 = vld [vmem:[#allocation7 + $0x7e0] ss:$40 sps:$4 sm:$0xff]   ;;  %v7414_v1 = vld [vmem:[#allocation7 + $0x122c] ss:$40 sps:$4 sm:$0xff]  }
 0x1a1   : > { %4723 = vmatprep.subr.bf16.mxu0 %v7357_v30  ;;  %v7417_v30 = vld [vmem:[#allocation7 + $0x834] ss:$40 sps:$4 sm:$0xff]  }
 0x1a2   : > { %4603 = vmatmul.mubr.bf16.vlgmr.msra.gmra.mrb[8].mxu1 %v8507_v12 }
 0x1a3   : > { %4705 = vmatmul.mubr.bf16.vlgmr.msra.gmra.mrb[8].mxu0 %v8520_v28  ;;  %4622 = vmatpush1.bf16.msra.mxu1 %v7352_v3  ;;  %v7412_v3 = vld [vmem:[#allocation7 + $0x1228] ss:$40 sps:$4 sm:$0xff]  }
 0x1a4   : > { %4724 = vmatpush1.bf16.msra.mxu0 %v7355_v4  ;;  %4623 = vmatprep.subr.bf16.mxu1 %v7360_v7  ;;  %v7415_v4 = vld [vmem:[#allocation7 + $0x830] ss:$40 sps:$4 sm:$0xff]   ;;  %v7420_v7 = vld [vmem:[#allocation7 + $0x127c] ss:$40 sps:$4 sm:$0xff]  }
 0x1a5   : > { %4725 = vmatprep.subr.bf16.mxu0 %v7363_v8  ;;  %4612 = vmatprep.mubr.bf16.mxu1 %v8600_v26  ;;  %v7423_v8 = vld [vmem:[#allocation7 + $0x884] ss:$40 sps:$4 sm:$0xff]  }
 0x1a6   : > { %4714 = vmatprep.mubr.bf16.mxu0 %v8534_v40 }
 0x1a7   : > { %4624 = vmatpush1.bf16.msra.mxu1 %v7358_v10  ;;  %v7418_v10 = vld [vmem:[#allocation7 + $0x1278] ss:$40 sps:$4 sm:$0xff]  }
 0x1a8   : > { %4726 = vmatpush1.bf16.msra.mxu0 %v7361_v11  ;;  %4625 = vmatprep.subr.bf16.mxu1 %v7366_v13  ;;  %v7421_v11 = vld [vmem:[#allocation7 + $0x880] ss:$40 sps:$4 sm:$0xff]   ;;  %v7426_v13 = vld [vmem:[#allocation7 + $0x12cc] ss:$40 sps:$4 sm:$0xff]  }
 0x1a9   : > { %4727 = vmatprep.subr.bf16.mxu0 %v7369_v14  ;;  %v7429_v14 = vld [vmem:[#allocation7 + $0x8d4] ss:$40 sps:$4 sm:$0xff]  }
 0x1aa   : > { %4613 = vmatmul.mubr.bf16.gmra.mrb[12].mxu1 %v8609_v35 }
 0x1ab   : > { %4715 = vmatmul.mubr.bf16.gmra.mrb[12].mxu0 %v8549_v53  ;;  %4626 = vmatpush1.bf16.msra.mxu1 %v7364_v15  ;;  %v7424_v15 = vld [vmem:[#allocation7 + $0x12c8] ss:$40 sps:$4 sm:$0xff]  }
 0x1ac   : > { %4728 = vmatpush1.bf16.msra.mxu0 %v7367_v16  ;;  %4627 = vmatprep.subr.bf16.mxu1 %v7372_v47  ;;  %v7427_v16 = vld [vmem:[#allocation7 + $0x8d0] ss:$40 sps:$4 sm:$0xff]   ;;  %v7432_v47 = vld [vmem:[#allocation7 + $0x131c] ss:$40 sps:$4 sm:$0xff]  }
 0x1ad   : > { %4729 = vmatprep.subr.bf16.mxu0 %v7375_v19  ;;  %4653 = vmatprep.mubr.bf16.mxu1 %v8536_v41  ;;  %v7435_v19 = vld [vmem:[#allocation7 + $0x924] ss:$40 sps:$4 sm:$0xff]  }
 0x1ae   : > { %4755 = vmatprep.mubr.bf16.mxu0 %v8488_v62 }
 0x1af   : > { %4628 = vmatpush1.bf16.msra.mxu1 %v7370_v20  ;;  %v7430_v20 = vld [vmem:[#allocation7 + $0x1318] ss:$40 sps:$4 sm:$0xff]  }
 0x1b0   : > { %4730 = vmatpush1.bf16.msra.mxu0 %v7373_v21  ;;  %4629 = vmatprep.subr.bf16.mxu1 %v7378_v22  ;;  %v7433_v21 = vld [vmem:[#allocation7 + $0x920] ss:$40 sps:$4 sm:$0xff]   ;;  %v7438_v22 = vld [vmem:[#allocation7 + $0x136c] ss:$40 sps:$4 sm:$0xff]  }
 0x1b1   : > { %4731 = vmatprep.subr.bf16.mxu0 %v7381_v23  ;;  %v7441_v23 = vld [vmem:[#allocation7 + $0x974] ss:$40 sps:$4 sm:$0xff]  }
 0x1b3   : > { %4630 = vmatpush1.bf16.msra.mxu1 %v7376_v24  ;;  %v7436_v24 = vld [vmem:[#allocation7 + $0x1368] ss:$40 sps:$4 sm:$0xff]  }
 0x1b4   : > { %4732 = vmatpush1.bf16.msra.mxu0 %v7379_v25  ;;  %4631 = vmatprep.subr.bf16.mxu1 %v7384_v6  ;;  %v7439_v25 = vld [vmem:[#allocation7 + $0x970] ss:$40 sps:$4 sm:$0xff]   ;;  %v7444_v6 = vld [vmem:[#allocation7 + $0x13bc] ss:$40 sps:$4 sm:$0xff]  }
 0x1b5   : > { %4733 = vmatprep.subr.bf16.mxu0 %v7387_v27  ;;  %v8639_v36 = vpop.f32.mrb[0].mxu1  ;;  %v7447_v27 = vld [vmem:[#allocation7 + $0x9c4] ss:$40 sps:$4 sm:$0xff]  }
 0x1b6   : > { %v8641_v37 = vpop.f32.mrb[1].mxu1 }
 0x1b7   : > { %4632 = vmatpush1.bf16.msra.mxu1 %v7382_v33  ;;  %v8643_v2 = vpop.f32.mrb[2].mxu1  ;;  %v7442_v33 = vld [vmem:[#allocation7 + $0x13b8] ss:$40 sps:$4 sm:$0xff]  }
 0x1b8   : > { %4734 = vmatpush1.bf16.msra.mxu0 %v7385_v49  ;;  %4633 = vmatprep.subr.bf16.mxu1 %v7390_v9  ;;  %v8645_v39 = vpop.f32.mrb[3].mxu1  ;;  %v7445_v49 = vld [vmem:[#allocation7 + $0x9c0] ss:$40 sps:$4 sm:$0xff]   ;;  %v7450_v9 = vld [vmem:[#allocation7 + $0xa14] ss:$40 sps:$4 sm:$0xff]  }
 0x1b9   : > { %4735 = vmatprep.subr.bf16.mxu0 %v7393_v18  ;;  %v7453_v18 = vld [vmem:[#allocation7 + $0x1c] ss:$40 sps:$4 sm:$0xff]  }
 0x1bb   : > { %4634 = vmatpush1.bf16.msra.mxu1 %v7388_v34  ;;  %v7448_v34 = vld [vmem:[#allocation7 + $0xa10] ss:$40 sps:$4 sm:$0xff]  }
 0x1bc   : > { %4736 = vmatpush1.bf16.msra.mxu0 %v7391_v17  ;;  %4635 = vmatprep.subr.bf16.mxu1 %v7396_v38  ;;  %v7451_v17 = vld [vmem:[#allocation7 + $0x18] ss:$40 sps:$4 sm:$0xff]   ;;  %v7456_v38 = vld [vmem:[#allocation7 + $0xa64] ss:$40 sps:$4 sm:$0xff]  }
 0x1bd   : > { %4737 = vmatprep.subr.bf16.mxu0 %v7399_v5  ;;  %v8647_v56 = vpop.f32.mrb[4].mxu1  ;;  %v7459_v5 = vld [vmem:[#allocation7 + $0x6c] ss:$40 sps:$4 sm:$0xff]  }
 0x1be   : > { %v8649_v57 = vpop.f32.mrb[5].mxu1 }
 0x1bf   : > { %4636 = vmatpush1.bf16.msra.mxu1 %v7394_v42  ;;  %v4312_v58 = vpop.f32.mrb[6].mxu1  ;;  %v7454_v42 = vld [vmem:[#allocation7 + $0xa60] ss:$40 sps:$4 sm:$0xff]  }
 0x1c0   : > { %4738 = vmatpush1.bf16.msra.mxu0 %v7397_v43  ;;  %4637 = vmatprep.subr.bf16.mxu1 %v7402_v44  ;;  %v4313_v61 = vpop.f32.mrb[7].mxu1  ;;  %v7457_v43 = vld [vmem:[#allocation7 + $0x68] ss:$40 sps:$4 sm:$0xff]   ;;  %v7462_v44 = vld [vmem:[#allocation7 + $0xab4] ss:$40 sps:$4 sm:$0xff]  }
 0x1c1   : > { %4739 = vmatprep.subr.bf16.mxu0 %v7405_v45  ;;  %v7465_v45 = vld [vmem:[#allocation7 + $0xbc] ss:$40 sps:$4 sm:$0xff]   ;;  %v7469_v61 = vld [vmem:[#allocation7 + $0x108] ss:$40 sps:$4 sm:$0xff]  }
 0x1c2   : > { %v7468_v58 = vld [vmem:[#allocation7 + $0xb04] ss:$40 sps:$4 sm:$0xff]  }
 0x1c3   : > { %4638 = vmatpush1.bf16.msra.mxu1 %v7400_v51  ;;  %v7460_v51 = vld [vmem:[#allocation7 + $0xab0] ss:$40 sps:$4 sm:$0xff]  }
 0x1c4   : > { %4740 = vmatpush1.bf16.msra.mxu0 %v7403_v55  ;;  %4639 = vmatprep.subr.bf16.mxu1 %v7408_v59  ;;  %v7463_v55 = vld [vmem:[#allocation7 + $0xb8] ss:$40 sps:$4 sm:$0xff]   ;;  %v7471_v59 = vld [vmem:[#allocation7 + $0x10c] ss:$40 sps:$4 sm:$0xff]  }
 0x1c5   : > { %4741 = vmatprep.subr.bf16.mxu0 %v7411_v60  ;;  %v7466_v60 = vld [vmem:[#allocation7 + $0xb00] ss:$40 sps:$4 sm:$0xff]  }
 0x1c7   : > { %4640 = vmatpush1.bf16.msra.mxu1 %v7406_v63  ;;  %v7474_v63 = vld [vmem:[#allocation7 + $0xb54] ss:$40 sps:$4 sm:$0xff]  }
 0x1c8   : > { %4742 = vmatpush1.bf16.msra.mxu0 %v7409_v0  ;;  %4641 = vmatprep.subr.bf16.mxu1 %v7414_v1  ;;  %v7477_v0 = vld [vmem:[#allocation7 + $0x15c] ss:$40 sps:$4 sm:$0xff]   ;;  %v7472_v1 = vld [vmem:[#allocation7 + $0xb50] ss:$40 sps:$4 sm:$0xff]  }
 0x1c9   : > { %4743 = vmatprep.subr.bf16.mxu0 %v7417_v30  ;;  %v7475_v30 = vld [vmem:[#allocation7 + $0x158] ss:$40 sps:$4 sm:$0xff]  }
 0x1cb   : > { %4642 = vmatpush1.bf16.msra.mxu1 %v7412_v3  ;;  %v7480_v3 = vld [vmem:[#allocation7 + $0xba4] ss:$40 sps:$4 sm:$0xff]  }
 0x1cc   : > { %4744 = vmatpush1.bf16.msra.mxu0 %v7415_v4  ;;  %4643 = vmatprep.subr.bf16.mxu1 %v7420_v7  ;;  %v7483_v4 = vld [vmem:[#allocation7 + $0x1ac] ss:$40 sps:$4 sm:$0xff]   ;;  %v7478_v7 = vld [vmem:[#allocation7 + $0xba0] ss:$40 sps:$4 sm:$0xff]  }
 0x1cd   : > { %4745 = vmatprep.subr.bf16.mxu0 %v7423_v8  ;;  %v7481_v8 = vld [vmem:[#allocation7 + $0x1a8] ss:$40 sps:$4 sm:$0xff]  }
 0x1cf   : > { %4644 = vmatpush1.bf16.msra.mxu1 %v7418_v10  ;;  %v7486_v10 = vld [vmem:[#allocation7 + $0xbf4] ss:$40 sps:$4 sm:$0xff]  }
 0x1d0   : > { %4746 = vmatpush1.bf16.msra.mxu0 %v7421_v11  ;;  %4645 = vmatprep.subr.bf16.mxu1 %v7426_v13  ;;  %v7489_v11 = vld [vmem:[#allocation7 + $0x1fc] ss:$40 sps:$4 sm:$0xff]   ;;  %v7484_v13 = vld [vmem:[#allocation7 + $0xbf0] ss:$40 sps:$4 sm:$0xff]  }
 0x1d1   : > { %4747 = vmatprep.subr.bf16.mxu0 %v7429_v14  ;;  %v7487_v14 = vld [vmem:[#allocation7 + $0x1f8] ss:$40 sps:$4 sm:$0xff]  }
 0x1d3   : > { %4646 = vmatpush1.bf16.msra.mxu1 %v7424_v15  ;;  %v7492_v15 = vld [vmem:[#allocation7 + $0xc44] ss:$40 sps:$4 sm:$0xff]  }
 0x1d4   : > { %4748 = vmatpush1.bf16.msra.mxu0 %v7427_v16  ;;  %4647 = vmatprep.subr.bf16.mxu1 %v7432_v47  ;;  %v7495_v16 = vld [vmem:[#allocation7 + $0x24c] ss:$40 sps:$4 sm:$0xff]   ;;  %v7490_v47 = vld [vmem:[#allocation7 + $0xc40] ss:$40 sps:$4 sm:$0xff]  }
 0x1d5   : > { %4749 = vmatprep.subr.bf16.mxu0 %v7435_v19  ;;  %v7493_v19 = vld [vmem:[#allocation7 + $0x248] ss:$40 sps:$4 sm:$0xff]  }
 0x1d7   : > { %4648 = vmatpush1.bf16.msra.mxu1 %v7430_v20  ;;  %v7498_v20 = vld [vmem:[#allocation7 + $0xc94] ss:$40 sps:$4 sm:$0xff]  }
 0x1d8   : > { %4750 = vmatpush1.bf16.msra.mxu0 %v7433_v21  ;;  %4649 = vmatprep.subr.bf16.mxu1 %v7438_v22  ;;  %v7501_v21 = vld [vmem:[#allocation7 + $0x29c] ss:$40 sps:$4 sm:$0xff]   ;;  %v7496_v22 = vld [vmem:[#allocation7 + $0xc90] ss:$40 sps:$4 sm:$0xff]  }
 0x1d9   : > { %4751 = vmatprep.subr.bf16.mxu0 %v7441_v23  ;;  %v7499_v23 = vld [vmem:[#allocation7 + $0x298] ss:$40 sps:$4 sm:$0xff]  }
 0x1db   : > { %4650 = vmatpush1.bf16.msra.mxu1 %v7436_v24  ;;  %v7504_v24 = vld [vmem:[#allocation7 + $0xce4] ss:$40 sps:$4 sm:$0xff]  }
 0x1dc   : > { %4752 = vmatpush1.bf16.msra.mxu0 %v7439_v25  ;;  %4651 = vmatprep.subr.bf16.mxu1 %v7444_v6  ;;  %v7507_v25 = vld [vmem:[#allocation7 + $0x2ec] ss:$40 sps:$4 sm:$0xff]   ;;  %v7502_v6 = vld [vmem:[#allocation7 + $0xce0] ss:$40 sps:$4 sm:$0xff]  }
 0x1dd   : > { %4753 = vmatprep.subr.bf16.mxu0 %v7447_v27  ;;  %v7505_v27 = vld [vmem:[#allocation7 + $0x2e8] ss:$40 sps:$4 sm:$0xff]  }
 0x1df   : > { %4652 = vmatpush1.bf16.msra.mxu1 %v7442_v33  ;;  %v7510_v33 = vld [vmem:[#allocation7 + $0xd34] ss:$40 sps:$4 sm:$0xff]  }
 0x1e0   : > { %4754 = vmatpush1.bf16.msra.mxu0 %v7445_v49  ;;  %4876 = vmatprep.subr.bf16.mxu1 %v7453_v18  ;;  %v7513_v49 = vld [vmem:[#allocation7 + $0x33c] ss:$40 sps:$4 sm:$0xff]   ;;  %v7511_v18 = vld [vmem:[#allocation7 + $0x338] ss:$40 sps:$4 sm:$0xff]  }
 0x1e1   : > { %4774 = vmatprep.subr.bf16.mxu0 %v7450_v9  ;;  %v7508_v9 = vld [vmem:[#allocation7 + $0xd30] ss:$40 sps:$4 sm:$0xff]  }
 0x1e2   : > { %4654 = vmatmul.mubr.bf16.vlgmr.msra.gmra.mrb[8].mxu1 %v8544_v46 }
 0x1e3   : > { %4756 = vmatmul.mubr.bf16.vlgmr.msra.gmra.mrb[8].mxu0 %v8522_v29  ;;  %4877 = vmatpush1.bf16.msra.mxu1 %v7451_v17  ;;  %v7519_v17 = vld [vmem:[#allocation7 + $0x38c] ss:$40 sps:$4 sm:$0xff]  }
 0x1e4   : > { %4775 = vmatpush1.bf16.msra.mxu0 %v7448_v34  ;;  %4878 = vmatprep.subr.bf16.mxu1 %v7459_v5  ;;  %v7516_v34 = vld [vmem:[#allocation7 + $0xd84] ss:$40 sps:$4 sm:$0xff]   ;;  %v7517_v5 = vld [vmem:[#allocation7 + $0x388] ss:$40 sps:$4 sm:$0xff]  }
 0x1e5   : > { %4776 = vmatprep.subr.bf16.mxu0 %v7456_v38  ;;  %4663 = vmatprep.mubr.bf16.mxu1 %v8617_v50  ;;  %v7514_v38 = vld [vmem:[#allocation7 + $0xd80] ss:$40 sps:$4 sm:$0xff]  }
 0x1e6   : > { %4765 = vmatprep.mubr.bf16.mxu0 %v8567_v48 }
 0x1e7   : > { %4879 = vmatpush1.bf16.msra.mxu1 %v7457_v43  ;;  %v7525_v43 = vld [vmem:[#allocation7 + $0x3dc] ss:$40 sps:$4 sm:$0xff]  }
 0x1e8   : > { %4777 = vmatpush1.bf16.msra.mxu0 %v7454_v42  ;;  %4880 = vmatprep.subr.bf16.mxu1 %v7465_v45  ;;  %v7522_v42 = vld [vmem:[#allocation7 + $0xdd4] ss:$40 sps:$4 sm:$0xff]   ;;  %v7523_v45 = vld [vmem:[#allocation7 + $0x3d8] ss:$40 sps:$4 sm:$0xff]  }
 0x1e9   : > { %4778 = vmatprep.subr.bf16.mxu0 %v7462_v44  ;;  %v7520_v44 = vld [vmem:[#allocation7 + $0xdd0] ss:$40 sps:$4 sm:$0xff]  }
 0x1ea   : > { %4664 = vmatmul.mubr.bf16.gmra.mrb[12].mxu1 %v8625_v54 }
 0x1eb   : > { %4766 = vmatmul.mubr.bf16.gmra.mrb[12].mxu0 %v8583_v31  ;;  %4881 = vmatpush1.bf16.msra.mxu1 %v7463_v55  ;;  %v7531_v55 = vld [vmem:[#allocation7 + $0x42c] ss:$40 sps:$4 sm:$0xff]  }
 0x1ec   : > { %4779 = vmatpush1.bf16.msra.mxu0 %v7460_v51  ;;  %4882 = vmatprep.subr.bf16.mxu1 %v7471_v59  ;;  %v7528_v51 = vld [vmem:[#allocation7 + $0xe24] ss:$40 sps:$4 sm:$0xff]   ;;  %v7529_v59 = vld [vmem:[#allocation7 + $0x428] ss:$40 sps:$4 sm:$0xff]  }
 0x1ed   : > { %4780 = vmatprep.subr.bf16.mxu0 %v7468_v58  ;;  %4806 = vmatprep.mubr.bf16.mxu0 %v8586_v32  ;;  %v7526_v58 = vld [vmem:[#allocation7 + $0xe20] ss:$40 sps:$4 sm:$0xff]  }
 0x1ee   : > { %4908 = vmatprep.mubr.bf16.mxu1 %v8479_v52 }
 0x1ef   : > { %4883 = vmatpush1.bf16.msra.mxu1 %v7469_v61  ;;  %v7537_v61 = vld [vmem:[#allocation7 + $0x47c] ss:$40 sps:$4 sm:$0xff]  }
 0x1f0   : > { %4781 = vmatpush1.bf16.msra.mxu0 %v7466_v60  ;;  %4884 = vmatprep.subr.bf16.mxu1 %v7477_v0  ;;  %v7534_v60 = vld [vmem:[#allocation7 + $0xe74] ss:$40 sps:$4 sm:$0xff]   ;;  %v7535_v0 = vld [vmem:[#allocation7 + $0x478] ss:$40 sps:$4 sm:$0xff]  }
 0x1f1   : > { %4782 = vmatprep.subr.bf16.mxu0 %v7474_v63  ;;  %v7532_v63 = vld [vmem:[#allocation7 + $0xe70] ss:$40 sps:$4 sm:$0xff]  }
 0x1f3   : > { %4885 = vmatpush1.bf16.msra.mxu1 %v7475_v30  ;;  %v7543_v30 = vld [vmem:[#allocation7 + $0x4cc] ss:$40 sps:$4 sm:$0xff]  }
 0x1f4   : > { %4783 = vmatpush1.bf16.msra.mxu0 %v7472_v1  ;;  %4886 = vmatprep.subr.bf16.mxu1 %v7483_v4  ;;  %v7540_v1 = vld [vmem:[#allocation7 + $0xec4] ss:$40 sps:$4 sm:$0xff]   ;;  %v7541_v4 = vld [vmem:[#allocation7 + $0x4c8] ss:$40 sps:$4 sm:$0xff]  }
 0x1f5   : > { %4784 = vmatprep.subr.bf16.mxu0 %v7480_v3  ;;  %v7538_v3 = vld [vmem:[#allocation7 + $0xec0] ss:$40 sps:$4 sm:$0xff]  }
 0x1f7   : > { %4887 = vmatpush1.bf16.msra.mxu1 %v7481_v8  ;;  %v7549_v8 = vld [vmem:[#allocation7 + $0x51c] ss:$40 sps:$4 sm:$0xff]  }
 0x1f8   : > { %4785 = vmatpush1.bf16.msra.mxu0 %v7478_v7  ;;  %4888 = vmatprep.subr.bf16.mxu1 %v7489_v11  ;;  %v7546_v7 = vld [vmem:[#allocation7 + $0xf14] ss:$40 sps:$4 sm:$0xff]   ;;  %v7547_v11 = vld [vmem:[#allocation7 + $0x518] ss:$40 sps:$4 sm:$0xff]  }
 0x1f9   : > { %4786 = vmatprep.subr.bf16.mxu0 %v7486_v10  ;;  %v7544_v10 = vld [vmem:[#allocation7 + $0xf10] ss:$40 sps:$4 sm:$0xff]  }
 0x1fb   : > { %4889 = vmatpush1.bf16.msra.mxu1 %v7487_v14  ;;  %v7555_v14 = vld [vmem:[#allocation7 + $0x56c] ss:$40 sps:$4 sm:$0xff]  }
 0x1fc   : > { %4787 = vmatpush1.bf16.msra.mxu0 %v7484_v13  ;;  %4890 = vmatprep.subr.bf16.mxu1 %v7495_v16  ;;  %v7552_v13 = vld [vmem:[#allocation7 + $0xf64] ss:$40 sps:$4 sm:$0xff]   ;;  %v7553_v16 = vld [vmem:[#allocation7 + $0x568] ss:$40 sps:$4 sm:$0xff]  }
 0x1fd   : > { %4788 = vmatprep.subr.bf16.mxu0 %v7492_v15  ;;  %v7550_v15 = vld [vmem:[#allocation7 + $0xf60] ss:$40 sps:$4 sm:$0xff]  }
 0x1ff   : > { %4891 = vmatpush1.bf16.msra.mxu1 %v7493_v19  ;;  %v7561_v19 = vld [vmem:[#allocation7 + $0x5bc] ss:$40 sps:$4 sm:$0xff]  }
 0x200   : > { %4789 = vmatpush1.bf16.msra.mxu0 %v7490_v47  ;;  %4892 = vmatprep.subr.bf16.mxu1 %v7501_v21  ;;  %v7558_v47 = vld [vmem:[#allocation7 + $0xfb4] ss:$40 sps:$4 sm:$0xff]   ;;  %v7559_v21 = vld [vmem:[#allocation7 + $0x5b8] ss:$40 sps:$4 sm:$0xff]  }
 0x201   : > { %4790 = vmatprep.subr.bf16.mxu0 %v7498_v20  ;;  %v7556_v20 = vld [vmem:[#allocation7 + $0xfb0] ss:$40 sps:$4 sm:$0xff]  }
 0x203   : > { %4893 = vmatpush1.bf16.msra.mxu1 %v7499_v23  ;;  %v7567_v23 = vld [vmem:[#allocation7 + $0x60c] ss:$40 sps:$4 sm:$0xff]  }
 0x204   : > { %4791 = vmatpush1.bf16.msra.mxu0 %v7496_v22  ;;  %4894 = vmatprep.subr.bf16.mxu1 %v7507_v25  ;;  %v7564_v22 = vld [vmem:[#allocation7 + $0x1004] ss:$40 sps:$4 sm:$0xff]   ;;  %v7565_v25 = vld [vmem:[#allocation7 + $0x608] ss:$40 sps:$4 sm:$0xff]  }
 0x205   : > { %4792 = vmatprep.subr.bf16.mxu0 %v7504_v24  ;;  %v7562_v24 = vld [vmem:[#allocation7 + $0x1000] ss:$40 sps:$4 sm:$0xff]  }
 0x207   : > { %4895 = vmatpush1.bf16.msra.mxu1 %v7505_v27  ;;  %v7573_v27 = vld [vmem:[#allocation7 + $0x65c] ss:$40 sps:$4 sm:$0xff]  }
 0x208   : > { %4793 = vmatpush1.bf16.msra.mxu0 %v7502_v6  ;;  %4896 = vmatprep.subr.bf16.mxu1 %v7513_v49  ;;  %v7570_v6 = vld [vmem:[#allocation7 + $0x1054] ss:$40 sps:$4 sm:$0xff]   ;;  %v7571_v49 = vld [vmem:[#allocation7 + $0x658] ss:$40 sps:$4 sm:$0xff]  }
 0x209   : > { %4794 = vmatprep.subr.bf16.mxu0 %v7510_v33  ;;  %v7568_v33 = vld [vmem:[#allocation7 + $0x1050] ss:$40 sps:$4 sm:$0xff]  }
 0x20b   : > { %4897 = vmatpush1.bf16.msra.mxu1 %v7511_v18  ;;  %v7579_v18 = vld [vmem:[#allocation7 + $0x6ac] ss:$40 sps:$4 sm:$0xff]  }
 0x20c   : > { %4795 = vmatpush1.bf16.msra.mxu0 %v7508_v9  ;;  %4898 = vmatprep.subr.bf16.mxu1 %v7519_v17  ;;  %v7576_v9 = vld [vmem:[#allocation7 + $0x10a4] ss:$40 sps:$4 sm:$0xff]   ;;  %v7577_v17 = vld [vmem:[#allocation7 + $0x6a8] ss:$40 sps:$4 sm:$0xff]  }
 0x20d   : > { %4796 = vmatprep.subr.bf16.mxu0 %v7516_v34  ;;  %v7574_v34 = vld [vmem:[#allocation7 + $0x10a0] ss:$40 sps:$4 sm:$0xff]  }
 0x20f   : > { %4899 = vmatpush1.bf16.msra.mxu1 %v7517_v5  ;;  %v7585_v5 = vld [vmem:[#allocation7 + $0x6fc] ss:$40 sps:$4 sm:$0xff]  }
 0x210   : > { %4797 = vmatpush1.bf16.msra.mxu0 %v7514_v38  ;;  %4900 = vmatprep.subr.bf16.mxu1 %v7525_v43  ;;  %v7582_v38 = vld [vmem:[#allocation7 + $0x10f4] ss:$40 sps:$4 sm:$0xff]   ;;  %v7580_v43 = vld [vmem:[#allocation7 + $0x10f0] ss:$40 sps:$4 sm:$0xff]  }
 0x211   : > { %4798 = vmatprep.subr.bf16.mxu0 %v7522_v42 }
 0x213   : > { %4901 = vmatpush1.bf16.msra.mxu1 %v7523_v45 }
 0x214   : > { %4799 = vmatpush1.bf16.msra.mxu0 %v7520_v44  ;;  %4902 = vmatprep.subr.bf16.mxu1 %v7531_v55  ;;  %v7583_v44 = vld [vmem:[#allocation7 + $0x6f8] ss:$40 sps:$4 sm:$0xff]  }
 0x215   : > { %4800 = vmatprep.subr.bf16.mxu0 %v7528_v51 }
 0x217   : > { %4903 = vmatpush1.bf16.msra.mxu1 %v7529_v59 }
 0x218   : > { %4801 = vmatpush1.bf16.msra.mxu0 %v7526_v58  ;;  %4904 = vmatprep.subr.bf16.mxu1 %v7537_v61  ;;  %v7588_v61 = vld [vmem:[#allocation7 + $0x1144] ss:$40 sps:$4 sm:$0xff]  }
 0x219   : > { %4802 = vmatprep.subr.bf16.mxu0 %v7534_v60 }
 0x21b   : > { %4905 = vmatpush1.bf16.msra.mxu1 %v7535_v0 }
 0x21c   : > { %4803 = vmatpush1.bf16.msra.mxu0 %v7532_v63  ;;  %4906 = vmatprep.subr.bf16.mxu1 %v7543_v30  ;;  %v7591_v63 = vld [vmem:[#allocation7 + $0x74c] ss:$40 sps:$4 sm:$0xff]   ;;  %v7597_v30 = vld [vmem:[#allocation7 + $0x79c] ss:$40 sps:$4 sm:$0xff]  }
 0x21d   : > { %4804 = vmatprep.subr.bf16.mxu0 %v7540_v1  ;;  %v7589_v1 = vld [vmem:[#allocation7 + $0x748] ss:$40 sps:$4 sm:$0xff]  }
 0x21f   : > { %4907 = vmatpush1.bf16.msra.mxu1 %v7541_v4  ;;  %v7592_v4 = vld [vmem:[#allocation7 + $0x1190] ss:$40 sps:$4 sm:$0xff]  }
 0x220   : > { %4805 = vmatpush1.bf16.msra.mxu0 %v7538_v3  ;;  %4927 = vmatprep.subr.bf16.mxu1 %v7549_v8 }
 0x221   : > { %4825 = vmatprep.subr.bf16.mxu0 %v7546_v7 }
 0x222   : > { %4909 = vmatmul.mubr.bf16.vlgmr.msra.gmra.mrb[16].mxu1 %v8520_v28 }
 0x223   : > { %4807 = vmatmul.mubr.bf16.vlgmr.msra.gmra.mrb[8].mxu0 %v8507_v12  ;;  %4928 = vmatpush1.bf16.msra.mxu1 %v7547_v11 }
 0x224   : > { %4826 = vmatpush1.bf16.msra.mxu0 %v7544_v10  ;;  %4929 = vmatprep.subr.bf16.mxu1 %v7555_v14  ;;  %v7603_v14 = vld [vmem:[#allocation7 + $0x7ec] ss:$40 sps:$4 sm:$0xff]  }
 0x225   : > { %4827 = vmatprep.subr.bf16.mxu0 %v7552_v13  ;;  %4816 = vmatprep.mubr.bf16.mxu0 %v8600_v26  ;;  %v7600_v13 = vld [vmem:[#allocation7 + $0x11e4] ss:$40 sps:$4 sm:$0xff]  }
 0x226   : > { %4918 = vmatprep.mubr.bf16.mxu1 %v8534_v40 }
 0x227   : > { %4930 = vmatpush1.bf16.msra.mxu1 %v7553_v16  ;;  %v7601_v16 = vld [vmem:[#allocation7 + $0x7e8] ss:$40 sps:$4 sm:$0xff]  }
 0x228   : > { %4828 = vmatpush1.bf16.msra.mxu0 %v7550_v15  ;;  %4931 = vmatprep.subr.bf16.mxu1 %v7561_v19  ;;  %v7598_v15 = vld [vmem:[#allocation7 + $0x11e0] ss:$40 sps:$4 sm:$0xff]  }
 0x229   : > { %4829 = vmatprep.subr.bf16.mxu0 %v7558_v47  ;;  %v7609_v47 = vld [vmem:[#allocation7 + $0x83c] ss:$40 sps:$4 sm:$0xff]   ;;  %v7607_v19 = vld [vmem:[#allocation7 + $0x838] ss:$40 sps:$4 sm:$0xff]  }
 0x22a   : > { %4919 = vmatmul.mubr.bf16.gmra.mrb[20].mxu1 %v8549_v53 }
 0x22b   : > { %4817 = vmatmul.mubr.bf16.gmra.mrb[12].mxu0 %v8609_v35  ;;  %4932 = vmatpush1.bf16.msra.mxu1 %v7559_v21  ;;  %v7615_v21 = vld [vmem:[#allocation7 + $0x88c] ss:$40 sps:$4 sm:$0xff]  }
 0x22c   : > { %4830 = vmatpush1.bf16.msra.mxu0 %v7556_v20  ;;  %4933 = vmatprep.subr.bf16.mxu1 %v7567_v23  ;;  %v7612_v20 = vld [vmem:[#allocation7 + $0x1284] ss:$40 sps:$4 sm:$0xff]   ;;  %v7613_v23 = vld [vmem:[#allocation7 + $0x888] ss:$40 sps:$4 sm:$0xff]  }
 0x22d   : > { %4831 = vmatprep.subr.bf16.mxu0 %v7564_v22  ;;  %4857 = vmatprep.mubr.bf16.mxu0 %v8536_v41  ;;  %v7610_v22 = vld [vmem:[#allocation7 + $0x1280] ss:$40 sps:$4 sm:$0xff]  }
 0x22e   : > { %4959 = vmatprep.mubr.bf16.mxu1 %v8488_v62 }
 0x22f   : > { %4934 = vmatpush1.bf16.msra.mxu1 %v7565_v25  ;;  %v7621_v25 = vld [vmem:[#allocation7 + $0x8dc] ss:$40 sps:$4 sm:$0xff]  }
 0x230   : > { %4832 = vmatpush1.bf16.msra.mxu0 %v7562_v24  ;;  %4935 = vmatprep.subr.bf16.mxu1 %v7573_v27  ;;  %v7618_v24 = vld [vmem:[#allocation7 + $0x12d4] ss:$40 sps:$4 sm:$0xff]   ;;  %v7619_v27 = vld [vmem:[#allocation7 + $0x8d8] ss:$40 sps:$4 sm:$0xff]  }
 0x231   : > { %4833 = vmatprep.subr.bf16.mxu0 %v7570_v6  ;;  %v7616_v6 = vld [vmem:[#allocation7 + $0x12d0] ss:$40 sps:$4 sm:$0xff]  }
 0x233   : > { %4936 = vmatpush1.bf16.msra.mxu1 %v7571_v49  ;;  %v7627_v49 = vld [vmem:[#allocation7 + $0x92c] ss:$40 sps:$4 sm:$0xff]  }
 0x234   : > { %4834 = vmatpush1.bf16.msra.mxu0 %v7568_v33  ;;  %4937 = vmatprep.subr.bf16.mxu1 %v7579_v18  ;;  %v7624_v33 = vld [vmem:[#allocation7 + $0x1324] ss:$40 sps:$4 sm:$0xff]   ;;  %v7625_v18 = vld [vmem:[#allocation7 + $0x928] ss:$40 sps:$4 sm:$0xff]  }
 0x235   : > { %4835 = vmatprep.subr.bf16.mxu0 %v7576_v9  ;;  %v7622_v9 = vld [vmem:[#allocation7 + $0x1320] ss:$40 sps:$4 sm:$0xff]  }
 0x236   : > { %v4451_v42 = vpop.f32.mrb[0].mxu0 }
 0x237   : > { %v8668_v45 = vadd.f32 %v4451_v42, %v8639_v36  ;;  %v4453_v51 = vpop.f32.mrb[1].mxu0  ;;  %4938 = vmatpush1.bf16.msra.mxu1 %v7577_v17  ;;  %v7586_v36 = vld [vmem:[#allocation7 + $0x1140] ss:$40 sps:$4 sm:$0xff]   ;;  %v7633_v17 = vld [vmem:[#allocation7 + $0x97c] ss:$40 sps:$4 sm:$0xff]  }
 0x238   : > { %v8671_v55 = vadd.f32 %v4453_v51, %v8641_v37  ;;  %v4455_v58 = vpop.f32.mrb[2].mxu0  ;;  %4836 = vmatpush1.bf16.msra.mxu0 %v7574_v34  ;;  %4939 = vmatprep.subr.bf16.mxu1 %v7585_v5  ;;  %v7594_v37 = vld [vmem:[#allocation7 + $0x1194] ss:$40 sps:$4 sm:$0xff]   ;;  %v7631_v5 = vld [vmem:[#allocation7 + $0x978] ss:$40 sps:$4 sm:$0xff]  }
 0x239   : > { %v8674_v59 = vadd.f32 %v4455_v58, %v8643_v2  ;;  %v4457_v60 = vpop.f32.mrb[3].mxu0  ;;  %4837 = vmatprep.subr.bf16.mxu0 %v7582_v38  ;;  %v7595_v2 = vld [vmem:[#allocation7 + $0x798] ss:$40 sps:$4 sm:$0xff]   ;;  %v7630_v34 = vld [vmem:[#allocation7 + $0x1374] ss:$40 sps:$4 sm:$0xff]  }
 0x23a   : > { %v8677_v0 = vadd.f32 %v4457_v60, %v8645_v39  ;;  %v7628_v38 = vld [vmem:[#allocation7 + $0x1370] ss:$40 sps:$4 sm:$0xff]   ;;  %v7636_v42 = vld [vmem:[#allocation7 + $0x13c4] ss:$40 sps:$4 sm:$0xff]  }
 0x23b   : > { %4940 = vmatpush1.bf16.msra.mxu1 %v7583_v44  ;;  %v7634_v44 = vld [vmem:[#allocation7 + $0x13c0] ss:$40 sps:$4 sm:$0xff]   ;;  %v7642_v58 = vld [vmem:[#allocation7 + $0xa1c] ss:$40 sps:$4 sm:$0xff]  }
 0x23c   : > { %4838 = vmatpush1.bf16.msra.mxu0 %v7580_v43  ;;  %4941 = vmatprep.subr.bf16.mxu1 %v7591_v63  ;;  %v7639_v43 = vld [vmem:[#allocation7 + $0x9cc] ss:$40 sps:$4 sm:$0xff]   ;;  %v7637_v51 = vld [vmem:[#allocation7 + $0x9c8] ss:$40 sps:$4 sm:$0xff]  }
 0x23d   : > { %4839 = vmatprep.subr.bf16.mxu0 %v7588_v61  ;;  %v7645_v60 = vld [vmem:[#allocation7 + $0x24] ss:$40 sps:$4 sm:$0xff]   ;;  %v7640_v61 = vld [vmem:[#allocation7 + $0xa18] ss:$40 sps:$4 sm:$0xff]  }
 0x23e   : > { %v4461_v3 = vpop.f32.mrb[4].mxu0  ;;  %v7643_v63 = vld [vmem:[#allocation7 + $0x20] ss:$40 sps:$4 sm:$0xff]  }
 0x23f   : > { %v8680_v7 = vadd.f32 %v4461_v3, %v8647_v56  ;;  %v4463_v8 = vpop.f32.mrb[5].mxu0  ;;  %4942 = vmatpush1.bf16.msra.mxu1 %v7589_v1  ;;  %v7606_v56 = vld [vmem:[#allocation7 + $0x1234] ss:$40 sps:$4 sm:$0xff]  }
 0x240   : > { %v8683_v10 = vadd.f32 %v4463_v8, %v8649_v57  ;;  %v4465_v39 = vpop.f32.mrb[6].mxu0  ;;  %4840 = vmatpush1.bf16.msra.mxu0 %v7586_v36  ;;  %4943 = vmatprep.subr.bf16.mxu1 %v7597_v30  ;;  %v7604_v57 = vld [vmem:[#allocation7 + $0x1230] ss:$40 sps:$4 sm:$0xff]   ;;  %v7648_v36 = vld [vmem:[#allocation7 + $0xa6c] ss:$40 sps:$4 sm:$0xff]  }
 0x241   : > { %v4466_v11 = vpop.f32.mrb[7].mxu0  ;;  %4841 = vmatprep.subr.bf16.mxu0 %v7594_v37  ;;  %v7651_v1 = vld [vmem:[#allocation7 + $0x74] ss:$40 sps:$4 sm:$0xff]   ;;  %v7646_v37 = vld [vmem:[#allocation7 + $0xa68] ss:$40 sps:$4 sm:$0xff]  }
 0x242   : > { %v7649_v30 = vld [vmem:[#allocation7 + $0x70] ss:$40 sps:$4 sm:$0xff]   ;;  %v7654_v3 = vld [vmem:[#allocation7 + $0xabc] ss:$40 sps:$4 sm:$0xff]   ;;  %v7655_v8 = vld [vmem:[#allocation7 + $0xc0] ss:$40 sps:$4 sm:$0xff]  }
 0x243   : > { %4944 = vmatpush1.bf16.msra.mxu1 %v7595_v2  ;;  %v7652_v2 = vld [vmem:[#allocation7 + $0xab8] ss:$40 sps:$4 sm:$0xff]   ;;  %v7660_v39 = vld [vmem:[#allocation7 + $0xb0c] ss:$40 sps:$4 sm:$0xff]  }
 0x244   : > { %4842 = vmatpush1.bf16.msra.mxu0 %v7592_v4  ;;  %4945 = vmatprep.subr.bf16.mxu1 %v7603_v14  ;;  %v7657_v4 = vld [vmem:[#allocation7 + $0xc4] ss:$40 sps:$4 sm:$0xff]   ;;  %v7663_v11 = vld [vmem:[#allocation7 + $0x114] ss:$40 sps:$4 sm:$0xff]   ;;  %v7661_v14 = vld [vmem:[#allocation7 + $0x110] ss:$40 sps:$4 sm:$0xff]  }
 0x245   : > { %4843 = vmatprep.subr.bf16.mxu0 %v7600_v13  ;;  %v7658_v13 = vld [vmem:[#allocation7 + $0xb08] ss:$40 sps:$4 sm:$0xff]  }
 0x247   : > { %4946 = vmatpush1.bf16.msra.mxu1 %v7601_v16  ;;  %v7669_v16 = vld [vmem:[#allocation7 + $0x164] ss:$40 sps:$4 sm:$0xff]  }
 0x248   : > { %4844 = vmatpush1.bf16.msra.mxu0 %v7598_v15  ;;  %4947 = vmatprep.subr.bf16.mxu1 %v7609_v47  ;;  %v7666_v15 = vld [vmem:[#allocation7 + $0xb5c] ss:$40 sps:$4 sm:$0xff]   ;;  %v7667_v47 = vld [vmem:[#allocation7 + $0x160] ss:$40 sps:$4 sm:$0xff]  }
 0x249   : > { %4845 = vmatprep.subr.bf16.mxu0 %v7606_v56  ;;  %v7664_v56 = vld [vmem:[#allocation7 + $0xb58] ss:$40 sps:$4 sm:$0xff]  }
 0x24b   : > { %4948 = vmatpush1.bf16.msra.mxu1 %v7607_v19  ;;  %v7675_v19 = vld [vmem:[#allocation7 + $0x1b4] ss:$40 sps:$4 sm:$0xff]  }
 0x24c   : > { %4846 = vmatpush1.bf16.msra.mxu0 %v7604_v57  ;;  %4949 = vmatprep.subr.bf16.mxu1 %v7615_v21  ;;  %v7672_v57 = vld [vmem:[#allocation7 + $0xbac] ss:$40 sps:$4 sm:$0xff]   ;;  %v7673_v21 = vld [vmem:[#allocation7 + $0x1b0] ss:$40 sps:$4 sm:$0xff]  }
 0x24d   : > { %4847 = vmatprep.subr.bf16.mxu0 %v7612_v20  ;;  %v7670_v20 = vld [vmem:[#allocation7 + $0xba8] ss:$40 sps:$4 sm:$0xff]  }
 0x24f   : > { %4950 = vmatpush1.bf16.msra.mxu1 %v7613_v23  ;;  %v7681_v23 = vld [vmem:[#allocation7 + $0x204] ss:$40 sps:$4 sm:$0xff]  }
 0x250   : > { %4848 = vmatpush1.bf16.msra.mxu0 %v7610_v22  ;;  %4951 = vmatprep.subr.bf16.mxu1 %v7621_v25  ;;  %v7678_v22 = vld [vmem:[#allocation7 + $0xbfc] ss:$40 sps:$4 sm:$0xff]   ;;  %v7684_v25 = vld [vmem:[#allocation7 + $0xc4c] ss:$40 sps:$4 sm:$0xff]  }
 0x251   : > { %4849 = vmatprep.subr.bf16.mxu0 %v7618_v24  ;;  %v7676_v24 = vld [vmem:[#allocation7 + $0xbf8] ss:$40 sps:$4 sm:$0xff]  }
 0x253   : > { %4952 = vmatpush1.bf16.msra.mxu1 %v7619_v27  ;;  %v7682_v27 = vld [vmem:[#allocation7 + $0xc48] ss:$40 sps:$4 sm:$0xff]  }
 0x254   : > { %4850 = vmatpush1.bf16.msra.mxu0 %v7616_v6  ;;  %4953 = vmatprep.subr.bf16.mxu1 %v7627_v49  ;;  %v7687_v6 = vld [vmem:[#allocation7 + $0x254] ss:$40 sps:$4 sm:$0xff]  }
 0x255   : > { %4851 = vmatprep.subr.bf16.mxu0 %v7624_v33  ;;  %v7685_v33 = vld [vmem:[#allocation7 + $0x250] ss:$40 sps:$4 sm:$0xff]   ;;  %v7690_v49 = vld [vmem:[#allocation7 + $0xc9c] ss:$40 sps:$4 sm:$0xff]  }
 0x257   : > { %4954 = vmatpush1.bf16.msra.mxu1 %v7625_v18  ;;  %v7688_v18 = vld [vmem:[#allocation7 + $0xc98] ss:$40 sps:$4 sm:$0xff]  }
 0x258   : > { %4852 = vmatpush1.bf16.msra.mxu0 %v7622_v9  ;;  %4955 = vmatprep.subr.bf16.mxu1 %v7633_v17  ;;  %v7693_v9 = vld [vmem:[#allocation7 + $0x2a4] ss:$40 sps:$4 sm:$0xff]  }
 0x259   : > { %4853 = vmatprep.subr.bf16.mxu0 %v7630_v34  ;;  %v7691_v34 = vld [vmem:[#allocation7 + $0x2a0] ss:$40 sps:$4 sm:$0xff]   ;;  %v7696_v17 = vld [vmem:[#allocation7 + $0xcec] ss:$40 sps:$4 sm:$0xff]  }
 0x25b   : > { %4956 = vmatpush1.bf16.msra.mxu1 %v7631_v5  ;;  %v7694_v5 = vld [vmem:[#allocation7 + $0xce8] ss:$40 sps:$4 sm:$0xff]  }
 0x25c   : > { %4854 = vmatpush1.bf16.msra.mxu0 %v7628_v38  ;;  %4957 = vmatprep.subr.bf16.mxu1 %v7639_v43  ;;  %v7699_v38 = vld [vmem:[#allocation7 + $0x2f4] ss:$40 sps:$4 sm:$0xff]  }
 0x25d   : > { %4855 = vmatprep.subr.bf16.mxu0 %v7636_v42  ;;  %v7697_v42 = vld [vmem:[#allocation7 + $0x2f0] ss:$40 sps:$4 sm:$0xff]   ;;  %v7702_v43 = vld [vmem:[#allocation7 + $0xd3c] ss:$40 sps:$4 sm:$0xff]  }
 0x25f   : > { %4958 = vmatpush1.bf16.msra.mxu1 %v7637_v51  ;;  %v7700_v51 = vld [vmem:[#allocation7 + $0xd38] ss:$40 sps:$4 sm:$0xff]  }
 0x260   : > { %4856 = vmatpush1.bf16.msra.mxu0 %v7634_v44  ;;  %4978 = vmatprep.subr.bf16.mxu1 %v7642_v58  ;;  %v7705_v44 = vld [vmem:[#allocation7 + $0x344] ss:$40 sps:$4 sm:$0xff]   ;;  %v7703_v58 = vld [vmem:[#allocation7 + $0x340] ss:$40 sps:$4 sm:$0xff]  }
 0x261   : > { %5080 = vmatprep.subr.bf16.mxu0 %v7645_v60  ;;  %v7708_v60 = vld [vmem:[#allocation7 + $0xd8c] ss:$40 sps:$4 sm:$0xff]  }
 0x262   : > { %4960 = vmatmul.mubr.bf16.vlgmr.msra.gmra.mrb[16].mxu1 %v8522_v29 }
 0x263   : > { %4858 = vmatmul.mubr.bf16.vlgmr.msra.gmra.mrb[8].mxu0 %v8544_v46  ;;  %4979 = vmatpush1.bf16.msra.mxu1 %v7640_v61  ;;  %v7711_v61 = vld [vmem:[#allocation7 + $0x394] ss:$40 sps:$4 sm:$0xff]  }
 0x264   : > { %5081 = vmatpush1.bf16.msra.mxu0 %v7643_v63  ;;  %4980 = vmatprep.subr.bf16.mxu1 %v7648_v36  ;;  %v7706_v63 = vld [vmem:[#allocation7 + $0xd88] ss:$40 sps:$4 sm:$0xff]  }
 0x265   : > { %5082 = vmatprep.subr.bf16.mxu0 %v7651_v1  ;;  %4867 = vmatprep.mubr.bf16.mxu0 %v8617_v50  ;;  %v7709_v36 = vld [vmem:[#allocation7 + $0x390] ss:$40 sps:$4 sm:$0xff]   ;;  %v7714_v1 = vld [vmem:[#allocation7 + $0xddc] ss:$40 sps:$4 sm:$0xff]  }
 0x266   : > { %4969 = vmatprep.mubr.bf16.mxu1 %v8567_v48 }
 0x267   : > { %4981 = vmatpush1.bf16.msra.mxu1 %v7646_v37  ;;  %v7717_v37 = vld [vmem:[#allocation7 + $0x3e4] ss:$40 sps:$4 sm:$0xff]  }
 0x268   : > { %5083 = vmatpush1.bf16.msra.mxu0 %v7649_v30  ;;  %4982 = vmatprep.subr.bf16.mxu1 %v7654_v3  ;;  %v7712_v30 = vld [vmem:[#allocation7 + $0xdd8] ss:$40 sps:$4 sm:$0xff]  }
 0x269   : > { %5084 = vmatprep.subr.bf16.mxu0 %v7657_v4  ;;  %v7715_v3 = vld [vmem:[#allocation7 + $0x3e0] ss:$40 sps:$4 sm:$0xff]   ;;  %v7720_v4 = vld [vmem:[#allocation7 + $0xe2c] ss:$40 sps:$4 sm:$0xff]  }
 0x26a   : > { %4970 = vmatmul.mubr.bf16.gmra.mrb[20].mxu1 %v8583_v31 }
 0x26b   : > { %4868 = vmatmul.mubr.bf16.gmra.mrb[12].mxu0 %v8625_v54  ;;  %4983 = vmatpush1.bf16.msra.mxu1 %v7652_v2  ;;  %v7723_v2 = vld [vmem:[#allocation7 + $0x434] ss:$40 sps:$4 sm:$0xff]  }
 0x26c   : > { %5085 = vmatpush1.bf16.msra.mxu0 %v7655_v8  ;;  %4984 = vmatprep.subr.bf16.mxu1 %v7660_v39  ;;  %v7718_v8 = vld [vmem:[#allocation7 + $0xe28] ss:$40 sps:$4 sm:$0xff]  }
 0x26d   : > { %5086 = vmatprep.subr.bf16.mxu0 %v7663_v11  ;;  %5010 = vmatprep.mubr.bf16.mxu1 %v8586_v32  ;;  %v7721_v39 = vld [vmem:[#allocation7 + $0x430] ss:$40 sps:$4 sm:$0xff]   ;;  %v7726_v11 = vld [vmem:[#allocation7 + $0xe7c] ss:$40 sps:$4 sm:$0xff]  }
 0x26e   : > { %5112 = vmatprep.mubr.bf16.mxu0 %v8479_v52  ;;  %v7679_v52 = vld [vmem:[#allocation7 + $0x200] ss:$40 sps:$4 sm:$0xff]  }
 0x26f   : > { %4985 = vmatpush1.bf16.msra.mxu1 %v7658_v13  ;;  %v7729_v13 = vld [vmem:[#allocation7 + $0x484] ss:$40 sps:$4 sm:$0xff]  }
 0x270   : > { %5087 = vmatpush1.bf16.msra.mxu0 %v7661_v14  ;;  %4986 = vmatprep.subr.bf16.mxu1 %v7666_v15  ;;  %v7724_v14 = vld [vmem:[#allocation7 + $0xe78] ss:$40 sps:$4 sm:$0xff]  }
 0x271   : > { %5088 = vmatprep.subr.bf16.mxu0 %v7669_v16  ;;  %v7727_v15 = vld [vmem:[#allocation7 + $0x480] ss:$40 sps:$4 sm:$0xff]   ;;  %v7732_v16 = vld [vmem:[#allocation7 + $0xecc] ss:$40 sps:$4 sm:$0xff]  }
 0x273   : > { %4987 = vmatpush1.bf16.msra.mxu1 %v7664_v56  ;;  %v7735_v56 = vld [vmem:[#allocation7 + $0x4d4] ss:$40 sps:$4 sm:$0xff]  }
 0x274   : > { %5089 = vmatpush1.bf16.msra.mxu0 %v7667_v47  ;;  %4988 = vmatprep.subr.bf16.mxu1 %v7672_v57  ;;  %v7730_v47 = vld [vmem:[#allocation7 + $0xec8] ss:$40 sps:$4 sm:$0xff]  }
 0x275   : > { %5090 = vmatprep.subr.bf16.mxu0 %v7675_v19  ;;  %v7733_v57 = vld [vmem:[#allocation7 + $0x4d0] ss:$40 sps:$4 sm:$0xff]   ;;  %v7738_v19 = vld [vmem:[#allocation7 + $0xf1c] ss:$40 sps:$4 sm:$0xff]  }
 0x277   : > { %4989 = vmatpush1.bf16.msra.mxu1 %v7670_v20  ;;  %v7741_v20 = vld [vmem:[#allocation7 + $0x524] ss:$40 sps:$4 sm:$0xff]  }
 0x278   : > { %5091 = vmatpush1.bf16.msra.mxu0 %v7673_v21  ;;  %4990 = vmatprep.subr.bf16.mxu1 %v7678_v22  ;;  %v7736_v21 = vld [vmem:[#allocation7 + $0xf18] ss:$40 sps:$4 sm:$0xff]  }
 0x279   : > { %5092 = vmatprep.subr.bf16.mxu0 %v7681_v23  ;;  %v7739_v22 = vld [vmem:[#allocation7 + $0x520] ss:$40 sps:$4 sm:$0xff]   ;;  %v7744_v23 = vld [vmem:[#allocation7 + $0xf6c] ss:$40 sps:$4 sm:$0xff]  }
 0x27b   : > { %4991 = vmatpush1.bf16.msra.mxu1 %v7676_v24  ;;  %v7747_v24 = vld [vmem:[#allocation7 + $0x574] ss:$40 sps:$4 sm:$0xff]  }
 0x27c   : > { %5093 = vmatpush1.bf16.msra.mxu0 %v7679_v52  ;;  %4992 = vmatprep.subr.bf16.mxu1 %v7684_v25  ;;  %v7742_v52 = vld [vmem:[#allocation7 + $0xf68] ss:$40 sps:$4 sm:$0xff]  }
 0x27d   : > { %5094 = vmatprep.subr.bf16.mxu0 %v7687_v6  ;;  %v7745_v25 = vld [vmem:[#allocation7 + $0x570] ss:$40 sps:$4 sm:$0xff]   ;;  %v7750_v6 = vld [vmem:[#allocation7 + $0xfbc] ss:$40 sps:$4 sm:$0xff]  }
 0x27f   : > { %4993 = vmatpush1.bf16.msra.mxu1 %v7682_v27  ;;  %v7753_v27 = vld [vmem:[#allocation7 + $0x5c4] ss:$40 sps:$4 sm:$0xff]  }
 0x280   : > { %5095 = vmatpush1.bf16.msra.mxu0 %v7685_v33  ;;  %4994 = vmatprep.subr.bf16.mxu1 %v7690_v49  ;;  %v7748_v33 = vld [vmem:[#allocation7 + $0xfb8] ss:$40 sps:$4 sm:$0xff]  }
 0x281   : > { %5096 = vmatprep.subr.bf16.mxu0 %v7693_v9  ;;  %v7751_v49 = vld [vmem:[#allocation7 + $0x5c0] ss:$40 sps:$4 sm:$0xff]   ;;  %v7756_v9 = vld [vmem:[#allocation7 + $0x100c] ss:$40 sps:$4 sm:$0xff]  }
 0x283   : > { %4995 = vmatpush1.bf16.msra.mxu1 %v7688_v18  ;;  %v7754_v18 = vld [vmem:[#allocation7 + $0x1008] ss:$40 sps:$4 sm:$0xff]  }
 0x284   : > { %5097 = vmatpush1.bf16.msra.mxu0 %v7691_v34  ;;  %4996 = vmatprep.subr.bf16.mxu1 %v7696_v17  ;;  %v7757_v34 = vld [vmem:[#allocation7 + $0x610] ss:$40 sps:$4 sm:$0xff]   ;;  %v7762_v17 = vld [vmem:[#allocation7 + $0x105c] ss:$40 sps:$4 sm:$0xff]  }
 0x285   : > { %5098 = vmatprep.subr.bf16.mxu0 %v7699_v38  ;;  %v7760_v38 = vld [vmem:[#allocation7 + $0x1058] ss:$40 sps:$4 sm:$0xff]  }
 0x287   : > { %4997 = vmatpush1.bf16.msra.mxu1 %v7694_v5  ;;  %v7763_v5 = vld [vmem:[#allocation7 + $0x660] ss:$40 sps:$4 sm:$0xff]  }
 0x288   : > { %5099 = vmatpush1.bf16.msra.mxu0 %v7697_v42  ;;  %4998 = vmatprep.subr.bf16.mxu1 %v7702_v43  ;;  %v7768_v42 = vld [vmem:[#allocation7 + $0x10ac] ss:$40 sps:$4 sm:$0xff]   ;;  %v7766_v43 = vld [vmem:[#allocation7 + $0x10a8] ss:$40 sps:$4 sm:$0xff]  }
 0x289   : > { %5100 = vmatprep.subr.bf16.mxu0 %v7705_v44  ;;  %v7769_v44 = vld [vmem:[#allocation7 + $0x6b0] ss:$40 sps:$4 sm:$0xff]  }
 0x28b   : > { %4999 = vmatpush1.bf16.msra.mxu1 %v7700_v51  ;;  %v7774_v51 = vld [vmem:[#allocation7 + $0x10fc] ss:$40 sps:$4 sm:$0xff]  }
 0x28c   : > { %5101 = vmatpush1.bf16.msra.mxu0 %v7703_v58  ;;  %5000 = vmatprep.subr.bf16.mxu1 %v7708_v60  ;;  %v7777_v58 = vld [vmem:[#allocation7 + $0x704] ss:$40 sps:$4 sm:$0xff]  }
 0x28d   : > { %5102 = vmatprep.subr.bf16.mxu0 %v7711_v61 }
 0x28f   : > { %5001 = vmatpush1.bf16.msra.mxu1 %v7706_v63  ;;  %v7772_v63 = vld [vmem:[#allocation7 + $0x10f8] ss:$40 sps:$4 sm:$0xff]  }
 0x290   : > { %5103 = vmatpush1.bf16.msra.mxu0 %v7709_v36  ;;  %5002 = vmatprep.subr.bf16.mxu1 %v7714_v1  ;;  %v7775_v36 = vld [vmem:[#allocation7 + $0x700] ss:$40 sps:$4 sm:$0xff]  }
 0x291   : > { %5104 = vmatprep.subr.bf16.mxu0 %v7717_v37  ;;  %v7780_v37 = vld [vmem:[#allocation7 + $0x114c] ss:$40 sps:$4 sm:$0xff]  }
 0x293   : > { %5003 = vmatpush1.bf16.msra.mxu1 %v7712_v30  ;;  %v7783_v30 = vld [vmem:[#allocation7 + $0x754] ss:$40 sps:$4 sm:$0xff]  }
 0x294   : > { %5105 = vmatpush1.bf16.msra.mxu0 %v7715_v3  ;;  %5004 = vmatprep.subr.bf16.mxu1 %v7720_v4  ;;  %v7778_v3 = vld [vmem:[#allocation7 + $0x1148] ss:$40 sps:$4 sm:$0xff]  }
 0x295   : > { %5106 = vmatprep.subr.bf16.mxu0 %v7723_v2  ;;  %v7781_v4 = vld [vmem:[#allocation7 + $0x750] ss:$40 sps:$4 sm:$0xff]   ;;  %v7786_v2 = vld [vmem:[#allocation7 + $0x119c] ss:$40 sps:$4 sm:$0xff]  }
 0x297   : > { %5005 = vmatpush1.bf16.msra.mxu1 %v7718_v8  ;;  %v7789_v8 = vld [vmem:[#allocation7 + $0x7a4] ss:$40 sps:$4 sm:$0xff]  }
 0x298   : > { %5107 = vmatpush1.bf16.msra.mxu0 %v7721_v39  ;;  %5006 = vmatprep.subr.bf16.mxu1 %v7726_v11 }
 0x299   : > { %5108 = vmatprep.subr.bf16.mxu0 %v7729_v13 }
 0x29b   : > { %5007 = vmatpush1.bf16.msra.mxu1 %v7724_v14  ;;  %v7784_v14 = vld [vmem:[#allocation7 + $0x1198] ss:$40 sps:$4 sm:$0xff]  }
 0x29c   : > { %5109 = vmatpush1.bf16.msra.mxu0 %v7727_v15  ;;  %5008 = vmatprep.subr.bf16.mxu1 %v7732_v16  ;;  %v7787_v15 = vld [vmem:[#allocation7 + $0x7a0] ss:$40 sps:$4 sm:$0xff]  }
 0x29d   : > { %5110 = vmatprep.subr.bf16.mxu0 %v7735_v56  ;;  %v7792_v56 = vld [vmem:[#allocation7 + $0x11ec] ss:$40 sps:$4 sm:$0xff]  }
 0x29f   : > { %5009 = vmatpush1.bf16.msra.mxu1 %v7730_v47  ;;  %v7795_v47 = vld [vmem:[#allocation7 + $0x7f4] ss:$40 sps:$4 sm:$0xff]  }
 0x2a0   : > { %5111 = vmatpush1.bf16.msra.mxu0 %v7733_v57  ;;  %5029 = vmatprep.subr.bf16.mxu1 %v7738_v19  ;;  %v7790_v57 = vld [vmem:[#allocation7 + $0x11e8] ss:$40 sps:$4 sm:$0xff]  }
 0x2a1   : > { %5131 = vmatprep.subr.bf16.mxu0 %v7741_v20  ;;  %v7793_v19 = vld [vmem:[#allocation7 + $0x7f0] ss:$40 sps:$4 sm:$0xff]   ;;  %v7798_v20 = vld [vmem:[#allocation7 + $0x123c] ss:$40 sps:$4 sm:$0xff]  }
 0x2a2   : > { %5011 = vmatmul.mubr.bf16.vlgmr.msra.gmra.mrb[16].mxu1 %v8507_v12 }
 0x2a3   : > { %5113 = vmatmul.mubr.bf16.vlgmr.msra.gmra.mrb[16].mxu0 %v8520_v28  ;;  %5030 = vmatpush1.bf16.msra.mxu1 %v7736_v21  ;;  %v7759_v28 = vld [vmem:[#allocation7 + $0x614] ss:$40 sps:$4 sm:$0xff]   ;;  %v7801_v21 = vld [vmem:[#allocation7 + $0x844] ss:$40 sps:$4 sm:$0xff]  }
 0x2a4   : > { %5132 = vmatpush1.bf16.msra.mxu0 %v7739_v22  ;;  %5031 = vmatprep.subr.bf16.mxu1 %v7744_v23  ;;  %v7796_v22 = vld [vmem:[#allocation7 + $0x1238] ss:$40 sps:$4 sm:$0xff]  }
 0x2a5   : > { %5133 = vmatprep.subr.bf16.mxu0 %v7747_v24  ;;  %5020 = vmatprep.mubr.bf16.mxu1 %v8600_v26  ;;  %v7799_v23 = vld [vmem:[#allocation7 + $0x840] ss:$40 sps:$4 sm:$0xff]   ;;  %v7804_v24 = vld [vmem:[#allocation7 + $0x128c] ss:$40 sps:$4 sm:$0xff]  }
 0x2a6   : > { %5122 = vmatprep.mubr.bf16.mxu0 %v8534_v40  ;;  %v7765_v40 = vld [vmem:[#allocation7 + $0x664] ss:$40 sps:$4 sm:$0xff]  }
 0x2a7   : > { %5032 = vmatpush1.bf16.msra.mxu1 %v7742_v52  ;;  %v7807_v52 = vld [vmem:[#allocation7 + $0x894] ss:$40 sps:$4 sm:$0xff]  }
 0x2a8   : > { %5134 = vmatpush1.bf16.msra.mxu0 %v7745_v25  ;;  %5033 = vmatprep.subr.bf16.mxu1 %v7750_v6  ;;  %v7802_v25 = vld [vmem:[#allocation7 + $0x1288] ss:$40 sps:$4 sm:$0xff]  }
 0x2a9   : > { %5135 = vmatprep.subr.bf16.mxu0 %v7753_v27  ;;  %v7805_v6 = vld [vmem:[#allocation7 + $0x890] ss:$40 sps:$4 sm:$0xff]   ;;  %v7810_v27 = vld [vmem:[#allocation7 + $0x12dc] ss:$40 sps:$4 sm:$0xff]  }
 0x2aa   : > { %5021 = vmatmul.mubr.bf16.gmra.mrb[20].mxu1 %v8609_v35 }
 0x2ab   : > { %5123 = vmatmul.mubr.bf16.gmra.mrb[20].mxu0 %v8549_v53  ;;  %5034 = vmatpush1.bf16.msra.mxu1 %v7748_v33  ;;  %v7771_v53 = vld [vmem:[#allocation7 + $0x6b4] ss:$40 sps:$4 sm:$0xff]   ;;  %v7813_v33 = vld [vmem:[#allocation7 + $0x8e4] ss:$40 sps:$4 sm:$0xff]  }
 0x2ac   : > { %5136 = vmatpush1.bf16.msra.mxu0 %v7751_v49  ;;  %5035 = vmatprep.subr.bf16.mxu1 %v7756_v9  ;;  %v7808_v49 = vld [vmem:[#allocation7 + $0x12d8] ss:$40 sps:$4 sm:$0xff]  }
 0x2ad   : > { %5137 = vmatprep.subr.bf16.mxu0 %v7759_v28  ;;  %5061 = vmatprep.mubr.bf16.mxu1 %v8536_v41  ;;  %v7811_v9 = vld [vmem:[#allocation7 + $0x8e0] ss:$40 sps:$4 sm:$0xff]   ;;  %v7816_v28 = vld [vmem:[#allocation7 + $0x132c] ss:$40 sps:$4 sm:$0xff]  }
 0x2ae   : > { %5163 = vmatprep.mubr.bf16.mxu0 %v8488_v62 }
 0x2af   : > { %5036 = vmatpush1.bf16.msra.mxu1 %v7754_v18  ;;  %v7819_v18 = vld [vmem:[#allocation7 + $0x934] ss:$40 sps:$4 sm:$0xff]  }
 0x2b0   : > { %5138 = vmatpush1.bf16.msra.mxu0 %v7757_v34  ;;  %5037 = vmatprep.subr.bf16.mxu1 %v7762_v17  ;;  %v7814_v34 = vld [vmem:[#allocation7 + $0x1328] ss:$40 sps:$4 sm:$0xff]  }
 0x2b1   : > { %5139 = vmatprep.subr.bf16.mxu0 %v7765_v40  ;;  %v7817_v17 = vld [vmem:[#allocation7 + $0x930] ss:$40 sps:$4 sm:$0xff]   ;;  %v7822_v40 = vld [vmem:[#allocation7 + $0x137c] ss:$40 sps:$4 sm:$0xff]  }
 0x2b3   : > { %5038 = vmatpush1.bf16.msra.mxu1 %v7760_v38  ;;  %v7825_v38 = vld [vmem:[#allocation7 + $0x984] ss:$40 sps:$4 sm:$0xff]  }
 0x2b4   : > { %5140 = vmatpush1.bf16.msra.mxu0 %v7763_v5  ;;  %5039 = vmatprep.subr.bf16.mxu1 %v7768_v42  ;;  %v7820_v5 = vld [vmem:[#allocation7 + $0x1378] ss:$40 sps:$4 sm:$0xff]  }
 0x2b5   : > { %5141 = vmatprep.subr.bf16.mxu0 %v7771_v53  ;;  %v8701_v60 = vpop.f32.mrb[8].mxu1  ;;  %v7823_v42 = vld [vmem:[#allocation7 + $0x980] ss:$40 sps:$4 sm:$0xff]   ;;  %v7828_v53 = vld [vmem:[#allocation7 + $0x13cc] ss:$40 sps:$4 sm:$0xff]  }
 0x2b6   : > { %v8703_v61 = vpop.f32.mrb[9].mxu1 }
 0x2b7   : > { %v8705_v62 = vpop.f32.mrb[10].mxu1  ;;  %5040 = vmatpush1.bf16.msra.mxu1 %v7766_v43  ;;  %v7831_v43 = vld [vmem:[#allocation7 + $0x9d4] ss:$40 sps:$4 sm:$0xff]  }
 0x2b8   : > { %5142 = vmatpush1.bf16.msra.mxu0 %v7769_v44  ;;  %v8707_v1 = vpop.f32.mrb[11].mxu1  ;;  %5041 = vmatprep.subr.bf16.mxu1 %v7774_v51  ;;  %v7826_v44 = vld [vmem:[#allocation7 + $0x13c8] ss:$40 sps:$4 sm:$0xff]  }
 0x2b9   : > { %5143 = vmatprep.subr.bf16.mxu0 %v7777_v58  ;;  %v7829_v51 = vld [vmem:[#allocation7 + $0x9d0] ss:$40 sps:$4 sm:$0xff]   ;;  %v7834_v58 = vld [vmem:[#allocation7 + $0xa24] ss:$40 sps:$4 sm:$0xff]  }
 0x2bb   : > { %5042 = vmatpush1.bf16.msra.mxu1 %v7772_v63  ;;  %v7832_v63 = vld [vmem:[#allocation7 + $0xa20] ss:$40 sps:$4 sm:$0xff]  }
 0x2bc   : > { %5144 = vmatpush1.bf16.msra.mxu0 %v7775_v36  ;;  %5043 = vmatprep.subr.bf16.mxu1 %v7780_v37  ;;  %v7837_v36 = vld [vmem:[#allocation7 + $0xa74] ss:$40 sps:$4 sm:$0xff]   ;;  %v7835_v37 = vld [vmem:[#allocation7 + $0xa70] ss:$40 sps:$4 sm:$0xff]  }
 0x2bd   : > { %5145 = vmatprep.subr.bf16.mxu0 %v7783_v30  ;;  %v8709_v39 = vpop.f32.mrb[12].mxu1  ;;  %v7840_v30 = vld [vmem:[#allocation7 + $0xac4] ss:$40 sps:$4 sm:$0xff]  }
 0x2be   : > { %v8711_v11 = vpop.f32.mrb[13].mxu1 }
 0x2bf   : > { %v4669_v13 = vpop.f32.mrb[14].mxu1  ;;  %5044 = vmatpush1.bf16.msra.mxu1 %v7778_v3  ;;  %v7838_v3 = vld [vmem:[#allocation7 + $0xac0] ss:$40 sps:$4 sm:$0xff]  }
 0x2c0   : > { %5146 = vmatpush1.bf16.msra.mxu0 %v7781_v4  ;;  %v4670_v16 = vpop.f32.mrb[15].mxu1  ;;  %5045 = vmatprep.subr.bf16.mxu1 %v7786_v2  ;;  %v7843_v4 = vld [vmem:[#allocation7 + $0xb14] ss:$40 sps:$4 sm:$0xff]   ;;  %v7928_v2 = vld [vmem:[#allocation8 + $0x40] sm:$0xff]   ;;  %v7930_v13 = vld [vmem:[#allocation8 + $0x48] sm:$0xff]  }
 0x2c1   : > { %5147 = vmatprep.subr.bf16.mxu0 %v7789_v8  ;;  %v7929_v8 = vld [vmem:[#allocation8] sm:$0xff]  }
 0x2c2   : > { %v7844_v16 = vld [vmem:[#allocation7 + $0xb60] ss:$40 sps:$4 sm:$0xff]  }
 0x2c3   : > { %5046 = vmatpush1.bf16.msra.mxu1 %v7784_v14  ;;  %v7846_v14 = vld [vmem:[#allocation7 + $0xb64] ss:$40 sps:$4 sm:$0xff]  }
 0x2c4   : > { %5148 = vmatpush1.bf16.msra.mxu0 %v7787_v15  ;;  %5047 = vmatprep.subr.bf16.mxu1 %v7792_v56  ;;  %v7932_v15 = vld [vmem:[#allocation8 + $0x50] sm:$0xff]  }
 0x2c5   : > { %5149 = vmatprep.subr.bf16.mxu0 %v7795_v47  ;;  %v7849_v56 = vld [vmem:[#allocation7 + $0xbb4] ss:$40 sps:$4 sm:$0xff]  }
 0x2c6   : > { %v7934_v47 = vld [vmem:[#allocation8 + $0x58] sm:$0xff]  }
 0x2c7   : > { %5048 = vmatpush1.bf16.msra.mxu1 %v7790_v57  ;;  %v7847_v57 = vld [vmem:[#allocation7 + $0xbb0] ss:$40 sps:$4 sm:$0xff]  }
 0x2c8   : > { %5150 = vmatpush1.bf16.msra.mxu0 %v7793_v19  ;;  %5049 = vmatprep.subr.bf16.mxu1 %v7798_v20  ;;  %v7852_v19 = vld [vmem:[#allocation7 + $0xc04] ss:$40 sps:$4 sm:$0xff]  }
 0x2c9   : > { %5151 = vmatprep.subr.bf16.mxu0 %v7801_v21  ;;  %v7936_v20 = vld [vmem:[#allocation8 + $0x60] sm:$0xff]  }
 0x2ca   : > { %v7850_v21 = vld [vmem:[#allocation7 + $0xc00] ss:$40 sps:$4 sm:$0xff]  }
 0x2cb   : > { %5050 = vmatpush1.bf16.msra.mxu1 %v7796_v22  ;;  %v7855_v22 = vld [vmem:[#allocation7 + $0xc54] ss:$40 sps:$4 sm:$0xff]  }
 0x2cc   : > { %5152 = vmatpush1.bf16.msra.mxu0 %v7799_v23  ;;  %5051 = vmatprep.subr.bf16.mxu1 %v7804_v24  ;;  %v7937_v23 = vld [vmem:[#allocation8 + $0x20] sm:$0xff]   ;;  %v7938_v24 = vld [vmem:[#allocation8 + $0x68] sm:$0xff]  }
 0x2cd   : > { %5153 = vmatprep.subr.bf16.mxu0 %v7807_v52  ;;  %v7853_v52 = vld [vmem:[#allocation7 + $0xc50] ss:$40 sps:$4 sm:$0xff]  }
 0x2cf   : > { %5052 = vmatpush1.bf16.msra.mxu1 %v7802_v25  ;;  %v7858_v25 = vld [vmem:[#allocation7 + $0xca4] ss:$40 sps:$4 sm:$0xff]  }
 0x2d0   : > { %5154 = vmatpush1.bf16.msra.mxu0 %v7805_v6  ;;  %5053 = vmatprep.subr.bf16.mxu1 %v7810_v27  ;;  %v7939_v6 = vld [vmem:[#allocation8 + $0x28] sm:$0xff]  }
 0x2d1   : > { %5155 = vmatprep.subr.bf16.mxu0 %v7813_v33  ;;  %v7856_v27 = vld [vmem:[#allocation7 + $0xca0] ss:$40 sps:$4 sm:$0xff]   ;;  %v7861_v33 = vld [vmem:[#allocation7 + $0xcf4] ss:$40 sps:$4 sm:$0xff]  }
 0x2d3   : > { %5054 = vmatpush1.bf16.msra.mxu1 %v7808_v49  ;;  %v7859_v49 = vld [vmem:[#allocation7 + $0xcf0] ss:$40 sps:$4 sm:$0xff]  }
 0x2d4   : > { %5156 = vmatpush1.bf16.msra.mxu0 %v7811_v9  ;;  %5055 = vmatprep.subr.bf16.mxu1 %v7816_v28  ;;  %v7864_v9 = vld [vmem:[#allocation7 + $0xd44] ss:$40 sps:$4 sm:$0xff]   ;;  %v7862_v28 = vld [vmem:[#allocation7 + $0xd40] ss:$40 sps:$4 sm:$0xff]  }
 0x2d5   : > { %5157 = vmatprep.subr.bf16.mxu0 %v7819_v18  ;;  %v7867_v18 = vld [vmem:[#allocation7 + $0xd94] ss:$40 sps:$4 sm:$0xff]  }
 0x2d7   : > { %5056 = vmatpush1.bf16.msra.mxu1 %v7814_v34  ;;  %v7865_v34 = vld [vmem:[#allocation7 + $0xd90] ss:$40 sps:$4 sm:$0xff]  }
 0x2d8   : > { %5158 = vmatpush1.bf16.msra.mxu0 %v7817_v17  ;;  %5057 = vmatprep.subr.bf16.mxu1 %v7822_v40  ;;  %v7870_v17 = vld [vmem:[#allocation7 + $0xde4] ss:$40 sps:$4 sm:$0xff]   ;;  %v7868_v40 = vld [vmem:[#allocation7 + $0xde0] ss:$40 sps:$4 sm:$0xff]  }
 0x2d9   : > { %5159 = vmatprep.subr.bf16.mxu0 %v7825_v38  ;;  %v7873_v38 = vld [vmem:[#allocation7 + $0xe34] ss:$40 sps:$4 sm:$0xff]  }
 0x2db   : > { %5058 = vmatpush1.bf16.msra.mxu1 %v7820_v5  ;;  %v7871_v5 = vld [vmem:[#allocation7 + $0xe30] ss:$40 sps:$4 sm:$0xff]  }
 0x2dc   : > { %5160 = vmatpush1.bf16.msra.mxu0 %v7823_v42  ;;  %5059 = vmatprep.subr.bf16.mxu1 %v7828_v53  ;;  %v7876_v42 = vld [vmem:[#allocation7 + $0xe84] ss:$40 sps:$4 sm:$0xff]   ;;  %v7874_v53 = vld [vmem:[#allocation7 + $0xe80] ss:$40 sps:$4 sm:$0xff]  }
 0x2dd   : > { %5161 = vmatprep.subr.bf16.mxu0 %v7831_v43  ;;  %v7879_v43 = vld [vmem:[#allocation7 + $0xed4] ss:$40 sps:$4 sm:$0xff]  }
 0x2df   : > { %5060 = vmatpush1.bf16.msra.mxu1 %v7826_v44  ;;  %v7877_v44 = vld [vmem:[#allocation7 + $0xed0] ss:$40 sps:$4 sm:$0xff]  }
 0x2e0   : > { %5162 = vmatpush1.bf16.msra.mxu0 %v7829_v51  ;;  %6664 = vmatprep.subr.bf16.mxu1 %v7928_v2  ;;  %v7882_v51 = vld [vmem:[#allocation7 + $0xf24] ss:$40 sps:$4 sm:$0xff]  }
 0x2e1   : > { %5182 = vmatprep.subr.bf16.mxu0 %v7834_v58  ;;  %v7880_v58 = vld [vmem:[#allocation7 + $0xf20] ss:$40 sps:$4 sm:$0xff]   ;;  %v7894_v2 = vld [vmem:[#allocation7 + $0x1064] ss:$40 sps:$4 sm:$0xff]  }
 0x2e2   : > { %5062 = vmatmul.mubr.bf16.vlgmr.msra.gmra.mrb[16].mxu1 %v8544_v46 }
 0x2e3   : > { %5164 = vmatmul.mubr.bf16.vlgmr.msra.gmra.mrb[16].mxu0 %v8522_v29  ;;  %5071 = vmatprep.mubr.bf16.mxu1 %v8617_v50  ;;  %v7841_v29 = vld [vmem:[#allocation7 + $0xb10] ss:$40 sps:$4 sm:$0xff]  }
 0x2e4   : > { %5183 = vmatpush1.bf16.msra.mxu0 %v7832_v63  ;;  %5173 = vmatprep.mubr.bf16.mxu0 %v8567_v48  ;;  %v7931_v48 = vld [vmem:[#allocation8 + $0x8] sm:$0xff]   ;;  %v7885_v63 = vld [vmem:[#allocation7 + $0xf74] ss:$40 sps:$4 sm:$0xff]  }
 0x2e5   : > { %5184 = vmatprep.subr.bf16.mxu0 %v7837_v36  ;;  %6665 = vmatpush3.bf16.msra.mxu1 %v7929_v8  ;;  %v7883_v36 = vld [vmem:[#allocation7 + $0xf70] ss:$40 sps:$4 sm:$0xff]   ;;  %v7897_v8 = vld [vmem:[#allocation7 + $0x10b4] ss:$40 sps:$4 sm:$0xff]  }
 0x2e6   : > { %6666 = vmatprep.subr.bf16.mxu1 %v7930_v13  ;;  %v7900_v13 = vld [vmem:[#allocation7 + $0x1104] ss:$40 sps:$4 sm:$0xff]  }
 0x2e8   : > { %5185 = vmatpush1.bf16.msra.mxu0 %v7835_v37  ;;  %v7888_v37 = vld [vmem:[#allocation7 + $0xfc4] ss:$40 sps:$4 sm:$0xff]  }
 0x2e9   : > { %5186 = vmatprep.subr.bf16.mxu0 %v7840_v30  ;;  %6667 = vmatpush3.bf16.msra.mxu1 %v7931_v48  ;;  %v7886_v30 = vld [vmem:[#allocation7 + $0xfc0] ss:$40 sps:$4 sm:$0xff]  }
 0x2ea   : > { %5072 = vmatmul.mubr.bf16.gmra.mrb[20].mxu1 %v8625_v54  ;;  %6668 = vmatprep.subr.bf16.mxu1 %v7932_v15  ;;  %v7941_v15 = vld [vmem:[#allocation8 + $0x30] sm:$0xff]  }
 0x2eb   : > { %5174 = vmatmul.mubr.bf16.gmra.mrb[20].mxu0 %v8583_v31  ;;  %v7933_v31 = vld [vmem:[#allocation8 + $0x10] sm:$0xff]  }
 0x2ec   : > { %5187 = vmatpush1.bf16.msra.mxu0 %v7838_v3  ;;  %5214 = vmatprep.mubr.bf16.mxu0 %v8586_v32  ;;  %v7935_v32 = vld [vmem:[#allocation8 + $0x18] sm:$0xff]  }
 0x2ed   : > { %5188 = vmatprep.subr.bf16.mxu0 %v7843_v4  ;;  %6669 = vmatpush3.bf16.msra.mxu1 %v7933_v31  ;;  %v7891_v3 = vld [vmem:[#allocation7 + $0x1014] ss:$40 sps:$4 sm:$0xff]   ;;  %v7889_v4 = vld [vmem:[#allocation7 + $0x1010] ss:$40 sps:$4 sm:$0xff]  }
 0x2ee   : > { %6670 = vmatprep.subr.bf16.mxu1 %v7934_v47  ;;  %v7903_v47 = vld [vmem:[#allocation7 + $0x1154] ss:$40 sps:$4 sm:$0xff]  }
 0x2f0   : > { %5189 = vmatpush1.bf16.msra.mxu0 %v7841_v29 }
 0x2f1   : > { %5190 = vmatprep.subr.bf16.mxu0 %v7846_v14  ;;  %6671 = vmatpush3.bf16.msra.mxu1 %v7935_v32  ;;  %v7940_v14 = vld [vmem:[#allocation8 + $0x70] sm:$0xff]  }
 0x2f2   : > { %6672 = vmatprep.subr.bf16.mxu1 %v7936_v20  ;;  %v7942_v20 = vld [vmem:[#allocation8 + $0x78] sm:$0xff]  }
 0x2f4   : > { %5191 = vmatpush1.bf16.msra.mxu0 %v7844_v16 }
 0x2f5   : > { %5192 = vmatprep.subr.bf16.mxu0 %v7849_v56  ;;  %6673 = vmatpush3.bf16.msra.mxu1 %v7937_v23  ;;  %v7898_v56 = vld [vmem:[#allocation7 + $0x1100] ss:$40 sps:$4 sm:$0xff]   ;;  %v7906_v23 = vld [vmem:[#allocation7 + $0x11a4] ss:$40 sps:$4 sm:$0xff]  }
 0x2f6   : > { %6674 = vmatprep.subr.bf16.mxu1 %v7938_v24 }
 0x2f8   : > { %5193 = vmatpush1.bf16.msra.mxu0 %v7847_v57  ;;  %v5289_v57 = vmul.f32 %v8674_v59, %v8674_v59  ;;  %v5294_v59 = vmul.f32 %v8680_v7, %v8680_v7  ;;  %v7913_v7 = vld [vmem:[#allocation7 + $0x1290] ss:$40 sps:$4 sm:$0xff]  }
 0x2f9   : > { %5194 = vmatprep.subr.bf16.mxu0 %v7852_v19  ;;  %6675 = vmatpush3.bf16.msra.mxu1 %v7939_v6 }
 0x2fa   : > { %6676 = vmatprep.subr.bf16.mxu1 %v7940_v14 }
 0x2fc   : > { %5195 = vmatpush1.bf16.msra.mxu0 %v7850_v21  ;;  %v7943_v21 = vld [vmem:[#allocation8 + $0x38] sm:$0xff]  }
 0x2fd   : > { %5196 = vmatprep.subr.bf16.mxu0 %v7855_v22  ;;  %6677 = vmatpush3.bf16.msra.mxu1 %v7941_v15 }
 0x2fe   : > { %6678 = vmatprep.subr.bf16.mxu1 %v7942_v20 }
 0x300   : > { %5197 = vmatpush1.bf16.msra.mxu0 %v7853_v52 }
 0x301   : > { %5198 = vmatprep.subr.bf16.mxu0 %v7858_v25  ;;  %6679 = vmatpush3.bf16.msra.mxu1 %v7943_v21 }
 0x304   : > { %5199 = vmatpush1.bf16.msra.mxu0 %v7856_v27 }
 0x305   : > { %5200 = vmatprep.subr.bf16.mxu0 %v7861_v33  ;;  %v7904_v33 = vld [vmem:[#allocation7 + $0x11a0] ss:$40 sps:$4 sm:$0xff]  }
 0x308   : > { %5201 = vmatpush1.bf16.msra.mxu0 %v7859_v49 }
 0x309   : > { %5202 = vmatprep.subr.bf16.mxu0 %v7864_v9  ;;  %v7909_v9 = vld [vmem:[#allocation7 + $0x11f4] ss:$40 sps:$4 sm:$0xff]  }
 0x30c   : > { %5203 = vmatpush1.bf16.msra.mxu0 %v7862_v28 }
 0x30d   : > { %5204 = vmatprep.subr.bf16.mxu0 %v7867_v18  ;;  %v7907_v18 = vld [vmem:[#allocation7 + $0x11f0] ss:$40 sps:$4 sm:$0xff]  }
 0x310   : > { %5205 = vmatpush1.bf16.msra.mxu0 %v7865_v34  ;;  %v7912_v34 = vld [vmem:[#allocation7 + $0x1244] ss:$40 sps:$4 sm:$0xff]  }
 0x311   : > { %5206 = vmatprep.subr.bf16.mxu0 %v7870_v17  ;;  %v7910_v17 = vld [vmem:[#allocation7 + $0x1240] ss:$40 sps:$4 sm:$0xff]  }
 0x314   : > { %5207 = vmatpush1.bf16.msra.mxu0 %v7868_v40  ;;  %v7944_v40 = vld [vmem:[#allocation8 + $0xc0] sm:$0xff]  }
 0x315   : > { %5208 = vmatprep.subr.bf16.mxu0 %v7873_v38  ;;  %v7915_v38 = vld [vmem:[#allocation7 + $0x1294] ss:$40 sps:$4 sm:$0xff]   ;;  %6692 = vmatprep.subr.bf16.mxu1 %v7944_v40  ;;  %v5287_v40 = vmul.f32 %v8703_v61, %v8703_v61 }
 0x318   : > { %5209 = vmatpush1.bf16.msra.mxu0 %v7871_v5  ;;  %v7918_v5 = vld [vmem:[#allocation7 + $0x12e4] ss:$40 sps:$4 sm:$0xff]  }
 0x319   : > { %5210 = vmatprep.subr.bf16.mxu0 %v7876_v42  ;;  %v7916_v42 = vld [vmem:[#allocation7 + $0x12e0] ss:$40 sps:$4 sm:$0xff]  }
 0x31c   : > { %5211 = vmatpush1.bf16.msra.mxu0 %v7874_v53  ;;  %v7921_v53 = vld [vmem:[#allocation7 + $0x1334] ss:$40 sps:$4 sm:$0xff]  }
 0x31d   : > { %5212 = vmatprep.subr.bf16.mxu0 %v7879_v43  ;;  %v7919_v43 = vld [vmem:[#allocation7 + $0x1330] ss:$40 sps:$4 sm:$0xff]  }
 0x320   : > { %5213 = vmatpush1.bf16.msra.mxu0 %v7877_v44  ;;  %v7924_v44 = vld [vmem:[#allocation7 + $0x1384] ss:$40 sps:$4 sm:$0xff]  }
 0x321   : > { %5233 = vmatprep.subr.bf16.mxu0 %v7882_v51  ;;  %v7922_v51 = vld [vmem:[#allocation7 + $0x1380] ss:$40 sps:$4 sm:$0xff]  }
 0x323   : > { %5215 = vmatmul.mubr.bf16.vlgmr.msra.gmra.mrb[16].mxu0 %v8507_v12  ;;  %v7892_v12 = vld [vmem:[#allocation7 + $0x1060] ss:$40 sps:$4 sm:$0xff]  }
 0x324   : > { %5234 = vmatpush1.bf16.msra.mxu0 %v7880_v58  ;;  %5224 = vmatprep.mubr.bf16.mxu0 %v8600_v26  ;;  %v7895_v26 = vld [vmem:[#allocation7 + $0x10b0] ss:$40 sps:$4 sm:$0xff]   ;;  %v7927_v58 = vld [vmem:[#allocation7 + $0x13d4] ss:$40 sps:$4 sm:$0xff]  }
 0x325   : > { %5235 = vmatprep.subr.bf16.mxu0 %v7885_v63  ;;  %v7925_v63 = vld [vmem:[#allocation7 + $0x13d0] ss:$40 sps:$4 sm:$0xff]  }
 0x328   : > { %5236 = vmatpush1.bf16.msra.mxu0 %v7883_v36 }
 0x329   : > { %5237 = vmatprep.subr.bf16.mxu0 %v7888_v37  ;;  %v5285_v37 = vmul.f32 %v8671_v55, %v8671_v55 }
 0x32b   : > { %5225 = vmatmul.mubr.bf16.gmra.mrb[20].mxu0 %v8609_v35  ;;  %v5284_v35 = vmul.f32 %v8668_v45, %v8668_v45  ;;  %v7901_v45 = vld [vmem:[#allocation7 + $0x1150] ss:$40 sps:$4 sm:$0xff]  }
 0x32c   : > { %5238 = vmatpush1.bf16.msra.mxu0 %v7886_v30  ;;  %5265 = vmatprep.mubr.bf16.mxu0 %v8536_v41 }
 0x32d   : > { %5239 = vmatprep.subr.bf16.mxu0 %v7891_v3 }
 0x330   : > { %5240 = vmatpush1.bf16.msra.mxu0 %v7889_v4  ;;  %v5286_v4 = vmul.f32 %v8701_v60, %v8701_v60 }
 0x331   : > { %5241 = vmatprep.subr.bf16.mxu0 %v7894_v2 }
 0x334   : > { %5242 = vmatpush1.bf16.msra.mxu0 %v7892_v12 }
 0x335   : > { %5243 = vmatprep.subr.bf16.mxu0 %v7897_v8  ;;  %v5290_v8 = vmul.f32 %v8677_v0, %v8677_v0  ;;  %v5295_v0 = vmul.f32 %v8683_v10, %v8683_v10  ;;  %v7948_v10 = vld [vmem:[#allocation8 + $0xd0] sm:$0xff]  }
 0x336   : > { %v8724_v29 = vpop.f32.mrb[8].mxu0 }
 0x337   : > { %v4861_v48 = vpop.f32.mrb[9].mxu0 }
 0x338   : > { %v5299_v16 = vmul.f32 %v4861_v48, %v4861_v48  ;;  %v8728_v41 = vpop.f32.mrb[10].mxu0  ;;  %5244 = vmatpush1.bf16.msra.mxu0 %v7895_v26 }
 0x339   : > { %v4865_v31 = vpop.f32.mrb[11].mxu0  ;;  %5245 = vmatprep.subr.bf16.mxu0 %v7900_v13 }
 0x33a   : > { %v8732_v19 = vadd.f32 %v5299_v16, %v5284_v35  ;;  %v5304_v32 = vmul.f32 %v4865_v31, %v4865_v31  ;;  %v7945_v35 = vld [vmem:[#allocation8 + $0x80] sm:$0xff]  }
 0x33c   : > { %v8734_v22 = vadd.f32 %v5304_v32, %v5289_v57  ;;  %5246 = vmatpush1.bf16.msra.mxu0 %v7898_v56  ;;  %v7946_v56 = vld [vmem:[#allocation8 + $0xc8] sm:$0xff]  }
 0x33d   : > { %5247 = vmatprep.subr.bf16.mxu0 %v7903_v47 }
 0x33e   : > { %v5329_v24 = vpack.c.bf16 %v8734_v22, %v8732_v19  ;;  %v8738_v52 = vpop.f32.mrb[12].mxu0  ;;  %v7951_v19 = vld [vmem:[#allocation8 + $0x98] sm:$0xff]   ;;  %v7952_v22 = vld [vmem:[#allocation8 + $0xe0] sm:$0xff]  }
 0x33f   : > { %v4871_v25 = vpop.f32.mrb[13].mxu0 }
 0x340   : > { %v5309_v6 = vmul.f32 %v4871_v25, %v4871_v25  ;;  %v4873_v27 = vpop.f32.mrb[14].mxu0  ;;  %5248 = vmatpush1.bf16.msra.mxu0 %v7901_v45  ;;  %v7947_v45 = vld [vmem:[#allocation8 + $0x88] sm:$0xff]  }
 0x341   : > { %v4874_v49 = vpop.f32.mrb[15].mxu0  ;;  %5249 = vmatprep.subr.bf16.mxu0 %v7906_v23  ;;  %v7954_v27 = vld [vmem:[#allocation8 + $0xe8] sm:$0xff]  }
 0x342   : > { %v8742_v28 = vadd.f32 %v5309_v6, %v5294_v59  ;;  %v7949_v59 = vld [vmem:[#allocation8 + $0x90] sm:$0xff]   ;;  %v7950_v6 = vld [vmem:[#allocation8 + $0xd8] sm:$0xff]  }
 0x343   : > { %v7956_v49 = vld [vmem:[#allocation8 + $0xf0] sm:$0xff]  }
 0x344   : > { %5250 = vmatpush1.bf16.msra.mxu0 %v7904_v33  ;;  %v7955_v33 = vld [vmem:[#allocation8 + $0xa8] sm:$0xff]  }
 0x345   : > { %5251 = vmatprep.subr.bf16.mxu0 %v7909_v9  ;;  %v7957_v9 = vld [vmem:[#allocation8 + $0xb0] sm:$0xff]  }
 0x348   : > { %5252 = vmatpush1.bf16.msra.mxu0 %v7907_v18  ;;  %v7958_v18 = vld [vmem:[#allocation8 + $0xf8] sm:$0xff]  }
 0x349   : > { %5253 = vmatprep.subr.bf16.mxu0 %v7912_v34  ;;  %v7960_v34 = vld [vmem:[#allocation8 + $0x100] sm:$0xff]  }
 0x34c   : > { %5254 = vmatpush1.bf16.msra.mxu0 %v7910_v17 }
 0x34d   : > { %5255 = vmatprep.subr.bf16.mxu0 %v7915_v38 }
 0x350   : > { %5256 = vmatpush1.bf16.msra.mxu0 %v7913_v7 }
 0x351   : > { %5257 = vmatprep.subr.bf16.mxu0 %v7918_v5  ;;  %v5288_v5 = vmul.f32 %v8724_v29, %v8724_v29  ;;  %v5297_v29 = vmul.f32 %v8711_v11, %v8711_v11 }
 0x354   : > { %5258 = vmatpush1.bf16.msra.mxu0 %v7916_v42 }
 0x355   : > { %5259 = vmatprep.subr.bf16.mxu0 %v7921_v53 }
 0x358   : > { %5260 = vmatpush1.bf16.msra.mxu0 %v7919_v43  ;;  %v5292_v43 = vmul.f32 %v8707_v1, %v8707_v1  ;;  %v5298_v1 = vmul.f32 %v8738_v52, %v8738_v52  ;;  %v7963_v52 = vld [vmem:[#allocation8 + $0x118] sm:$0xff]  }
 0x359   : > { %5261 = vmatprep.subr.bf16.mxu0 %v7924_v44 }
 0x35c   : > { %5262 = vmatpush1.bf16.msra.mxu0 %v7922_v51 }
 0x35d   : > { %5263 = vmatprep.subr.bf16.mxu0 %v7927_v58 }
 0x360   : > { %5264 = vmatpush1.bf16.msra.mxu0 %v7925_v63  ;;  %v5293_v63 = vmul.f32 %v8728_v41, %v8728_v41 }
 0x363   : > { %5266 = vmatmul.mubr.bf16.vlgmr.msra.gmra.mrb[16].mxu0 %v8544_v46 }
 0x364   : > { %5275 = vmatprep.mubr.bf16.mxu0 %v8617_v50  ;;  %v5291_v50 = vmul.f32 %v8705_v62, %v8705_v62  ;;  %v5296_v62 = vmul.f32 %v8709_v39, %v8709_v39  ;;  %v5334_v39 = vpack.c.bf16 %v8742_v28, %v8742_v28  ;;  %v7959_v28 = vld [vmem:[#allocation8 + $0xb8] sm:$0xff]  }
 0x36b   : > { %5276 = vmatmul.mubr.bf16.gmra.mrb[20].mxu0 %v8625_v54 }
 0x3b5   : > { %v5063_v36 = vpop.f32.mrb[16].mxu1 }
 0x3b6   : > { %v5300_v30 = vmul.f32 %v5063_v36, %v5063_v36  ;;  %v5065_v3 = vpop.f32.mrb[17].mxu1 }
 0x3b7   : > { %v5301_v2 = vmul.f32 %v5065_v3, %v5065_v3  ;;  %v5067_v12 = vpop.f32.mrb[18].mxu1 }
 0x3b8   : > { %v5315_v26 = vadd.f32 %v5300_v30, %v5285_v37  ;;  %v5305_v46 = vmul.f32 %v5067_v12, %v5067_v12  ;;  %v5069_v13 = vpop.f32.mrb[19].mxu1 }
 0x3b9   : > { %v8755_v54 = vadd.f32 %v5301_v2, %v5286_v4  ;;  %v5306_v14 = vmul.f32 %v5069_v13, %v5069_v13  ;;  %v7961_v2 = vld [vmem:[#allocation8 + $0x108] sm:$0xff]  }
 0x3ba   : > { %v5320_v55 = vadd.f32 %v5305_v46, %v5290_v8 }
 0x3bb   : > { %v8757_v48 = vadd.f32 %v5306_v14, %v5291_v50 }
 0x3bc   : > { %v5330_v15 = vpack.c.bf16 %v5320_v55, %v5315_v26  ;;  %v7962_v55 = vld [vmem:[#allocation8 + $0x110] sm:$0xff]  }
 0x3bd   : > { %v5331_v60 = vpack.c.bf16 %v8757_v48, %v8755_v54  ;;  %v5073_v16 = vpop.f32.mrb[20].mxu1  ;;  %v7964_v54 = vld [vmem:[#allocation8 + $0x120] sm:$0xff]   ;;  %v7965_v48 = vld [vmem:[#allocation8 + $0x128] sm:$0xff]  }
 0x3be   : > { %v5310_v31 = vmul.f32 %v5073_v16, %v5073_v16  ;;  %v5075_v47 = vpop.f32.mrb[21].mxu1  ;;  %5691 = vmatprep.mubr.bf16.mxu1 %v5330_v15 }
 0x3bf   : > { %v5311_v57 = vmul.f32 %v5075_v47, %v5075_v47  ;;  %v5077_v32 = vpop.f32.mrb[22].mxu1  ;;  %5692 = vmatmul.mubr.bf16.vlgmr.msra.gmra.mrb[24].mxu1 %v5329_v24  ;;  %v7953_v24 = vld [vmem:[#allocation8 + $0xa0] sm:$0xff]  }
 0x3c0   : > { %v5325_v20 = vadd.f32 %v5310_v31, %v5295_v0  ;;  %v5078_v21 = vpop.f32.mrb[23].mxu1  ;;  %6693 = vmatpush3.bf16.msra.mxu1 %v7945_v35  ;;  %v7966_v35 = vld [vmem:[#allocation8 + $0x130] sm:$0xff]  }
 0x3c1   : > { %v8768_v23 = vadd.f32 %v5311_v57, %v5296_v62  ;;  %6694 = vmatprep.subr.bf16.mxu1 %v7946_v56 }
 0x3c2   : > { %v5335_v25 = vpack.c.bf16 %v5325_v20, %v5325_v20 }
 0x3c3   : > { %v5336_v11 = vpack.c.bf16 %v8768_v23, %v8768_v23 }
 0x3c4   : > { %5699 = vmatprep.mubr.bf16.mxu1 %v5335_v25  ;;  %6695 = vmatpush3.bf16.msra.mxu1 %v7947_v45 }
 0x3c5   : > { %6696 = vmatprep.subr.bf16.mxu1 %v7948_v10 }
 0x3c7   : > { %5700 = vmatmul.mubr.bf16.gmra.mrb[28].mxu1 %v5334_v39 }
 0x3c8   : > { %6697 = vmatpush3.bf16.msra.mxu1 %v7949_v59 }
 0x3c9   : > { %6698 = vmatprep.subr.bf16.mxu1 %v7950_v6 }
 0x3cc   : > { %6699 = vmatpush3.bf16.msra.mxu1 %v7951_v19 }
 0x3cd   : > { %6700 = vmatprep.subr.bf16.mxu1 %v7952_v22 }
 0x3d0   : > { %6701 = vmatpush3.bf16.msra.mxu1 %v7953_v24 }
 0x3d1   : > { %6702 = vmatprep.subr.bf16.mxu1 %v7954_v27 }
 0x3d4   : > { %6703 = vmatpush3.bf16.msra.mxu1 %v7955_v33 }
 0x3d5   : > { %6704 = vmatprep.subr.bf16.mxu1 %v7956_v49 }
 0x3d8   : > { %6705 = vmatpush3.bf16.msra.mxu1 %v7957_v9 }
 0x3d9   : > { %6706 = vmatprep.subr.bf16.mxu1 %v7958_v18 }
 0x3dc   : > { %6707 = vmatpush3.bf16.msra.mxu1 %v7959_v28 }
 0x3dd   : > { %6730 = vmatprep.subr.bf16.mxu1 %v7960_v34 }
 0x436   : > { %v5267_v17 = vpop.f32.mrb[16].mxu0 }
 0x437   : > { %v5302_v38 = vmul.f32 %v5267_v17, %v5267_v17  ;;  %v5269_v7 = vpop.f32.mrb[17].mxu0 }
 0x438   : > { %v5303_v42 = vmul.f32 %v5269_v7, %v5269_v7  ;;  %v5271_v53 = vpop.f32.mrb[18].mxu0 }
 0x439   : > { %v5317_v44 = vadd.f32 %v5302_v38, %v5287_v40  ;;  %v5307_v51 = vmul.f32 %v5271_v53, %v5271_v53  ;;  %v5273_v58 = vpop.f32.mrb[19].mxu0 }
 0x43a   : > { %v5318_v36 = vadd.f32 %v5303_v42, %v5288_v5  ;;  %v5308_v37 = vmul.f32 %v5273_v58, %v5273_v58 }
 0x43b   : > { %v5322_v30 = vadd.f32 %v5307_v51, %v5292_v43 }
 0x43c   : > { %v5323_v61 = vadd.f32 %v5308_v37, %v5293_v63 }
 0x43d   : > { %v5332_v3 = vpack.c.bf16 %v5322_v30, %v5317_v44 }
 0x43e   : > { %v5277_v4 = vpop.f32.mrb[20].mxu0  ;;  %v5333_v12 = vpack.c.bf16 %v5323_v61, %v5318_v36 }
 0x43f   : > { %v5312_v8 = vmul.f32 %v5277_v4, %v5277_v4  ;;  %v5279_v26 = vpop.f32.mrb[21].mxu0  ;;  %5739 = vmatprep.mubr.bf16.mxu1 %v5332_v3 }
 0x440   : > { %v5313_v46 = vmul.f32 %v5279_v26, %v5279_v26  ;;  %v5281_v13 = vpop.f32.mrb[22].mxu0  ;;  %5740 = vmatmul.mubr.bf16.vlgmr.msra.gmra.mrb[32].mxu1 %v5331_v60  ;;  %v7967_v60 = vld [vmem:[#allocation8 + $0x138] sm:$0xff]  }
 0x441   : > { %v5327_v41 = vadd.f32 %v5312_v8, %v5297_v29  ;;  %6731 = vmatpush3.bf16.msra.mxu1 %v7960_v34  ;;  %v5282_v50 = vpop.f32.mrb[23].mxu0 }
 0x442   : > { %v5328_v14 = vadd.f32 %v5313_v46, %v5298_v1  ;;  %6732 = vmatprep.subr.bf16.mxu1 %v7961_v2 }
 0x443   : > { %v5337_v15 = vpack.c.bf16 %v5327_v41, %v5327_v41 }
 0x444   : > { %v5338_v16 = vpack.c.bf16 %v5328_v14, %v5328_v14 }
 0x445   : > { %6733 = vmatpush3.bf16.msra.mxu1 %v7961_v2  ;;  %5747 = vmatprep.mubr.bf16.mxu1 %v5337_v15 }
 0x446   : > { %6734 = vmatprep.subr.bf16.mxu1 %v7962_v55 }
 0x448   : > { %5748 = vmatmul.mubr.bf16.gmra.mrb[36].mxu1 %v5336_v11 }
 0x449   : > { %6735 = vmatpush3.bf16.msra.mxu1 %v7962_v55  ;;  %6746 = vmatprep.mubr.bf16.mxu1 %v5333_v12 }
 0x44a   : > { %6736 = vmatprep.subr.bf16.mxu1 %v7963_v52 }
 0x44d   : > { %6737 = vmatpush3.bf16.msra.mxu1 %v7963_v52 }
 0x44e   : > { %6738 = vmatprep.subr.bf16.mxu1 %v7964_v54 }
 0x451   : > { %6739 = vmatpush3.bf16.msra.mxu1 %v7964_v54 }
 0x452   : > { %6740 = vmatprep.subr.bf16.mxu1 %v7965_v48 }
 0x455   : > { %6741 = vmatpush3.bf16.msra.mxu1 %v7965_v48 }
 0x456   : > { %6742 = vmatprep.subr.bf16.mxu1 %v7966_v35 }
 0x459   : > { %6743 = vmatpush3.bf16.msra.mxu1 %v7966_v35 }
 0x45a   : > { %6744 = vmatprep.subr.bf16.mxu1 %v7967_v60 }
 0x45d   : > { %6745 = vmatpush3.bf16.msra.mxu1 %v7967_v60 }
 0x460   : > { %6747 = vmatmul.mubr.bf16.vlgmr.msra.gmra.mrb[40].mxu1 %v5338_v16 }
 0x492   : > { %v6680_v56 = vpop.f32.mrb[24].mxu1 }
 0x493   : > { %v6681_v0 = vpop.f32.mrb[25].mxu1 }
 0x494   : > { %v6682_v31 = vadd.f32 %v6681_v0, %v6680_v56  ;;  %v6683_v47 = vpop.f32.mrb[26].mxu1 }
 0x495   : > { %v6684_v62 = vpop.f32.mrb[27].mxu1 }
 0x496   : > { %v6685_v57 = vadd.f32 %v6684_v62, %v6683_v47 }
 0x49a   : > { %v6686_v32 = vpop.f32.mrb[28].mxu1 }
 0x49b   : > { %v6687_v20 = vpop.f32.mrb[29].mxu1 }
 0x49c   : > { %v6688_v21 = vadd.f32 %v6687_v20, %v6686_v32  ;;  %v6689_v45 = vpop.f32.mrb[30].mxu1 }
 0x49d   : > { %v6690_v23 = vpop.f32.mrb[31].mxu1 }
 0x513   : > { %v6708_v10 = vpop.f32.mrb[32].mxu1 }
 0x514   : > { %v6709_v25 = vpop.f32.mrb[33].mxu1 }
 0x515   : > { %v6710_v59 = vadd.f32 %v6709_v25, %v6708_v10  ;;  %v6711_v39 = vpop.f32.mrb[34].mxu1 }
 0x516   : > { %v6712_v6 = vpop.f32.mrb[35].mxu1 }
 0x517   : > { %v6713_v19 = vadd.f32 %v6712_v6, %v6711_v39  ;;  %v5742_v22 = vadd.f32 %v6710_v59, %v6682_v31 }
 0x519   : > { %v5745_v24 = vadd.f32 %v6713_v19, %v6685_v57 }
 0x51b   : > { %v6714_v27 = vpop.f32.mrb[36].mxu1 }
 0x51c   : > { %v6715_v33 = vpop.f32.mrb[37].mxu1 }
 0x51d   : > { %v6716_v49 = vadd.f32 %v6715_v33, %v6714_v27  ;;  %v6717_v9 = vpop.f32.mrb[38].mxu1 }
 0x51e   : > { %v6718_v18 = vpop.f32.mrb[39].mxu1 }
 0x51f   : > { %v5750_v28 = vadd.f32 %v6716_v49, %v6688_v21 }
 0x533   : > { %v6748_v34 = vpop.f32.mrb[40].mxu1 }
 0x534   : > { %v5798_v17 = vadd.f32 %v6748_v34, %v5750_v28  ;;  %v5789_v40 = vpop.f32.mrb[41].mxu1 }
 0x535   : > { %v5790_v38 = vadd.f32 %v5789_v40, %v5742_v22  ;;  %v6749_v7 = vpop.f32.mrb[42].mxu1 }
 0x536   : > { %v5805_v5 = vmax.f32 %v5798_v17, 1e-05  ;;  %v5792_v42 = vpop.f32.mrb[43].mxu1 }
 0x537   : > { %v5803_v53 = vmax.f32 %v5790_v38, 1e-05  ;;  %v5793_v43 = vadd.f32 %v5792_v42, %v5745_v24 }
 0x538   : > { %7968 = vlog2.f32 %v5805_v5 }
 0x539   : > { %7970 = vlog2.f32 %v5803_v53  ;;  %v5804_v44 = vmax.f32 %v5793_v43, 1e-05 }
 0x53b   : > { %7972 = vlog2.f32 %v5804_v44 }
 0x542   : > { %v7969_v51 = vpop.eup %7968 }
 0x543   : > { %v7971_v58 = vpop.eup %7970  ;;  %v5811_v63 = vmul.f32 0.6931472, %v7969_v51 }
 0x544   : > { %v5807_v36 = vmul.f32 0.6931472, %v7971_v58 }
 0x545   : > { %v7973_v37 = vpop.eup %7972  ;;  %5814 = vst [vmem:[%s318_s23 + $0x10] sm:$0xff] %v5811_v63 }
 0x546   : > { %5812 = vst [vmem:[%s318_s23] sm:$0xff] %v5807_v36  ;;  %v5809_v30 = vmul.f32 0.6931472, %v7973_v37 }
 0x548   : > { %5813 = vst [vmem:[%s318_s23 + $0x8] sm:$0xff] %v5809_v30 }
 0x549   : > { %8104 = shalt.err (!%p8101_p7)
}
 0x54a   : > { %s8105_s30 = scalar_lea.hbm %s8796_s11, 384  ;;  %s8109_s27 = scalar_lea.hbm %s8849_s4, 768 }
 0x54b   : > { %p8106_p13 = scmp.ne.s32.totalorder %s8796_s11, %s8105_s30  ;;  %p8110_p2 = scmp.lt.u32.totalorder %s8796_s11, %s8849_s4 }
 0x54c   : > { %p8111_p11 = scmp.lt.u32.totalorder %s8109_s27, %s8105_s30  ;;  %p8113_p1 = scmp.lt.u32.totalorder %s8105_s30, %s8796_s11 }
 0x54d   : > { %p8107_p8 = pnand %p8106_p13, %p8876_p6 }
 0x54e   : > { %p8112_p0 = por %p8111_p11, %p8110_p2 }
 0x54f   : > { %p8108_p12 = pneg %p8107_p8 }
 0x550   : > { %p8114_p10 = por %p8113_p1, %p8112_p0 }
 0x552   : > { %p8115_p3 = pnand %p8114_p10, %p8108_p12 }
 0x554   : > { %8118 = shalt.err (!%p8115_p3)
}
 0x555   : > { %s8198_s3 = smov 128   ;;  %s8199_s25 = smov 8  }
 0x556   : > { %6884 = dma.vmem_to_hbm [thread:$0]  (%p8876_p6), %s8791_s12, 384, %s8796_s11, %s5816_s18, %s8198_s3, %s8198_s3, %s8199_s25  }
 0x557 PF: > { %s5846_s22 = sand.u32 1, %s8165_s15   ;;  %p8877_p4 = scmp.ne.s32.totalorder %s8859_s24, 0 }
 0x558   : > { %p8878_p9 = scmp.ge.s32.totalorder %s8185_s20, 2  ;;  %s5847_s21 = scalar_lea.sflag [#allocation4], %s5846_s22 }
 0x55a   : > { %p6901_p5 = pnand %p8878_p9, %p8877_p4 }
 0x55c   : > { %8160 = dma.done.wait (!%p6901_p5), %s5847_s21, 384  }
 0x55d   : > { %8162 = vsyncadd (!%p6901_p5), %s5847_s21, 4294966912  ;;  %s24_s20 = sadd.s32 1, %s8185_s20   ;;  %s8879_s23 = sld [smem:[#allocation17_spill]] }
 0x55e   : > { %p21_p7 = scmp.ge.s32.totalorder %s24_s20, 4   ;;  %s8880_s28 = sld [smem:[#allocation16_spill]] }
 0x55f   : > { %s8881_s15 = smov %s8169_s16  ;;  %s8882_s16 = smov %s8173_s17 }
 0x560   : > { %s8884_s18 = smov %s8181_s19  ;;  %23 = sbr.rel (!%p21_p7) target bundleno = 13 (0xd), region = 102 }
 0x563   : > { %s8883_s17 = smov %s8879_s23 }
 0x564   : > { %s8885_s19 = smov %s8880_s28 }
 0x567   :  { %5852 = vsyncpa [#allocation3], 1 }
 0x568   :  { %5854 = vsyncpa [#allocation3 + $0x1], 1 }
 0x569   :  { %5855 = vsyncpa [#allocation6], 1 }
 0x56a   :  { %5857 = vsyncpa [#allocation6 + $0x1], 1 }
 0x56b   :  { %5858 = vsyncpa [#allocation9], 1 }
 0x56c   :  { %5859 = vsyncpa [#allocation4], 1 }
 0x56d   :  { %5861 = vsyncpa [#allocation4 + $0x1], 1 }

</bundles_post_ra>
